<compile_context>
chip_gen: v5e
topology: v5e:2x2
jax: 0.10.0
libtpu: 0.0.40
codegen_flags: <defaults>
</compile_context>

<pallas_src>
import functools

import jax
import jax.numpy as jnp
from jax.experimental import pallas as pl
from jax.experimental.pallas import tpu as pltpu

EPS = 1e-5
LANE = 128
VMEM_LIMIT = 48 * 1024 * 1024   # leaves headroom on v7x (64 MiB physical VMEM)


# --------------------------------------------------------------------------
# Kernel 1: (optional fused BN+ReLU on the input) -> 3x3 conv -> partial stats
# One image per grid step.
# --------------------------------------------------------------------------
def _conv3x3_kernel(xpad_ref, scale_ref, shift_ref, mask_ref, w_ref,
                    y_ref, psum_ref, psq_ref, *, H, W, apply_pre_bn_relu):
    CP = xpad_ref.shape[-1]
    h = xpad_ref[0]                                        # (H+2, W+2, CP) f32

    if apply_pre_bn_relu:
        # Fused BN (precomputed per-channel scale/shift) + ReLU on the conv
        # input.  The interior mask keeps the 1-px conv halo at zero AFTER the
        # affine (shift != 0 would otherwise leak into the border taps).
        h = jnp.maximum(h * scale_ref[...] + shift_ref[...], 0.0) * mask_ref[...]

    # im2col built with two lane-axis concats (3 W-shifts, then 3 cheap
    # leading-axis H-shifts) -> ONE deep-K MXU matmul with K = 9*CP instead of
    # nine shallow K=Cin dots.
    xcat = jnp.concatenate([h[:, kw:kw + W, :] for kw in range(3)], axis=-1)     # (H+2, W, 3CP)
    patches = jnp.concatenate([xcat[kh:kh + H] for kh in range(3)], axis=-1)     # (H, W, 9CP)
    y = jnp.dot(patches.reshape(H * W, 9 * CP), w_ref[...],
                preferred_element_type=jnp.float32)                              # (H*W, CP)

    y_ref[0] = y.reshape(H, W, CP)
    # Per-image partials for the global (cross-tile) BatchNorm statistics.
    psum_ref[0] = jnp.sum(y, axis=0, keepdims=True)
    psq_ref[0] = jnp.sum(y * y, axis=0, keepdims=True)


def _conv3x3(xpad, scale, shift, mask, wcol, *, apply_pre_bn_relu):
    N, Hp, Wp, CP = xpad.shape
    H, W = Hp - 2, Wp - 2
    kern = functools.partial(_conv3x3_kernel, H=H, W=W,
                             apply_pre_bn_relu=apply_pre_bn_relu)
    return pl.pallas_call(
        kern,
        out_shape=(jax.ShapeDtypeStruct((N, H, W, CP), jnp.float32),
                   jax.ShapeDtypeStruct((N, 1, CP), jnp.float32),
                   jax.ShapeDtypeStruct((N, 1, CP), jnp.float32)),
        grid=(N,),
        in_specs=[
            pl.BlockSpec((1, Hp, Wp, CP), lambda n: (n, 0, 0, 0)),   # image tile
            pl.BlockSpec((1, CP), lambda n: (0, 0)),                 # bn scale
            pl.BlockSpec((1, CP), lambda n: (0, 0)),                 # bn shift
            pl.BlockSpec((Hp, Wp, 1), lambda n: (0, 0, 0)),          # interior mask
            pl.BlockSpec((9 * CP, CP), lambda n: (0, 0)),            # im2col weights
        ],
        out_specs=(
            pl.BlockSpec((1, H, W, CP), lambda n: (n, 0, 0, 0)),
            pl.BlockSpec((1, 1, CP), lambda n: (n, 0, 0)),
            pl.BlockSpec((1, 1, CP), lambda n: (n, 0, 0)),
        ),
        compiler_params=pltpu.CompilerParams(
            dimension_semantics=("parallel",),
            vmem_limit_bytes=VMEM_LIMIT),
    )(xpad, scale, shift, mask, wcol)


# --------------------------------------------------------------------------
# Kernel 2: fused BN2 (scale/shift) + residual add + ReLU, one image per step.
# --------------------------------------------------------------------------
def _bn_add_relu_kernel(y_ref, x_ref, scale_ref, shift_ref, o_ref):
    o_ref[...] = jnp.maximum(
        y_ref[...] * scale_ref[...] + shift_ref[...] + x_ref[...], 0.0)


def _bn_add_relu(y, identity, scale, shift):
    N, H, W, CP = y.shape
    return pl.pallas_call(
        _bn_add_relu_kernel,
        out_shape=jax.ShapeDtypeStruct((N, H, W, CP), jnp.float32),
        grid=(N,),
        in_specs=[
            pl.BlockSpec((1, H, W, CP), lambda n: (n, 0, 0, 0)),
            pl.BlockSpec((1, H, W, CP), lambda n: (n, 0, 0, 0)),
            pl.BlockSpec((1, CP), lambda n: (0, 0)),
            pl.BlockSpec((1, CP), lambda n: (0, 0)),
        ],
        out_specs=pl.BlockSpec((1, H, W, CP), lambda n: (n, 0, 0, 0)),
        compiler_params=pltpu.CompilerParams(
            dimension_semantics=("parallel",),
            vmem_limit_bytes=VMEM_LIMIT),
    )(y, identity, scale, shift)


# --------------------------------------------------------------------------
# Wrapper
# --------------------------------------------------------------------------
def _bn_scale_shift(psum, psq, gamma, beta, count, cp):
    """Reduce per-image partials into the fused global BN affine (f32)."""
    mean = jnp.sum(psum, axis=(0, 1)) / count
    var = jnp.maximum(jnp.sum(psq, axis=(0, 1)) / count - mean * mean, 0.0)
    g = jnp.pad(gamma, (0, cp - gamma.shape[0]))
    b = jnp.pad(beta, (0, cp - beta.shape[0]))
    scale = g * jax.lax.rsqrt(var + EPS)
    shift = b - mean * scale
    return scale.reshape(1, cp), shift.reshape(1, cp)


@jax.jit
def residual_block(x_nchw, w1, g1, b1, w2, g2, b2):
    """x_nchw: (N,C,H,W) f32; w1/w2: (3,3,Cin,Cout) HWIO; g/b: (Cout,)."""
    N, C, H, W = x_nchw.shape
    Cout = w1.shape[3]
    assert C == Cout, "identity residual requires in_channels == out_channels"
    CP = ((C + LANE - 1) // LANE) * LANE            # lane-dense channel padding

    # NCHW -> NHWC (channels on the 128-lane axis), zero-pad channels to CP.
    x = jnp.transpose(x_nchw, (0, 2, 3, 1))
    xc = jnp.pad(x, ((0, 0), (0, 0), (0, 0), (0, CP - C)))

    def pack_w(w):   # (3,3,Cin,Cout) HWIO -> (9*CP, CP) im2col row-major layout
        wp = jnp.pad(w, ((0, 0), (0, 0),
                         (0, CP - w.shape[2]), (0, CP - w.shape[3])))
        return wp.reshape(9 * CP, CP)

    w1c, w2c = pack_w(w1), pack_w(w2)
    ones = jnp.ones((1, CP), jnp.float32)
    zeros = jnp.zeros((1, CP), jnp.float32)
    mask = jnp.pad(jnp.ones((H, W, 1), jnp.float32), ((1, 1), (1, 1), (0, 0)))
    count = N * H * W

    # Pass 1: conv1 + per-image BN1 partial stats (input DMA'd exactly once;
    # the identity branch reuses xc in pass 3).
    xpad = jnp.pad(xc, ((0, 0), (1, 1), (1, 1), (0, 0)))
    y1, s1, q1 = _conv3x3(xpad, ones, zeros, mask, w1c, apply_pre_bn_relu=False)
    scale1, shift1 = _bn_scale_shift(s1, q1, g1, b1, count, CP)

    # Pass 2: fused BN1+ReLU (as scale/shift) on the conv input + conv2 +
    # per-image BN2 partial stats.
    y1pad = jnp.pad(y1, ((0, 0), (1, 1), (1, 1), (0, 0)))
    y2, s2, q2 = _conv3x3(y1pad, scale1, shift1, mask, w2c, apply_pre_bn_relu=True)
    scale2, shift2 = _bn_scale_shift(s2, q2, g2, b2, count, CP)

    # Pass 3: fused BN2 + residual add + ReLU.
    out = _bn_add_relu(y2, xc, scale2, shift2)

    return jnp.transpose(out[..., :C], (0, 3, 1, 2))   # NHWC -> NCHW


# --------------------------------------------------------------------------
# Plain-JAX reference (same math) for a sanity check.
# --------------------------------------------------------------------------
def _reference(x_nchw, w1, g1, b1, w2, g2, b2):
    x = jnp.transpose(x_nchw, (0, 2, 3, 1))
    dn = jax.lax.conv_dimension_numbers(x.shape, w1.shape, ("NHWC", "HWIO", "NHWC"))

    def bn(y, g, b):
        m = jnp.mean(y, axis=(0, 1, 2), keepdims=True)
        v = jnp.mean((y - m) ** 2, axis=(0, 1, 2), keepdims=True)
        return (y - m) * jax.lax.rsqrt(v + EPS) * g + b

    h = jax.lax.conv_general_dilated(x, w1, (1, 1), "SAME", dimension_numbers=dn)
    h = jnp.maximum(bn(h, g1, b1), 0.0)
    h = jax.lax.conv_general_dilated(h, w2, (1, 1), "SAME", dimension_numbers=dn)
    h = bn(h, g2, b2)
    out = jnp.maximum(h + x, 0.0)
    return jnp.transpose(out, (0, 3, 1, 2))


if __name__ == "__main__":
    key = jax.random.PRNGKey(0)
    kx, k1, k2 = jax.random.split(key, 3)

    N, C, H, W = 2, 4, 16, 16
    Cout = C  # identity residual requires in_channels == out_channels

    x = jax.random.normal(kx, (N, C, H, W), jnp.float32)
    # deterministic He-style init for conv weights (HWIO layout)
    w1 = jax.random.normal(k1, (3, 3, C, Cout), jnp.float32) * (2.0 / (9 * C)) ** 0.5
    w2 = jax.random.normal(k2, (3, 3, Cout, Cout), jnp.float32) * (2.0 / (9 * Cout)) ** 0.5
    # BatchNorm2d default init: gamma=1, beta=0
    g1 = jnp.ones((Cout,), jnp.float32)
    b1 = jnp.zeros((Cout,), jnp.float32)
    g2 = jnp.ones((Cout,), jnp.float32)
    b2 = jnp.zeros((Cout,), jnp.float32)

    y = residual_block(x, w1, g1, b1, w2, g2, b2)
    jax.block_until_ready(y)

    y_ref = _reference(x, w1, g1, b1, w2, g2, b2)
    assert y.shape == (N, C, H, W)
    assert jnp.allclose(y, y_ref, rtol=2e-3, atol=2e-3), "mismatch vs reference"

    print("KERNEL_OK")
</pallas_src>

<mosaic_0001>
module attributes {stable_mosaic.version = 11 : i64} {
  func.func @_conv3x3_kernel(%arg0: i32, %arg1: memref<1x18x18x128xf32, #tpu.memory_space<vmem>>, %arg2: memref<1x128xf32, #tpu.memory_space<vmem>>, %arg3: memref<1x128xf32, #tpu.memory_space<vmem>>, %arg4: memref<18x18x1xf32, #tpu.memory_space<vmem>>, %arg5: memref<1152x128xf32, #tpu.memory_space<vmem>>, %arg6: memref<1x16x16x128xf32, #tpu.memory_space<vmem>>, %arg7: memref<1x1x128xf32, #tpu.memory_space<vmem>>, %arg8: memref<1x1x128xf32, #tpu.memory_space<vmem>>) attributes {dimension_semantics = [#tpu.dimension_semantics<parallel>], iteration_bounds = array<i64: 2>, scalar_prefetch = 0 : i64, scratch_operands = 0 : i64, tpu.core_type = #tpu.core_type<tc>, window_params = [{transform_indices = @transform_0, window_bounds = array<i64: 1, 18, 18, 128>}, {pipeline_mode = #tpu.pipeline_mode<synchronous>, transform_indices = @transform_1, window_bounds = array<i64: 1, 128>}, {pipeline_mode = #tpu.pipeline_mode<synchronous>, transform_indices = @transform_2, window_bounds = array<i64: 1, 128>}, {pipeline_mode = #tpu.pipeline_mode<synchronous>, transform_indices = @transform_3, window_bounds = array<i64: 18, 18, 1>}, {pipeline_mode = #tpu.pipeline_mode<synchronous>, transform_indices = @transform_4, window_bounds = array<i64: 1152, 128>}, {transform_indices = @transform_5, window_bounds = array<i64: 1, 16, 16, 128>}, {transform_indices = @transform_6, window_bounds = array<i64: 1, 1, 128>}, {transform_indices = @transform_7, window_bounds = array<i64: 1, 1, 128>}]} {
    %c0 = arith.constant 0 : index
    %c0_0 = arith.constant 0 : index
    %c0_1 = arith.constant 0 : index
    %c0_2 = arith.constant 0 : index
    %0 = vector.load %arg1[%c0, %c0_0, %c0_1, %c0_2] : memref<1x18x18x128xf32, #tpu.memory_space<vmem>>, vector<1x18x18x128xf32>
    %1 = vector.shape_cast %0 : vector<1x18x18x128xf32> to vector<18x18x128xf32>
    %2 = vector.extract_strided_slice %1 {offsets = [0, 0, 0], sizes = [18, 16, 128], strides = [1, 1, 1]} : vector<18x18x128xf32> to vector<18x16x128xf32>
    %3 = vector.extract_strided_slice %1 {offsets = [0, 1, 0], sizes = [18, 16, 128], strides = [1, 1, 1]} : vector<18x18x128xf32> to vector<18x16x128xf32>
    %4 = vector.extract_strided_slice %1 {offsets = [0, 2, 0], sizes = [18, 16, 128], strides = [1, 1, 1]} : vector<18x18x128xf32> to vector<18x16x128xf32>
    %5 = tpu.concatenate %2, %3, %4 in 2 : vector<18x16x128xf32>, vector<18x16x128xf32>, vector<18x16x128xf32> -> vector<18x16x384xf32>
    %6 = vector.extract_strided_slice %5 {offsets = [0, 0, 0], sizes = [16, 16, 384], strides = [1, 1, 1]} : vector<18x16x384xf32> to vector<16x16x384xf32>
    %7 = vector.extract_strided_slice %5 {offsets = [1, 0, 0], sizes = [16, 16, 384], strides = [1, 1, 1]} : vector<18x16x384xf32> to vector<16x16x384xf32>
    %8 = vector.extract_strided_slice %5 {offsets = [2, 0, 0], sizes = [16, 16, 384], strides = [1, 1, 1]} : vector<18x16x384xf32> to vector<16x16x384xf32>
    %9 = tpu.concatenate %6, %7, %8 in 2 : vector<16x16x384xf32>, vector<16x16x384xf32>, vector<16x16x384xf32> -> vector<16x16x1152xf32>
    %10 = vector.shape_cast %9 : vector<16x16x1152xf32> to vector<256x1152xf32>
    %c0_3 = arith.constant 0 : index
    %c0_4 = arith.constant 0 : index
    %11 = vector.load %arg5[%c0_3, %c0_4] : memref<1152x128xf32, #tpu.memory_space<vmem>>, vector<1152x128xf32>
    %cst = arith.constant dense<0.000000e+00> : vector<256x128xf32>
    %12 = tpu.matmul %10, %11, %cst {dimension_numbers = #tpu.dot_dimension_numbers<[1], [0], [0], [1], [0, 0, 1, 1], [], []>} : vector<256x1152xf32>, vector<1152x128xf32>, vector<256x128xf32> -> vector<256x128xf32>
    %13 = vector.shape_cast %12 : vector<256x128xf32> to vector<16x16x128xf32>
    %c0_5 = arith.constant 0 : index
    %c0_6 = arith.constant 0 : index
    %c0_7 = arith.constant 0 : index
    %c0_8 = arith.constant 0 : index
    %14 = vector.load %arg6[%c0_5, %c0_6, %c0_7, %c0_8] : memref<1x16x16x128xf32, #tpu.memory_space<vmem>>, vector<1x16x16x128xf32>
    %15 = vector.shape_cast %14 : vector<1x16x16x128xf32> to vector<16x16x128xf32>
    %16 = vector.shape_cast %13 : vector<16x16x128xf32> to vector<1x16x16x128xf32>
    tpu.vector_store %arg6[%c0_5, %c0_6, %c0_7, %c0_8], %16 {strides = array<i32>} : memref<1x16x16x128xf32, #tpu.memory_space<vmem>>, vector<1x16x16x128xf32>,
    %cst_9 = arith.constant dense<0.000000e+00> : vector<128xf32>
    %17 = vector.multi_reduction <add>, %12, %cst_9 [0] : vector<256x128xf32> to vector<128xf32>
    %18 = vector.shape_cast %17 : vector<128xf32> to vector<1x128xf32>
    %c0_10 = arith.constant 0 : index
    %c0_11 = arith.constant 0 : index
    %c0_12 = arith.constant 0 : index
    %19 = vector.load %arg7[%c0_10, %c0_11, %c0_12] : memref<1x1x128xf32, #tpu.memory_space<vmem>>, vector<1x1x128xf32>
    %20 = vector.shape_cast %19 : vector<1x1x128xf32> to vector<1x128xf32>
    %21 = vector.shape_cast %18 : vector<1x128xf32> to vector<1x1x128xf32>
    tpu.vector_store %arg7[%c0_10, %c0_11, %c0_12], %21 {strides = array<i32>} : memref<1x1x128xf32, #tpu.memory_space<vmem>>, vector<1x1x128xf32>,
    %22 = arith.mulf %12, %12 : vector<256x128xf32>
    %cst_13 = arith.constant dense<0.000000e+00> : vector<128xf32>
    %23 = vector.multi_reduction <add>, %22, %cst_13 [0] : vector<256x128xf32> to vector<128xf32>
    %24 = vector.shape_cast %23 : vector<128xf32> to vector<1x128xf32>
    %c0_14 = arith.constant 0 : index
    %c0_15 = arith.constant 0 : index
    %c0_16 = arith.constant 0 : index
    %25 = vector.load %arg8[%c0_14, %c0_15, %c0_16] : memref<1x1x128xf32, #tpu.memory_space<vmem>>, vector<1x1x128xf32>
    %26 = vector.shape_cast %25 : vector<1x1x128xf32> to vector<1x128xf32>
    %27 = vector.shape_cast %24 : vector<1x128xf32> to vector<1x1x128xf32>
    tpu.vector_store %arg8[%c0_14, %c0_15, %c0_16], %27 {strides = array<i32>} : memref<1x1x128xf32, #tpu.memory_space<vmem>>, vector<1x1x128xf32>,
    return
  }
  func.func @transform_0(%arg0: i32) -> (i32, i32, i32, i32) {
    %c0_i32 = arith.constant 0 : i32
    %c0_i32_0 = arith.constant 0 : i32
    %c0_i32_1 = arith.constant 0 : i32
    %c0_i32_2 = arith.constant 0 : i32
    return %arg0, %c0_i32, %c0_i32_0, %c0_i32_1 : i32, i32, i32, i32
  }
  func.func @transform_1(%arg0: i32) -> (i32, i32) {
    %c0_i32 = arith.constant 0 : i32
    %c0_i32_0 = arith.constant 0 : i32
    %c0_i32_1 = arith.constant 0 : i32
    return %c0_i32, %c0_i32_0 : i32, i32
  }
  func.func @transform_2(%arg0: i32) -> (i32, i32) {
    %c0_i32 = arith.constant 0 : i32
    %c0_i32_0 = arith.constant 0 : i32
    %c0_i32_1 = arith.constant 0 : i32
    return %c0_i32, %c0_i32_0 : i32, i32
  }
  func.func @transform_3(%arg0: i32) -> (i32, i32, i32) {
    %c0_i32 = arith.constant 0 : i32
    %c0_i32_0 = arith.constant 0 : i32
    %c0_i32_1 = arith.constant 0 : i32
    %c0_i32_2 = arith.constant 0 : i32
    return %c0_i32, %c0_i32_0, %c0_i32_1 : i32, i32, i32
  }
  func.func @transform_4(%arg0: i32) -> (i32, i32) {
    %c0_i32 = arith.constant 0 : i32
    %c0_i32_0 = arith.constant 0 : i32
    %c0_i32_1 = arith.constant 0 : i32
    return %c0_i32, %c0_i32_0 : i32, i32
  }
  func.func @transform_5(%arg0: i32) -> (i32, i32, i32, i32) {
    %c0_i32 = arith.constant 0 : i32
    %c0_i32_0 = arith.constant 0 : i32
    %c0_i32_1 = arith.constant 0 : i32
    %c0_i32_2 = arith.constant 0 : i32
    return %arg0, %c0_i32, %c0_i32_0, %c0_i32_1 : i32, i32, i32, i32
  }
  func.func @transform_6(%arg0: i32) -> (i32, i32, i32) {
    %c0_i32 = arith.constant 0 : i32
    %c0_i32_0 = arith.constant 0 : i32
    %c0_i32_1 = arith.constant 0 : i32
    return %arg0, %c0_i32, %c0_i32_0 : i32, i32, i32
  }
  func.func @transform_7(%arg0: i32) -> (i32, i32, i32) {
    %c0_i32 = arith.constant 0 : i32
    %c0_i32_0 = arith.constant 0 : i32
    %c0_i32_1 = arith.constant 0 : i32
    return %arg0, %c0_i32, %c0_i32_0 : i32, i32, i32
  }
}

module attributes {stable_mosaic.version = 11 : i64} {
  func.func @_conv3x3_kernel(%arg0: i32, %arg1: memref<1x18x18x128xf32, #tpu.memory_space<vmem>>, %arg2: memref<1x128xf32, #tpu.memory_space<vmem>>, %arg3: memref<1x128xf32, #tpu.memory_space<vmem>>, %arg4: memref<18x18x1xf32, #tpu.memory_space<vmem>>, %arg5: memref<1152x128xf32, #tpu.memory_space<vmem>>, %arg6: memref<1x16x16x128xf32, #tpu.memory_space<vmem>>, %arg7: memref<1x1x128xf32, #tpu.memory_space<vmem>>, %arg8: memref<1x1x128xf32, #tpu.memory_space<vmem>>) attributes {dimension_semantics = [#tpu.dimension_semantics<parallel>], iteration_bounds = array<i64: 2>, scalar_prefetch = 0 : i64, scratch_operands = 0 : i64, tpu.core_type = #tpu.core_type<tc>, window_params = [{transform_indices = @transform_0, window_bounds = array<i64: 1, 18, 18, 128>}, {pipeline_mode = #tpu.pipeline_mode<synchronous>, transform_indices = @transform_1, window_bounds = array<i64: 1, 128>}, {pipeline_mode = #tpu.pipeline_mode<synchronous>, transform_indices = @transform_2, window_bounds = array<i64: 1, 128>}, {pipeline_mode = #tpu.pipeline_mode<synchronous>, transform_indices = @transform_3, window_bounds = array<i64: 18, 18, 1>}, {pipeline_mode = #tpu.pipeline_mode<synchronous>, transform_indices = @transform_4, window_bounds = array<i64: 1152, 128>}, {transform_indices = @transform_5, window_bounds = array<i64: 1, 16, 16, 128>}, {transform_indices = @transform_6, window_bounds = array<i64: 1, 1, 128>}, {transform_indices = @transform_7, window_bounds = array<i64: 1, 1, 128>}]} {
    %c0 = arith.constant 0 : index
    %c0_0 = arith.constant 0 : index
    %c0_1 = arith.constant 0 : index
    %c0_2 = arith.constant 0 : index
    %0 = vector.load %arg1[%c0, %c0_0, %c0_1, %c0_2] : memref<1x18x18x128xf32, #tpu.memory_space<vmem>>, vector<1x18x18x128xf32>
    %1 = vector.shape_cast %0 : vector<1x18x18x128xf32> to vector<18x18x128xf32>
    %c0_3 = arith.constant 0 : index
    %c0_4 = arith.constant 0 : index
    %2 = vector.load %arg2[%c0_3, %c0_4] : memref<1x128xf32, #tpu.memory_space<vmem>>, vector<1x128xf32>
    %3 = vector.shape_cast %2 : vector<1x128xf32> to vector<1x1x128xf32>
    %4 = vector.broadcast %3 : vector<1x1x128xf32> to vector<18x18x128xf32>
    %5 = arith.mulf %1, %4 : vector<18x18x128xf32>
    %c0_5 = arith.constant 0 : index
    %c0_6 = arith.constant 0 : index
    %6 = vector.load %arg3[%c0_5, %c0_6] : memref<1x128xf32, #tpu.memory_space<vmem>>, vector<1x128xf32>
    %7 = vector.shape_cast %6 : vector<1x128xf32> to vector<1x1x128xf32>
    %8 = vector.broadcast %7 : vector<1x1x128xf32> to vector<18x18x128xf32>
    %9 = arith.addf %5, %8 : vector<18x18x128xf32>
    %cst = arith.constant 0.000000e+00 : f32
    %10 = vector.broadcast %cst : f32 to vector<18x18x128xf32>
    %11 = arith.maximumf %9, %10 : vector<18x18x128xf32>
    %c0_7 = arith.constant 0 : index
    %c0_8 = arith.constant 0 : index
    %c0_9 = arith.constant 0 : index
    %12 = vector.load %arg4[%c0_7, %c0_8, %c0_9] : memref<18x18x1xf32, #tpu.memory_space<vmem>>, vector<18x18x1xf32>
    %13 = vector.broadcast %12 : vector<18x18x1xf32> to vector<18x18x128xf32>
    %14 = arith.mulf %11, %13 : vector<18x18x128xf32>
    %15 = vector.extract_strided_slice %14 {offsets = [0, 0, 0], sizes = [18, 16, 128], strides = [1, 1, 1]} : vector<18x18x128xf32> to vector<18x16x128xf32>
    %16 = vector.extract_strided_slice %14 {offsets = [0, 1, 0], sizes = [18, 16, 128], strides = [1, 1, 1]} : vector<18x18x128xf32> to vector<18x16x128xf32>
    %17 = vector.extract_strided_slice %14 {offsets = [0, 2, 0], sizes = [18, 16, 128], strides = [1, 1, 1]} : vector<18x18x128xf32> to vector<18x16x128xf32>
    %18 = tpu.concatenate %15, %16, %17 in 2 : vector<18x16x128xf32>, vector<18x16x128xf32>, vector<18x16x128xf32> -> vector<18x16x384xf32>
    %19 = vector.extract_strided_slice %18 {offsets = [0, 0, 0], sizes = [16, 16, 384], strides = [1, 1, 1]} : vector<18x16x384xf32> to vector<16x16x384xf32>
    %20 = vector.extract_strided_slice %18 {offsets = [1, 0, 0], sizes = [16, 16, 384], strides = [1, 1, 1]} : vector<18x16x384xf32> to vector<16x16x384xf32>
    %21 = vector.extract_strided_slice %18 {offsets = [2, 0, 0], sizes = [16, 16, 384], strides = [1, 1, 1]} : vector<18x16x384xf32> to vector<16x16x384xf32>
    %22 = tpu.concatenate %19, %20, %21 in 2 : vector<16x16x384xf32>, vector<16x16x384xf32>, vector<16x16x384xf32> -> vector<16x16x1152xf32>
    %23 = vector.shape_cast %22 : vector<16x16x1152xf32> to vector<256x1152xf32>
    %c0_10 = arith.constant 0 : index
    %c0_11 = arith.constant 0 : index
    %24 = vector.load %arg5[%c0_10, %c0_11] : memref<1152x128xf32, #tpu.memory_space<vmem>>, vector<1152x128xf32>
    %cst_12 = arith.constant dense<0.000000e+00> : vector<256x128xf32>
    %25 = tpu.matmul %23, %24, %cst_12 {dimension_numbers = #tpu.dot_dimension_numbers<[1], [0], [0], [1], [0, 0, 1, 1], [], []>} : vector<256x1152xf32>, vector<1152x128xf32>, vector<256x128xf32> -> vector<256x128xf32>
    %26 = vector.shape_cast %25 : vector<256x128xf32> to vector<16x16x128xf32>
    %c0_13 = arith.constant 0 : index
    %c0_14 = arith.constant 0 : index
    %c0_15 = arith.constant 0 : index
    %c0_16 = arith.constant 0 : index
    %27 = vector.load %arg6[%c0_13, %c0_14, %c0_15, %c0_16] : memref<1x16x16x128xf32, #tpu.memory_space<vmem>>, vector<1x16x16x128xf32>
    %28 = vector.shape_cast %27 : vector<1x16x16x128xf32> to vector<16x16x128xf32>
    %29 = vector.shape_cast %26 : vector<16x16x128xf32> to vector<1x16x16x128xf32>
    tpu.vector_store %arg6[%c0_13, %c0_14, %c0_15, %c0_16], %29 {strides = array<i32>} : memref<1x16x16x128xf32, #tpu.memory_space<vmem>>, vector<1x16x16x128xf32>,
    %cst_17 = arith.constant dense<0.000000e+00> : vector<128xf32>
    %30 = vector.multi_reduction <add>, %25, %cst_17 [0] : vector<256x128xf32> to vector<128xf32>
    %31 = vector.shape_cast %30 : vector<128xf32> to vector<1x128xf32>
    %c0_18 = arith.constant 0 : index
    %c0_19 = arith.constant 0 : index
    %c0_20 = arith.constant 0 : index
    %32 = vector.load %arg7[%c0_18, %c0_19, %c0_20] : memref<1x1x128xf32, #tpu.memory_space<vmem>>, vector<1x1x128xf32>
    %33 = vector.shape_cast %32 : vector<1x1x128xf32> to vector<1x128xf32>
    %34 = vector.shape_cast %31 : vector<1x128xf32> to vector<1x1x128xf32>
    tpu.vector_store %arg7[%c0_18, %c0_19, %c0_20], %34 {strides = array<i32>} : memref<1x1x128xf32, #tpu.memory_space<vmem>>, vector<1x1x128xf32>,
    %35 = arith.mulf %25, %25 : vector<256x128xf32>
    %cst_21 = arith.constant dense<0.000000e+00> : vector<128xf32>
    %36 = vector.multi_reduction <add>, %35, %cst_21 [0] : vector<256x128xf32> to vector<128xf32>
    %37 = vector.shape_cast %36 : vector<128xf32> to vector<1x128xf32>
    %c0_22 = arith.constant 0 : index
    %c0_23 = arith.constant 0 : index
    %c0_24 = arith.constant 0 : index
    %38 = vector.load %arg8[%c0_22, %c0_23, %c0_24] : memref<1x1x128xf32, #tpu.memory_space<vmem>>, vector<1x1x128xf32>
    %39 = vector.shape_cast %38 : vector<1x1x128xf32> to vector<1x128xf32>
    %40 = vector.shape_cast %37 : vector<1x128xf32> to vector<1x1x128xf32>
    tpu.vector_store %arg8[%c0_22, %c0_23, %c0_24], %40 {strides = array<i32>} : memref<1x1x128xf32, #tpu.memory_space<vmem>>, vector<1x1x128xf32>,
    return
  }
  func.func @transform_0(%arg0: i32) -> (i32, i32, i32, i32) {
    %c0_i32 = arith.constant 0 : i32
    %c0_i32_0 = arith.constant 0 : i32
    %c0_i32_1 = arith.constant 0 : i32
    %c0_i32_2 = arith.constant 0 : i32
    return %arg0, %c0_i32, %c0_i32_0, %c0_i32_1 : i32, i32, i32, i32
  }
  func.func @transform_1(%arg0: i32) -> (i32, i32) {
    %c0_i32 = arith.constant 0 : i32
    %c0_i32_0 = arith.constant 0 : i32
    %c0_i32_1 = arith.constant 0 : i32
    return %c0_i32, %c0_i32_0 : i32, i32
  }
  func.func @transform_2(%arg0: i32) -> (i32, i32) {
    %c0_i32 = arith.constant 0 : i32
    %c0_i32_0 = arith.constant 0 : i32
    %c0_i32_1 = arith.constant 0 : i32
    return %c0_i32, %c0_i32_0 : i32, i32
  }
  func.func @transform_3(%arg0: i32) -> (i32, i32, i32) {
    %c0_i32 = arith.constant 0 : i32
    %c0_i32_0 = arith.constant 0 : i32
    %c0_i32_1 = arith.constant 0 : i32
    %c0_i32_2 = arith.constant 0 : i32
    return %c0_i32, %c0_i32_0, %c0_i32_1 : i32, i32, i32
  }
  func.func @transform_4(%arg0: i32) -> (i32, i32) {
    %c0_i32 = arith.constant 0 : i32
    %c0_i32_0 = arith.constant 0 : i32
    %c0_i32_1 = arith.constant 0 : i32
    return %c0_i32, %c0_i32_0 : i32, i32
  }
  func.func @transform_5(%arg0: i32) -> (i32, i32, i32, i32) {
    %c0_i32 = arith.constant 0 : i32
    %c0_i32_0 = arith.constant 0 : i32
    %c0_i32_1 = arith.constant 0 : i32
    %c0_i32_2 = arith.constant 0 : i32
    return %arg0, %c0_i32, %c0_i32_0, %c0_i32_1 : i32, i32, i32, i32
  }
  func.func @transform_6(%arg0: i32) -> (i32, i32, i32) {
    %c0_i32 = arith.constant 0 : i32
    %c0_i32_0 = arith.constant 0 : i32
    %c0_i32_1 = arith.constant 0 : i32
    return %arg0, %c0_i32, %c0_i32_0 : i32, i32, i32
  }
  func.func @transform_7(%arg0: i32) -> (i32, i32, i32) {
    %c0_i32 = arith.constant 0 : i32
    %c0_i32_0 = arith.constant 0 : i32
    %c0_i32_1 = arith.constant 0 : i32
    return %arg0, %c0_i32, %c0_i32_0 : i32, i32, i32
  }
}

module attributes {stable_mosaic.version = 11 : i64} {
  func.func @_bn_add_relu_kernel(%arg0: i32, %arg1: memref<1x16x16x128xf32, #tpu.memory_space<vmem>>, %arg2: memref<1x16x16x128xf32, #tpu.memory_space<vmem>>, %arg3: memref<1x128xf32, #tpu.memory_space<vmem>>, %arg4: memref<1x128xf32, #tpu.memory_space<vmem>>, %arg5: memref<1x16x16x128xf32, #tpu.memory_space<vmem>>) attributes {dimension_semantics = [#tpu.dimension_semantics<parallel>], iteration_bounds = array<i64: 2>, scalar_prefetch = 0 : i64, scratch_operands = 0 : i64, tpu.core_type = #tpu.core_type<tc>, window_params = [{transform_indices = @transform_0, window_bounds = array<i64: 1, 16, 16, 128>}, {transform_indices = @transform_1, window_bounds = array<i64: 1, 16, 16, 128>}, {pipeline_mode = #tpu.pipeline_mode<synchronous>, transform_indices = @transform_2, window_bounds = array<i64: 1, 128>}, {pipeline_mode = #tpu.pipeline_mode<synchronous>, transform_indices = @transform_3, window_bounds = array<i64: 1, 128>}, {transform_indices = @transform_4, window_bounds = array<i64: 1, 16, 16, 128>}]} {
    %c0 = arith.constant 0 : index
    %c0_0 = arith.constant 0 : index
    %c0_1 = arith.constant 0 : index
    %c0_2 = arith.constant 0 : index
    %0 = vector.load %arg1[%c0, %c0_0, %c0_1, %c0_2] : memref<1x16x16x128xf32, #tpu.memory_space<vmem>>, vector<1x16x16x128xf32>
    %c0_3 = arith.constant 0 : index
    %c0_4 = arith.constant 0 : index
    %1 = vector.load %arg3[%c0_3, %c0_4] : memref<1x128xf32, #tpu.memory_space<vmem>>, vector<1x128xf32>
    %2 = vector.shape_cast %1 : vector<1x128xf32> to vector<1x1x1x128xf32>
    %3 = vector.broadcast %2 : vector<1x1x1x128xf32> to vector<1x16x16x128xf32>
    %4 = arith.mulf %0, %3 : vector<1x16x16x128xf32>
    %c0_5 = arith.constant 0 : index
    %c0_6 = arith.constant 0 : index
    %5 = vector.load %arg4[%c0_5, %c0_6] : memref<1x128xf32, #tpu.memory_space<vmem>>, vector<1x128xf32>
    %6 = vector.shape_cast %5 : vector<1x128xf32> to vector<1x1x1x128xf32>
    %7 = vector.broadcast %6 : vector<1x1x1x128xf32> to vector<1x16x16x128xf32>
    %8 = arith.addf %4, %7 : vector<1x16x16x128xf32>
    %c0_7 = arith.constant 0 : index
    %c0_8 = arith.constant 0 : index
    %c0_9 = arith.constant 0 : index
    %c0_10 = arith.constant 0 : index
    %9 = vector.load %arg2[%c0_7, %c0_8, %c0_9, %c0_10] : memref<1x16x16x128xf32, #tpu.memory_space<vmem>>, vector<1x16x16x128xf32>
    %10 = arith.addf %8, %9 : vector<1x16x16x128xf32>
    %cst = arith.constant 0.000000e+00 : f32
    %11 = vector.broadcast %cst : f32 to vector<1x16x16x128xf32>
    %12 = arith.maximumf %10, %11 : vector<1x16x16x128xf32>
    %c0_11 = arith.constant 0 : index
    %c0_12 = arith.constant 0 : index
    %c0_13 = arith.constant 0 : index
    %c0_14 = arith.constant 0 : index
    %13 = vector.load %arg5[%c0_11, %c0_12, %c0_13, %c0_14] : memref<1x16x16x128xf32, #tpu.memory_space<vmem>>, vector<1x16x16x128xf32>
    tpu.vector_store %arg5[%c0_11, %c0_12, %c0_13, %c0_14], %12 {strides = array<i32>} : memref<1x16x16x128xf32, #tpu.memory_space<vmem>>, vector<1x16x16x128xf32>,
    return
  }
  func.func @transform_0(%arg0: i32) -> (i32, i32, i32, i32) {
    %c0_i32 = arith.constant 0 : i32
    %c0_i32_0 = arith.constant 0 : i32
    %c0_i32_1 = arith.constant 0 : i32
    %c0_i32_2 = arith.constant 0 : i32
    return %arg0, %c0_i32, %c0_i32_0, %c0_i32_1 : i32, i32, i32, i32
  }
  func.func @transform_1(%arg0: i32) -> (i32, i32, i32, i32) {
    %c0_i32 = arith.constant 0 : i32
    %c0_i32_0 = arith.constant 0 : i32
    %c0_i32_1 = arith.constant 0 : i32
    %c0_i32_2 = arith.constant 0 : i32
    return %arg0, %c0_i32, %c0_i32_0, %c0_i32_1 : i32, i32, i32, i32
  }
  func.func @transform_2(%arg0: i32) -> (i32, i32) {
    %c0_i32 = arith.constant 0 : i32
    %c0_i32_0 = arith.constant 0 : i32
    %c0_i32_1 = arith.constant 0 : i32
    return %c0_i32, %c0_i32_0 : i32, i32
  }
  func.func @transform_3(%arg0: i32) -> (i32, i32) {
    %c0_i32 = arith.constant 0 : i32
    %c0_i32_0 = arith.constant 0 : i32
    %c0_i32_1 = arith.constant 0 : i32
    return %c0_i32, %c0_i32_0 : i32, i32
  }
  func.func @transform_4(%arg0: i32) -> (i32, i32, i32, i32) {
    %c0_i32 = arith.constant 0 : i32
    %c0_i32_0 = arith.constant 0 : i32
    %c0_i32_1 = arith.constant 0 : i32
    %c0_i32_2 = arith.constant 0 : i32
    return %arg0, %c0_i32, %c0_i32_0, %c0_i32_1 : i32, i32, i32, i32
  }
}

</mosaic_0001>

<bundles_post_ra>
// kernel: residual_block.5
= control target key start
LH: loop header
LB: loop body
LE: loop exit
PB: predicated region body
PF: predicated region fallthrough
CT: control target
= control target key end

     0   :  { %s576_s15 = smov 0   ;;  %s777_s0 = inlined_call_operand.vmem [shape: f32[2,16,16,128], index: 0, kind: input, shape index: {}]   ;;  %s778_s1 = inlined_call_operand.vmem [shape: f32[2,16,16,128], index: 1, kind: input, shape index: {}]   ;;  %s779_s2 = inlined_call_operand.vmem [shape: f32[1,128], index: 2, kind: input, shape index: {}]   ;;  %s780_s3 = inlined_call_operand.vmem [shape: f32[1,128], index: 3, kind: input, shape index: {}]   ;;  %s781_s4 = inlined_call_operand.vmem [shape: f32[2,16,16,128], index: 4, kind: output, shape index: {}]  }
   0x1 LB: > { %s517_s16 = sadd.s32 4294967295, %s549_s15   ;;  %p521_p0 = scmp.ge.s32.totalorder %s549_s15, 1  ;;  %s549_s15 = sphi %s576_s15, %s14_s15  }
   0x2   : > { %p172_p1 = scmp.lt.s32.totalorder %s549_s15, 3 }
   0x4   : > { %p173_p2 = pnand %p521_p0, %p172_p1 }
   0x5   : > { %p203_p3 = scmp.lt.s32.totalorder (!%p173_p2), %s517_s16, 1 }
   0x6   : > { %176 = sbr.rel (%p173_p2) target bundleno = 55 (0x37), region = 36 }
   0xb   : > { %s783_s16 = smov (!%p203_p3, %s517_s16), 1  ;;  %v587_v0 = vld [vmem:[%s779_s2] ss:$0 sm:$0xff] }
   0xc   : > { %s589_s19 = sshll.u32 %s783_s16, 8  ;;  %v606_v1 = vld [vmem:[%s780_s3] ss:$0 sm:$0xff] }
   0xd   : > { %s595_s22 = scalar_lea.vmem %s777_s0, %s589_s19  ;;  %s601_s25 = scalar_lea.vmem %s778_s1, %s589_s19 }
   0xe   : > { %v218_v2 = vld [vmem:[%s595_s22] sm:$0xff]  ;;  %v219_v3 = vld [vmem:[%s595_s22 + $0x8] sm:$0xff]  ;;  %v220_v7 = vld [vmem:[%s595_s22 + $0x10] sm:$0xff]  ;;  %s637_s30 = scalar_lea.vmem %s781_s4, %s589_s19 }
   0xf   : > { %v254_v4 = vmul.f32 %v587_v0, %v218_v2  ;;  %v322_v5 = vld [vmem:[%s601_s25] sm:$0xff]  ;;  %v255_v6 = vmul.f32 %v587_v0, %v219_v3  ;;  %v323_v8 = vld [vmem:[%s601_s25 + $0x8] sm:$0xff]  ;;  %v256_v9 = vmul.f32 %v587_v0, %v220_v7  ;;  %v221_v10 = vld [vmem:[%s595_s22 + $0x18] sm:$0xff] }
  0x10   : > { %v222_v11 = vld [vmem:[%s595_s22 + $0x20] sm:$0xff]  ;;  %v324_v14 = vld [vmem:[%s601_s25 + $0x10] sm:$0xff]  ;;  %v257_v15 = vmul.f32 %v587_v0, %v221_v10  ;;  %v325_v16 = vld [vmem:[%s601_s25 + $0x18] sm:$0xff] }
  0x11   : > { %v290_v12 = vadd.f32 %v606_v1, %v254_v4  ;;  %v291_v13 = vadd.f32 %v606_v1, %v255_v6  ;;  %v258_v17 = vmul.f32 %v587_v0, %v222_v11  ;;  %v223_v18 = vld [vmem:[%s595_s22 + $0x28] sm:$0xff]  ;;  %v292_v19 = vadd.f32 %v606_v1, %v256_v9  ;;  %v326_v20 = vld [vmem:[%s601_s25 + $0x20] sm:$0xff]  ;;  %v224_v22 = vld [vmem:[%s595_s22 + $0x30] sm:$0xff] }
  0x12   : > { %v259_v21 = vmul.f32 %v587_v0, %v223_v18  ;;  %v225_v23 = vld [vmem:[%s595_s22 + $0x38] sm:$0xff]  ;;  %v293_v26 = vadd.f32 %v606_v1, %v257_v15  ;;  %v327_v28 = vld [vmem:[%s601_s25 + $0x28] sm:$0xff]  ;;  %v260_v31 = vmul.f32 %v587_v0, %v224_v22  ;;  %v226_v33 = vld [vmem:[%s595_s22 + $0x40] sm:$0xff] }
  0x13   : > { %v354_v24 = vadd.f32 %v322_v5, %v290_v12  ;;  %v355_v25 = vadd.f32 %v323_v8, %v291_v13  ;;  %v294_v27 = vadd.f32 %v606_v1, %v258_v17  ;;  %v356_v29 = vadd.f32 %v324_v14, %v292_v19  ;;  %v227_v34 = vld [vmem:[%s595_s22 + $0x48] sm:$0xff]  ;;  %v328_v39 = vld [vmem:[%s601_s25 + $0x30] sm:$0xff]  ;;  %v329_v40 = vld [vmem:[%s601_s25 + $0x38] sm:$0xff] }
  0x14   : > { %v295_v30 = vadd.f32 %v606_v1, %v259_v21  ;;  %v261_v32 = vmul.f32 %v587_v0, %v225_v23  ;;  %v357_v37 = vadd.f32 %v325_v16, %v293_v26  ;;  %v228_v41 = vld [vmem:[%s595_s22 + $0x50] sm:$0xff]  ;;  %v296_v44 = vadd.f32 %v606_v1, %v260_v31  ;;  %v229_v46 = vld [vmem:[%s595_s22 + $0x58] sm:$0xff]  ;;  %v230_v47 = vld [vmem:[%s595_s22 + $0x60] sm:$0xff] }
  0x15   : > { %v386_v35 = vmax.f32 %v354_v24, 0.0  ;;  %v387_v36 = vmax.f32 %v355_v25, 0.0  ;;  %v358_v38 = vadd.f32 %v326_v20, %v294_v27  ;;  %v388_v42 = vmax.f32 %v356_v29, 0.0  ;;  %v231_v52 = vld [vmem:[%s595_s22 + $0x68] sm:$0xff]  ;;  %v330_v56 = vld [vmem:[%s601_s25 + $0x40] sm:$0xff]  ;;  %v332_v61 = vld [vmem:[%s601_s25 + $0x50] sm:$0xff] }
  0x16   : > { %v359_v43 = vadd.f32 %v327_v28, %v295_v30  ;;  %v297_v45 = vadd.f32 %v606_v1, %v261_v32  ;;  %v389_v48 = vmax.f32 %v357_v37, 0.0  ;;  %v262_v50 = vmul.f32 %v587_v0, %v226_v33  ;;  %v331_v57 = vld [vmem:[%s601_s25 + $0x48] sm:$0xff]  ;;  %v232_v2 = vld [vmem:[%s595_s22 + $0x70] sm:$0xff]  ;;  %v233_v3 = vld [vmem:[%s595_s22 + $0x78] sm:$0xff] }
  0x17   : > { %418 = vst [vmem:[%s637_s30] sm:$0xff] %v386_v35  ;;  %v390_v49 = vmax.f32 %v358_v38, 0.0  ;;  %v263_v51 = vmul.f32 %v587_v0, %v227_v34  ;;  %v360_v54 = vadd.f32 %v328_v39, %v296_v44  ;;  %v264_v58 = vmul.f32 %v587_v0, %v228_v41  ;;  %v333_v7 = vld [vmem:[%s601_s25 + $0x58] sm:$0xff]  ;;  %v334_v8 = vld [vmem:[%s601_s25 + $0x60] sm:$0xff]  ;;  %v335_v14 = vld [vmem:[%s601_s25 + $0x68] sm:$0xff] }
  0x18   : > { %419 = vst [vmem:[%s637_s30 + $0x8] sm:$0xff] %v387_v36  ;;  %v391_v53 = vmax.f32 %v359_v43, 0.0  ;;  %v361_v55 = vadd.f32 %v329_v40, %v297_v45  ;;  %v298_v59 = vadd.f32 %v606_v1, %v262_v50  ;;  %v265_v62 = vmul.f32 %v587_v0, %v229_v46  ;;  %v234_v19 = vld [vmem:[%s595_s22 + $0x80] sm:$0xff]  ;;  %v235_v20 = vld [vmem:[%s595_s22 + $0x88] sm:$0xff]  ;;  %v336_v25 = vld [vmem:[%s601_s25 + $0x70] sm:$0xff] }
  0x19   : > { %420 = vst [vmem:[%s637_s30 + $0x10] sm:$0xff] %v388_v42  ;;  %v299_v60 = vadd.f32 %v606_v1, %v263_v51  ;;  %v266_v63 = vmul.f32 %v587_v0, %v230_v47  ;;  %v392_v4 = vmax.f32 %v360_v54, 0.0  ;;  %v300_v6 = vadd.f32 %v606_v1, %v264_v58  ;;  %v337_v26 = vld [vmem:[%s601_s25 + $0x78] sm:$0xff]  ;;  %v236_v27 = vld [vmem:[%s595_s22 + $0x90] sm:$0xff]  ;;  %v238_v33 = vld [vmem:[%s595_s22 + $0xa0] sm:$0xff] }
  0x1a   : > { %421 = vst [vmem:[%s637_s30 + $0x18] sm:$0xff] %v389_v48  ;;  %v393_v5 = vmax.f32 %v361_v55, 0.0  ;;  %v267_v9 = vmul.f32 %v587_v0, %v231_v52  ;;  %v362_v10 = vadd.f32 %v330_v56, %v298_v59  ;;  %v301_v12 = vadd.f32 %v606_v1, %v265_v62  ;;  %v237_v32 = vld [vmem:[%s595_s22 + $0x98] sm:$0xff]  ;;  %v239_v38 = vld [vmem:[%s595_s22 + $0xa8] sm:$0xff]  ;;  %v338_v42 = vld [vmem:[%s601_s25 + $0x80] sm:$0xff] }
  0x1b   : > { %422 = vst [vmem:[%s637_s30 + $0x20] sm:$0xff] %v390_v49  ;;  %v363_v11 = vadd.f32 %v331_v57, %v299_v60  ;;  %v302_v13 = vadd.f32 %v606_v1, %v266_v63  ;;  %v364_v15 = vadd.f32 %v332_v61, %v300_v6  ;;  %v268_v17 = vmul.f32 %v587_v0, %v232_v2  ;;  %v339_v43 = vld [vmem:[%s601_s25 + $0x88] sm:$0xff]  ;;  %v340_v47 = vld [vmem:[%s601_s25 + $0x90] sm:$0xff]  ;;  %v241_v51 = vld [vmem:[%s595_s22 + $0xb8] sm:$0xff] }
  0x1c   : > { %423 = vst [vmem:[%s637_s30 + $0x28] sm:$0xff] %v391_v53  ;;  %v303_v16 = vadd.f32 %v606_v1, %v267_v9  ;;  %v269_v18 = vmul.f32 %v587_v0, %v233_v3  ;;  %v394_v21 = vmax.f32 %v362_v10, 0.0  ;;  %v365_v23 = vadd.f32 %v333_v7, %v301_v12  ;;  %v240_v50 = vld [vmem:[%s595_s22 + $0xb0] sm:$0xff]  ;;  %v341_v55 = vld [vmem:[%s601_s25 + $0x98] sm:$0xff]  ;;  %v342_v56 = vld [vmem:[%s601_s25 + $0xa0] sm:$0xff] }
  0x1d   : > { %424 = vst [vmem:[%s637_s30 + $0x30] sm:$0xff] %v392_v4  ;;  %v395_v22 = vmax.f32 %v363_v11, 0.0  ;;  %v366_v24 = vadd.f32 %v334_v8, %v302_v13  ;;  %v396_v28 = vmax.f32 %v364_v15, 0.0  ;;  %v304_v30 = vadd.f32 %v606_v1, %v268_v17  ;;  %v343_v62 = vld [vmem:[%s601_s25 + $0xa8] sm:$0xff]  ;;  %v344_v11 = vld [vmem:[%s601_s25 + $0xb0] sm:$0xff]  ;;  %v345_v12 = vld [vmem:[%s601_s25 + $0xb8] sm:$0xff] }
  0x1e   : > { %425 = vst [vmem:[%s637_s30 + $0x38] sm:$0xff] %v393_v5  ;;  %v367_v29 = vadd.f32 %v335_v14, %v303_v16  ;;  %v305_v31 = vadd.f32 %v606_v1, %v269_v18  ;;  %v397_v34 = vmax.f32 %v365_v23, 0.0  ;;  %v270_v36 = vmul.f32 %v587_v0, %v234_v19  ;;  %v242_v5 = vld [vmem:[%s595_s22 + $0xc0] sm:$0xff]  ;;  %v243_v6 = vld [vmem:[%s595_s22 + $0xc8] sm:$0xff]  ;;  %v244_v13 = vld [vmem:[%s595_s22 + $0xd0] sm:$0xff] }
  0x1f   : > { %426 = vst [vmem:[%s637_s30 + $0x40] sm:$0xff] %v394_v21  ;;  %v398_v35 = vmax.f32 %v366_v24, 0.0  ;;  %v271_v37 = vmul.f32 %v587_v0, %v235_v20  ;;  %v368_v40 = vadd.f32 %v336_v25, %v304_v30  ;;  %v272_v44 = vmul.f32 %v587_v0, %v236_v27  ;;  %v245_v18 = vld [vmem:[%s595_s22 + $0xd8] sm:$0xff]  ;;  %v246_v19 = vld [vmem:[%s595_s22 + $0xe0] sm:$0xff]  ;;  %v247_v24 = vld [vmem:[%s595_s22 + $0xe8] sm:$0xff] }
  0x20   : > { %427 = vst [vmem:[%s637_s30 + $0x48] sm:$0xff] %v395_v22  ;;  %v399_v39 = vmax.f32 %v367_v29, 0.0  ;;  %v369_v41 = vadd.f32 %v337_v26, %v305_v31  ;;  %v306_v45 = vadd.f32 %v606_v1, %v270_v36  ;;  %v273_v48 = vmul.f32 %v587_v0, %v237_v32  ;;  %v347_v29 = vld [vmem:[%s601_s25 + $0xc8] sm:$0xff]  ;;  %v248_v36 = vld [vmem:[%s595_s22 + $0xf0] sm:$0xff] }
  0x21   : > { %428 = vst [vmem:[%s637_s30 + $0x50] sm:$0xff] %v396_v28  ;;  %v307_v46 = vadd.f32 %v606_v1, %v271_v37  ;;  %v274_v49 = vmul.f32 %v587_v0, %v238_v33  ;;  %v400_v52 = vmax.f32 %v368_v40, 0.0  ;;  %v308_v54 = vadd.f32 %v606_v1, %v272_v44  ;;  %v346_v28 = vld [vmem:[%s601_s25 + $0xc0] sm:$0xff]  ;;  %v348_v33 = vld [vmem:[%s601_s25 + $0xd0] sm:$0xff]  ;;  %v249_v37 = vld [vmem:[%s595_s22 + $0xf8] sm:$0xff] }
  0x22   : > { %429 = vst [vmem:[%s637_s30 + $0x58] sm:$0xff] %v397_v34  ;;  %v401_v53 = vmax.f32 %v369_v41, 0.0  ;;  %v275_v57 = vmul.f32 %v587_v0, %v239_v38  ;;  %v370_v58 = vadd.f32 %v338_v42, %v306_v45  ;;  %v309_v60 = vadd.f32 %v606_v1, %v273_v48  ;;  %v349_v41 = vld [vmem:[%s601_s25 + $0xd8] sm:$0xff]  ;;  %v350_v42 = vld [vmem:[%s601_s25 + $0xe0] sm:$0xff]  ;;  %v351_v48 = vld [vmem:[%s601_s25 + $0xe8] sm:$0xff] }
  0x23   : > { %430 = vst [vmem:[%s637_s30 + $0x60] sm:$0xff] %v398_v35  ;;  %v371_v59 = vadd.f32 %v339_v43, %v307_v46  ;;  %v310_v61 = vadd.f32 %v606_v1, %v274_v49  ;;  %v372_v63 = vadd.f32 %v340_v47, %v308_v54  ;;  %v276_v3 = vmul.f32 %v587_v0, %v240_v50 }
  0x24   : > { %431 = vst [vmem:[%s637_s30 + $0x68] sm:$0xff] %v399_v39  ;;  %v311_v2 = vadd.f32 %v606_v1, %v275_v57  ;;  %v277_v4 = vmul.f32 %v587_v0, %v241_v51  ;;  %v402_v7 = vmax.f32 %v370_v58, 0.0  ;;  %v373_v9 = vadd.f32 %v341_v55, %v309_v60  ;;  %v352_v57 = vld [vmem:[%s601_s25 + $0xf0] sm:$0xff]  ;;  %v353_v58 = vld [vmem:[%s601_s25 + $0xf8] sm:$0xff] }
  0x25   : > { %432 = vst [vmem:[%s637_s30 + $0x70] sm:$0xff] %v400_v52  ;;  %v403_v8 = vmax.f32 %v371_v59, 0.0  ;;  %v374_v10 = vadd.f32 %v342_v56, %v310_v61  ;;  %v404_v14 = vmax.f32 %v372_v63, 0.0  ;;  %v312_v16 = vadd.f32 %v606_v1, %v276_v3 }
  0x26   : > { %433 = vst [vmem:[%s637_s30 + $0x78] sm:$0xff] %v401_v53  ;;  %v375_v15 = vadd.f32 %v343_v62, %v311_v2  ;;  %v313_v17 = vadd.f32 %v606_v1, %v277_v4  ;;  %v405_v20 = vmax.f32 %v373_v9, 0.0  ;;  %v278_v22 = vmul.f32 %v587_v0, %v242_v5 }
  0x27   : > { %434 = vst [vmem:[%s637_s30 + $0x80] sm:$0xff] %v402_v7  ;;  %v406_v21 = vmax.f32 %v374_v10, 0.0  ;;  %v279_v23 = vmul.f32 %v587_v0, %v243_v6  ;;  %v376_v26 = vadd.f32 %v344_v11, %v312_v16  ;;  %v280_v30 = vmul.f32 %v587_v0, %v244_v13 }
  0x28   : > { %435 = vst [vmem:[%s637_s30 + $0x88] sm:$0xff] %v403_v8  ;;  %v407_v25 = vmax.f32 %v375_v15, 0.0  ;;  %v377_v27 = vadd.f32 %v345_v12, %v313_v17  ;;  %v314_v31 = vadd.f32 %v606_v1, %v278_v22  ;;  %v281_v34 = vmul.f32 %v587_v0, %v245_v18 }
  0x29   : > { %436 = vst [vmem:[%s637_s30 + $0x90] sm:$0xff] %v404_v14  ;;  %v315_v32 = vadd.f32 %v606_v1, %v279_v23  ;;  %v282_v35 = vmul.f32 %v587_v0, %v246_v19  ;;  %v408_v38 = vmax.f32 %v376_v26, 0.0  ;;  %v316_v40 = vadd.f32 %v606_v1, %v280_v30 }
  0x2a   : > { %437 = vst [vmem:[%s637_s30 + $0x98] sm:$0xff] %v405_v20  ;;  %v409_v39 = vmax.f32 %v377_v27, 0.0  ;;  %v283_v43 = vmul.f32 %v587_v0, %v247_v24  ;;  %v378_v44 = vadd.f32 %v346_v28, %v314_v31  ;;  %v317_v46 = vadd.f32 %v606_v1, %v281_v34 }
  0x2b   : > { %438 = vst [vmem:[%s637_s30 + $0xa0] sm:$0xff] %v406_v21  ;;  %v379_v45 = vadd.f32 %v347_v29, %v315_v32  ;;  %v318_v47 = vadd.f32 %v606_v1, %v282_v35  ;;  %v380_v49 = vadd.f32 %v348_v33, %v316_v40  ;;  %v284_v51 = vmul.f32 %v587_v0, %v248_v36 }
  0x2c   : > { %439 = vst [vmem:[%s637_s30 + $0xa8] sm:$0xff] %v407_v25  ;;  %v319_v50 = vadd.f32 %v606_v1, %v283_v43  ;;  %v285_v52 = vmul.f32 %v587_v0, %v249_v37  ;;  %v410_v53 = vmax.f32 %v378_v44, 0.0  ;;  %v381_v55 = vadd.f32 %v349_v41, %v317_v46 }
  0x2d   : > { %440 = vst [vmem:[%s637_s30 + $0xb0] sm:$0xff] %v408_v38  ;;  %v411_v54 = vmax.f32 %v379_v45, 0.0  ;;  %v382_v56 = vadd.f32 %v350_v42, %v318_v47  ;;  %v412_v59 = vmax.f32 %v380_v49, 0.0  ;;  %v320_v61 = vadd.f32 %v606_v1, %v284_v51 }
  0x2e   : > { %441 = vst [vmem:[%s637_s30 + $0xb8] sm:$0xff] %v409_v39  ;;  %v383_v60 = vadd.f32 %v351_v48, %v319_v50  ;;  %v321_v0 = vadd.f32 %v606_v1, %v285_v52  ;;  %v413_v62 = vmax.f32 %v381_v55, 0.0 }
  0x2f   : > { %442 = vst [vmem:[%s637_s30 + $0xc0] sm:$0xff] %v410_v53  ;;  %v414_v63 = vmax.f32 %v382_v56, 0.0  ;;  %v384_v3 = vadd.f32 %v352_v57, %v320_v61 }
  0x30   : > { %443 = vst [vmem:[%s637_s30 + $0xc8] sm:$0xff] %v411_v54  ;;  %v415_v2 = vmax.f32 %v383_v60, 0.0  ;;  %v385_v4 = vadd.f32 %v353_v58, %v321_v0 }
  0x31   : > { %444 = vst [vmem:[%s637_s30 + $0xd0] sm:$0xff] %v412_v59  ;;  %v416_v5 = vmax.f32 %v384_v3, 0.0 }
  0x32   : > { %445 = vst [vmem:[%s637_s30 + $0xd8] sm:$0xff] %v413_v62  ;;  %v417_v6 = vmax.f32 %v385_v4, 0.0 }
  0x33   : > { %446 = vst [vmem:[%s637_s30 + $0xe0] sm:$0xff] %v414_v63 }
  0x34   : > { %447 = vst [vmem:[%s637_s30 + $0xe8] sm:$0xff] %v415_v2 }
  0x35   : > { %448 = vst [vmem:[%s637_s30 + $0xf0] sm:$0xff] %v416_v5 }
  0x36   : > { %449 = vst [vmem:[%s637_s30 + $0xf8] sm:$0xff] %v417_v6 }
  0x37 PF: > { %s14_s15 = sadd.s32 1, %s549_s15  }
  0x38   : > { %p11_p4 = scmp.ge.s32.totalorder %s14_s15, 4  }
  0x3a   :  { %13 = sbr.rel (!%p11_p4) target bundleno = 1 (0x1), region = 69 }

// kernel: residual_block.3
= control target key start
LH: loop header
LB: loop body
LE: loop exit
PB: predicated region body
PF: predicated region fallthrough
CT: control target
= control target key end

     0   :  { %s2208_s24 = smov 0   ;;  %s3557_s0 = inlined_call_operand.vmem [shape: f32[2,18,18,128], index: 0, kind: input, shape index: {}]   ;;  %s3558_s1 = inlined_call_operand.vmem [shape: f32[1,128], index: 1, kind: input, shape index: {}]   ;;  %s3559_s2 = inlined_call_operand.vmem [shape: f32[1,128], index: 2, kind: input, shape index: {}]   ;;  %s3560_s3 = inlined_call_operand.vmem [shape: f32[18,18,1], index: 3, kind: input, shape index: {}]   ;;  %s3561_s4 = inlined_call_operand.vmem [shape: f32[1152,128], index: 4, kind: input, shape index: {}]   ;;  %s3562_s5 = inlined_call_operand.vmem [shape: f32[2,16,16,128], index: 5, kind: output, shape index: {0}]   ;;  %s3563_s6 = inlined_call_operand.vmem [shape: f32[2,1,128], index: 6, kind: output, shape index: {1}]   ;;  %s3564_s7 = inlined_call_operand.vmem [shape: f32[2,1,128], index: 7, kind: output, shape index: {2}]  }
   0x1 LB: > { %s2064_s1 = sadd.s32 4294967295, %s2166_s24   ;;  %p2068_p0 = scmp.ge.s32.totalorder %s2166_s24, 1  ;;  %s2166_s24 = sphi %s2208_s24, %s18_s24  }
   0x2   : > { %p242_p1 = scmp.lt.s32.totalorder %s2166_s24, 3 }
   0x4   : > { %p243_p2 = pnand %p2068_p0, %p242_p1 }
   0x6   : > { %246 = sbr.rel (%p243_p2) target bundleno = 766 (0x2fe), region = 40 }
   0xb   : > { %v673_v0 = vld [vmem:[%s3561_s4 + $0x78] sm:$0xff]  ;;  %v672_v1 = vld [vmem:[%s3561_s4 + $0x70] sm:$0xff]  ;;  %v671_v2 = vld [vmem:[%s3561_s4 + $0x68] sm:$0xff]  ;;  %p280_p3 = scmp.lt.s32.totalorder %s2064_s1, 1  ;;  %vm404_vm0 = vcmask 1046528   ;;  %vm531_vm1 = vcmask 1045504  }
   0xc   : > { %2075 = vmatpush.msra.mxu1 %v673_v0  ;;  %2076 = vmatpush.msra.mxu2 %v673_v0  ;;  %v670_v3 = vld [vmem:[%s3561_s4 + $0x60] sm:$0xff]  ;;  %v669_v4 = vld [vmem:[%s3561_s4 + $0x58] sm:$0xff]  ;;  %v668_v5 = vld [vmem:[%s3561_s4 + $0x50] sm:$0xff] }
   0xd   : > { %2077 = vmatpush.msra.mxu3 %v673_v0  ;;  %802 = vmatpush.msra.mxu0 %v673_v0  ;;  %v667_v6 = vld [vmem:[%s3561_s4 + $0x48] sm:$0xff]  ;;  %v666_v7 = vld [vmem:[%s3561_s4 + $0x40] sm:$0xff]  ;;  %v665_v8 = vld [vmem:[%s3561_s4 + $0x38] sm:$0xff]  ;;  %s3710_s1 = smov (!%p280_p3, %s2064_s1), 1 }
   0xe   : > { %2078 = vmatpush.msra.mxu1 %v672_v1  ;;  %2079 = vmatpush.msra.mxu2 %v672_v1  ;;  %v664_v9 = vld [vmem:[%s3561_s4 + $0x30] sm:$0xff]  ;;  %v663_v10 = vld [vmem:[%s3561_s4 + $0x28] sm:$0xff]  ;;  %v662_v11 = vld [vmem:[%s3561_s4 + $0x20] sm:$0xff]  ;;  %s2123_s25 = smul.u32 432, %s3710_s1  ;;  %s2074_s15 = sshll.u32 %s3710_s1, 8 }
   0xf   : > { %2080 = vmatpush.msra.mxu3 %v672_v1  ;;  %803 = vmatpush.msra.mxu0 %v672_v1  ;;  %v661_v12 = vld [vmem:[%s3561_s4 + $0x18] sm:$0xff]  ;;  %v660_v13 = vld [vmem:[%s3561_s4 + $0x10] sm:$0xff]  ;;  %v659_v14 = vld [vmem:[%s3561_s4 + $0x8] sm:$0xff]  ;;  %s3419_s18 = scalar_lea.vmem %s3562_s5, %s2074_s15  ;;  %s292_s20 = scalar_lea.vmem %s3563_s6, %s3710_s1 }
  0x10   : > { %2081 = vmatpush.msra.mxu1 %v671_v2  ;;  %2082 = vmatpush.msra.mxu2 %v671_v2  ;;  %s2271_s9 = scalar_lea.vmem %s3557_s0, %s2123_s25  ;;  %v658_v15 = vld [vmem:[%s3561_s4] sm:$0xff]  ;;  %v705_v18 = vld [vmem:[%s3561_s4 + $0x178] sm:$0xff]  ;;  %v704_v22 = vld [vmem:[%s3561_s4 + $0x170] sm:$0xff]  ;;  %s295_s23 = scalar_lea.vmem %s3564_s7, %s3710_s1 }
  0x11   : > { %2083 = vmatpush.msra.mxu3 %v671_v2  ;;  %804 = vmatpush.msra.mxu0 %v671_v2  ;;  %v2277_v16 = vld [vmem:[%s2271_s9 + $0x60] sm:$0xff]  ;;  %v689_v20 = vld [vmem:[%s3561_s4 + $0xf8] sm:$0xff]  ;;  %v688_v23 = vld [vmem:[%s3561_s4 + $0xf0] sm:$0xff] }
  0x12   : > { %2084 = vmatpush.msra.mxu1 %v670_v3  ;;  %2085 = vmatpush.msra.mxu2 %v670_v3  ;;  %v2280_v17 = vld [vmem:[%s2271_s9 + $0xc0] sm:$0xff]  ;;  %v721_v21 = vld [vmem:[%s3561_s4 + $0x1f8] sm:$0xff]  ;;  %v720_v24 = vld [vmem:[%s3561_s4 + $0x1f0] sm:$0xff] }
  0x13   : > { %2086 = vmatpush.msra.mxu3 %v670_v3  ;;  %805 = vmatpush.msra.mxu0 %v670_v3  ;;  %v332_v19 = vld [vmem:[%s2271_s9 + $0x120] sm:$0xff]  ;;  %v703_v25 = vld [vmem:[%s3561_s4 + $0x168] sm:$0xff]  ;;  %v737_v29 = vld [vmem:[%s3561_s4 + $0x278] sm:$0xff] }
  0x14   : > { %2087 = vmatpush.msra.mxu1 %v669_v4  ;;  %2088 = vmatpush.msra.mxu2 %v669_v4  ;;  %v2307_v26 = vld [vmem:[%s2271_s9] sm:$0xff]  ;;  %v687_v27 = vld [vmem:[%s3561_s4 + $0xe8] sm:$0xff]  ;;  %v736_v35 = vld [vmem:[%s3561_s4 + $0x270] sm:$0xff] }
  0x15   : > { %2089 = vmatpush.msra.mxu3 %v669_v4  ;;  %806 = vmatpush.msra.mxu0 %v669_v4  ;;  %v719_v28 = vld [vmem:[%s3561_s4 + $0x1e8] sm:$0xff]  ;;  %v702_v32 = vld [vmem:[%s3561_s4 + $0x160] sm:$0xff]  ;;  %v701_v37 = vld [vmem:[%s3561_s4 + $0x158] sm:$0xff] }
  0x16   : > { %2090 = vmatpush.msra.mxu1 %v668_v5  ;;  %2091 = vmatpush.msra.mxu2 %v668_v5  ;;  %v2319_v30 = vld [vmem:[%s2271_s9 + $0x68] sm:$0xff]  ;;  %v718_v33 = vld [vmem:[%s3561_s4 + $0x1e0] sm:$0xff]  ;;  %v717_v38 = vld [vmem:[%s3561_s4 + $0x1d8] sm:$0xff] }
  0x17   : > { %2092 = vmatpush.msra.mxu3 %v668_v5  ;;  %807 = vmatpush.msra.mxu0 %v668_v5  ;;  %v2322_v31 = vld [vmem:[%s2271_s9 + $0xc8] sm:$0xff]  ;;  %v686_v36 = vld [vmem:[%s3561_s4 + $0xe0] sm:$0xff]  ;;  %v685_v40 = vld [vmem:[%s3561_s4 + $0xd8] sm:$0xff] }
  0x18   : > { %2093 = vmatpush.msra.mxu1 %v667_v6  ;;  %2094 = vmatpush.msra.mxu2 %v667_v6  ;;  %v333_v34 = vld [vmem:[%s2271_s9 + $0x128] sm:$0xff]  ;;  %v700_v41 = vld [vmem:[%s3561_s4 + $0x150] sm:$0xff]  ;;  %v734_v44 = vld [vmem:[%s3561_s4 + $0x260] sm:$0xff] }
  0x19   : > { %2095 = vmatpush.msra.mxu3 %v667_v6  ;;  %808 = vmatpush.msra.mxu0 %v667_v6  ;;  %v735_v39 = vld [vmem:[%s3561_s4 + $0x268] sm:$0xff]  ;;  %v716_v43 = vld [vmem:[%s3561_s4 + $0x1d0] sm:$0xff]  ;;  %v2368_v46 = vld [vmem:[%s2271_s9 + $0x78] sm:$0xff] }
  0x1a   : > { %2096 = vmatpush.msra.mxu1 %v666_v7  ;;  %2097 = vmatpush.msra.mxu2 %v666_v7  ;;  %v2356_v42 = vld [vmem:[%s2271_s9 + $0x8] sm:$0xff]  ;;  %v684_v45 = vld [vmem:[%s3561_s4 + $0xd0] sm:$0xff]  ;;  %v2371_v47 = vld [vmem:[%s2271_s9 + $0xd8] sm:$0xff] }
  0x1b   : > { %2098 = vmatpush.msra.mxu3 %v666_v7  ;;  %809 = vmatpush.msra.mxu0 %v666_v7  ;;  %v699_v48 = vld [vmem:[%s3561_s4 + $0x148] sm:$0xff]  ;;  %v335_v50 = vld [vmem:[%s2271_s9 + $0x138] sm:$0xff]  ;;  %v698_v53 = vld [vmem:[%s3561_s4 + $0x140] sm:$0xff] }
  0x1c   : > { %2099 = vmatpush.msra.mxu1 %v665_v8  ;;  %2100 = vmatpush.msra.mxu2 %v665_v8  ;;  %v715_v49 = vld [vmem:[%s3561_s4 + $0x1c8] sm:$0xff]  ;;  %v733_v51 = vld [vmem:[%s3561_s4 + $0x258] sm:$0xff]  ;;  %v714_v54 = vld [vmem:[%s3561_s4 + $0x1c0] sm:$0xff] }
  0x1d   : > { %2101 = vmatpush.msra.mxu3 %v665_v8  ;;  %810 = vmatpush.msra.mxu0 %v665_v8  ;;  %v683_v52 = vld [vmem:[%s3561_s4 + $0xc8] sm:$0xff]  ;;  %v732_v55 = vld [vmem:[%s3561_s4 + $0x250] sm:$0xff]  ;;  %v682_v56 = vld [vmem:[%s3561_s4 + $0xc0] sm:$0xff] }
  0x1e   : > { %2102 = vmatpush.msra.mxu1 %v664_v9  ;;  %2103 = vmatpush.msra.mxu2 %v664_v9  ;;  %v697_v57 = vld [vmem:[%s3561_s4 + $0x138] sm:$0xff]  ;;  %v731_v60 = vld [vmem:[%s3561_s4 + $0x248] sm:$0xff]  ;;  %v2417_v62 = vld [vmem:[%s2271_s9 + $0x80] sm:$0xff] }
  0x1f   : > { %2104 = vmatpush.msra.mxu3 %v664_v9  ;;  %811 = vmatpush.msra.mxu0 %v664_v9  ;;  %v2405_v58 = vld [vmem:[%s2271_s9 + $0x18] sm:$0xff]  ;;  %v2420_v63 = vld [vmem:[%s2271_s9 + $0xe0] sm:$0xff]  ;;  %v696_v0 = vld [vmem:[%s3561_s4 + $0x130] sm:$0xff] }
  0x20   : > { %2105 = vmatpush.msra.mxu1 %v663_v10  ;;  %2106 = vmatpush.msra.mxu2 %v663_v10  ;;  %v713_v59 = vld [vmem:[%s3561_s4 + $0x1b8] sm:$0xff]  ;;  %v712_v1 = vld [vmem:[%s3561_s4 + $0x1b0] sm:$0xff]  ;;  %v336_v2 = vld [vmem:[%s2271_s9 + $0x140] sm:$0xff] }
  0x21   : > { %2107 = vmatpush.msra.mxu3 %v663_v10  ;;  %812 = vmatpush.msra.mxu0 %v663_v10  ;;  %v681_v61 = vld [vmem:[%s3561_s4 + $0xb8] sm:$0xff]  ;;  %v730_v3 = vld [vmem:[%s3561_s4 + $0x240] sm:$0xff]  ;;  %v680_v4 = vld [vmem:[%s3561_s4 + $0xb0] sm:$0xff] }
  0x22   : > { %2108 = vmatpush.msra.mxu1 %v662_v11  ;;  %2109 = vmatpush.msra.mxu2 %v662_v11  ;;  %v695_v5 = vld [vmem:[%s3561_s4 + $0x128] sm:$0xff]  ;;  %v729_v7 = vld [vmem:[%s3561_s4 + $0x238] sm:$0xff]  ;;  %v694_v9 = vld [vmem:[%s3561_s4 + $0x120] sm:$0xff] }
  0x23   : > { %2110 = vmatpush.msra.mxu3 %v662_v11  ;;  %813 = vmatpush.msra.mxu0 %v662_v11  ;;  %v711_v6 = vld [vmem:[%s3561_s4 + $0x1a8] sm:$0xff]  ;;  %v2454_v10 = vld [vmem:[%s2271_s9 + $0x20] sm:$0xff] }
  0x24   : > { %2111 = vmatpush.msra.mxu1 %v661_v12  ;;  %2112 = vmatpush.msra.mxu2 %v661_v12  ;;  %v679_v8 = vld [vmem:[%s3561_s4 + $0xa8] sm:$0xff]  ;;  %v710_v11 = vld [vmem:[%s3561_s4 + $0x1a0] sm:$0xff] }
  0x25   : > { %2113 = vmatpush.msra.mxu3 %v661_v12  ;;  %814 = vmatpush.msra.mxu0 %v661_v12  ;;  %v728_v12 = vld [vmem:[%s3561_s4 + $0x230] sm:$0xff] }
  0x26   : > { %2114 = vmatpush.msra.mxu1 %v660_v13  ;;  %2115 = vmatpush.msra.mxu2 %v660_v13 }
  0x27   : > { %2116 = vmatpush.msra.mxu3 %v660_v13  ;;  %815 = vmatpush.msra.mxu0 %v660_v13  ;;  %v678_v13 = vld [vmem:[%s3561_s4 + $0xa0] sm:$0xff] }
  0x28   : > { %2117 = vmatpush.msra.mxu1 %v659_v14  ;;  %2118 = vmatpush.msra.mxu2 %v659_v14 }
  0x29   : > { %2119 = vmatpush.msra.mxu3 %v659_v14  ;;  %816 = vmatpush.msra.mxu0 %v659_v14  ;;  %v2466_v14 = vld [vmem:[%s2271_s9 + $0x90] sm:$0xff] }
  0x2a   : > { %2120 = vmatpush.msra.mxu1 %v658_v15  ;;  %2121 = vmatpush.msra.mxu2 %v658_v15 }
  0x2b   : > { %842 = vmatmul.f32.vlgmr.msra.gmra.mxu1 %v2277_v16  ;;  %866 = vmatmul.f32.vlgmr.msra.gmra.mxu2 %v2280_v17 }
  0x2c   : > { %1028 = vmatpush.msrb.mxu2 %v705_v18  ;;  %2122 = vmatpush.msra.mxu3 %v658_v15  ;;  %v693_v18 = vld [vmem:[%s3561_s4 + $0x118] sm:$0xff] }
  0x2d   : > { %890 = vmatmul.f32.vlgmr.msra.gmra.mxu3 %v332_v19  ;;  %915 = vmatpush.msrb.mxu1 %v689_v20  ;;  %v709_v19 = vld [vmem:[%s3561_s4 + $0x198] sm:$0xff]  ;;  %v338_v20 = vld [vmem:[%s2271_s9 + $0x150] sm:$0xff] }
  0x2e   : > { %1141 = vmatpush.msrb.mxu3 %v721_v21  ;;  %1029 = vmatpush.msrb.mxu2 %v704_v22  ;;  %v727_v21 = vld [vmem:[%s3561_s4 + $0x228] sm:$0xff]  ;;  %v677_v22 = vld [vmem:[%s3561_s4 + $0x98] sm:$0xff] }
  0x2f   : > { %916 = vmatpush.msrb.mxu1 %v688_v23  ;;  %817 = vmatpush.msra.mxu0 %v658_v15  ;;  %v2469_v15 = vld [vmem:[%s2271_s9 + $0xf0] sm:$0xff] }
  0x30   : > { %1142 = vmatpush.msrb.mxu3 %v720_v24  ;;  %1030 = vmatpush.msrb.mxu2 %v703_v25  ;;  %v692_v23 = vld [vmem:[%s3561_s4 + $0x110] sm:$0xff]  ;;  %v726_v25 = vld [vmem:[%s3561_s4 + $0x220] sm:$0xff] }
  0x31   : > { %818 = vmatmul.f32.vlgmr.msra.gmra.mxu0 %v2307_v26  ;;  %917 = vmatpush.msrb.mxu1 %v687_v27  ;;  %v708_v24 = vld [vmem:[%s3561_s4 + $0x190] sm:$0xff] }
  0x32   : > { %1143 = vmatpush.msrb.mxu3 %v719_v28  ;;  %1254 = vmatpush.msrb.mxu0 %v737_v29  ;;  %v676_v27 = vld [vmem:[%s3561_s4 + $0x90] sm:$0xff]  ;;  %v691_v28 = vld [vmem:[%s3561_s4 + $0x108] sm:$0xff] }
  0x33   : > { %845 = vmatmul.f32.gmra.mxu1 %v2319_v30  ;;  %869 = vmatmul.f32.gmra.mxu2 %v2322_v31  ;;  %v2503_v29 = vld [vmem:[%s2271_s9 + $0x30] sm:$0xff] }
  0x34   : > { %1031 = vmatpush.msrb.mxu2 %v702_v32  ;;  %1144 = vmatpush.msrb.mxu3 %v718_v33  ;;  %v707_v32 = vld [vmem:[%s3561_s4 + $0x188] sm:$0xff]  ;;  %v725_v33 = vld [vmem:[%s3561_s4 + $0x218] sm:$0xff] }
  0x35   : > { %893 = vmatmul.f32.gmra.mxu3 %v333_v34  ;;  %1255 = vmatpush.msrb.mxu0 %v736_v35  ;;  %v675_v34 = vld [vmem:[%s3561_s4 + $0x88] sm:$0xff]  ;;  %v2515_v35 = vld [vmem:[%s2271_s9 + $0x98] sm:$0xff] }
  0x36   : > { %918 = vmatpush.msrb.mxu1 %v686_v36  ;;  %1032 = vmatpush.msrb.mxu2 %v701_v37  ;;  %v2518_v36 = vld [vmem:[%s2271_s9 + $0xf8] sm:$0xff]  ;;  %v690_v37 = vld [vmem:[%s3561_s4 + $0x100] sm:$0xff] }
  0x37   : > { %1145 = vmatpush.msrb.mxu3 %v717_v38  ;;  %1256 = vmatpush.msrb.mxu0 %v735_v39  ;;  %v706_v38 = vld [vmem:[%s3561_s4 + $0x180] sm:$0xff]  ;;  %v339_v39 = vld [vmem:[%s2271_s9 + $0x158] sm:$0xff] }
  0x38   : > { %919 = vmatpush.msrb.mxu1 %v685_v40  ;;  %1033 = vmatpush.msrb.mxu2 %v700_v41  ;;  %v724_v40 = vld [vmem:[%s3561_s4 + $0x210] sm:$0xff]  ;;  %v674_v41 = vld [vmem:[%s3561_s4 + $0x80] sm:$0xff] }
  0x39   : > { %821 = vmatmul.f32.gmra.mxu0 %v2356_v42  ;;  %1146 = vmatpush.msrb.mxu3 %v716_v43  ;;  %v769_v43 = vld [vmem:[%s3561_s4 + $0x378] sm:$0xff] }
  0x3a   : > { %1257 = vmatpush.msrb.mxu0 %v734_v44  ;;  %920 = vmatpush.msrb.mxu1 %v684_v45  ;;  %v723_v44 = vld [vmem:[%s3561_s4 + $0x208] sm:$0xff]  ;;  %v785_v45 = vld [vmem:[%s3561_s4 + $0x3f8] sm:$0xff] }
  0x3b   : > { %848 = vmatmul.f32.gmra.mxu1 %v2368_v46  ;;  %872 = vmatmul.f32.gmra.mxu2 %v2371_v47 }
  0x3c   : > { %1034 = vmatpush.msrb.mxu2 %v699_v48  ;;  %1147 = vmatpush.msrb.mxu3 %v715_v49  ;;  %v753_v48 = vld [vmem:[%s3561_s4 + $0x2f8] sm:$0xff] }
  0x3d   : > { %896 = vmatmul.f32.gmra.mxu3 %v335_v50  ;;  %1258 = vmatpush.msrb.mxu0 %v733_v51  ;;  %v2549_v49 = vld [vmem:[%s2271_s9 + $0x38] sm:$0xff]  ;;  %v722_v50 = vld [vmem:[%s3561_s4 + $0x200] sm:$0xff]  ;;  %v2555_v51 = vld [vmem:[%s2271_s9 + $0xa8] sm:$0xff] }
  0x3e   : > { %921 = vmatpush.msrb.mxu1 %v683_v52  ;;  %1035 = vmatpush.msrb.mxu2 %v698_v53  ;;  %v2558_v52 = vld [vmem:[%s2271_s9 + $0x108] sm:$0xff]  ;;  %v801_v53 = vld [vmem:[%s3561_s4 + $0x478] sm:$0xff] }
  0x3f   : > { %1148 = vmatpush.msrb.mxu3 %v714_v54  ;;  %1259 = vmatpush.msrb.mxu0 %v732_v55  ;;  %v341_v54 = vld [vmem:[%s2271_s9 + $0x168] sm:$0xff]  ;;  %v768_v55 = vld [vmem:[%s3561_s4 + $0x370] sm:$0xff] }
  0x40   : > { %922 = vmatpush.msrb.mxu1 %v682_v56  ;;  %1036 = vmatpush.msrb.mxu2 %v697_v57  ;;  %v784_v56 = vld [vmem:[%s3561_s4 + $0x3f0] sm:$0xff] }
  0x41   : > { %824 = vmatmul.f32.gmra.mxu0 %v2405_v58  ;;  %1149 = vmatpush.msrb.mxu3 %v713_v59  ;;  %v752_v57 = vld [vmem:[%s3561_s4 + $0x2f0] sm:$0xff]  ;;  %v2577_v59 = vld [vmem:[%s2271_s9 + $0x48] sm:$0xff] }
  0x42   : > { %1260 = vmatpush.msrb.mxu0 %v731_v60  ;;  %923 = vmatpush.msrb.mxu1 %v681_v61  ;;  %v2580_v60 = vld [vmem:[%s2271_s9 + $0xb0] sm:$0xff] }
  0x43   : > { %851 = vmatmul.f32.gmra.mxu1 %v2417_v62  ;;  %875 = vmatmul.f32.gmra.mxu2 %v2420_v63  ;;  %v2583_v61 = vld [vmem:[%s2271_s9 + $0x110] sm:$0xff] }
  0x44   : > { %1037 = vmatpush.msrb.mxu2 %v696_v0  ;;  %1150 = vmatpush.msrb.mxu3 %v712_v1  ;;  %v342_v0 = vld [vmem:[%s2271_s9 + $0x170] sm:$0xff]  ;;  %v405_v1 = vrot.slane %v2307_v26, 1 }
  0x45   : > { %899 = vmatmul.f32.gmra.mxu3 %v336_v2  ;;  %1261 = vmatpush.msrb.mxu0 %v730_v3  ;;  %v532_v2 = vrot.slane %v2307_v26, 2  ;;  %v406_v3 = vrot.slane %v2356_v42, 1  ;;  %v298_v26 = vld [vmem:[%s2271_s9 + $0x10] sm:$0x3] }
  0x46   : > { %924 = vmatpush.msrb.mxu1 %v680_v4  ;;  %1038 = vmatpush.msrb.mxu2 %v695_v5  ;;  %v533_v4 = vrot.slane %v2356_v42, 2  ;;  %v800_v5 = vld [vmem:[%s3561_s4 + $0x470] sm:$0xff]  ;;  %v410_v42 = vrot.slane %v2405_v58, 1 }
  0x47   : > { %1151 = vmatpush.msrb.mxu3 %v711_v6  ;;  %1262 = vmatpush.msrb.mxu0 %v729_v7  ;;  %v2597_v6 = vld [vmem:[%s2271_s9 + $0x50] sm:$0xff]  ;;  %v407_v7 = vsel %vm404_vm0, %v405_v1, %v406_v3  ;;  %v749_v1 = vld [vmem:[%s3561_s4 + $0x2d8] sm:$0xff] }
  0x48   : > { %925 = vmatpush.msrb.mxu1 %v679_v8  ;;  %1039 = vmatpush.msrb.mxu2 %v694_v9  ;;  %v534_v8 = vsel %vm531_vm1, %v532_v2, %v533_v4  ;;  %v411_v9 = vrot.slane %v2454_v10, 1  ;;  %v307_v2 = vld [vmem:[%s2271_s9 + $0x58] sm:$0x3] }
  0x49   : > { %827 = vmatmul.f32.gmra.mxu0 %v2454_v10  ;;  %1152 = vmatpush.msrb.mxu3 %v710_v11  ;;  %v767_v11 = vld [vmem:[%s3561_s4 + $0x368] sm:$0xff] }
  0x4a   : > { %1263 = vmatpush.msrb.mxu0 %v728_v12  ;;  %926 = vmatpush.msrb.mxu1 %v678_v13  ;;  %v408_v12 = vrot.slane %v298_v26, 1  ;;  %v535_v13 = vrot.slane %v298_v26, 2 }
  0x4b   : > { %854 = vmatmul.f32.gmra.mxu1 %v2466_v14  ;;  %878 = vmatmul.f32.gmra.mxu2 %v2469_v15 }
  0x4c   : > { %1040 = vmatpush.msrb.mxu2 %v693_v18  ;;  %1153 = vmatpush.msrb.mxu3 %v709_v19  ;;  %v783_v18 = vld [vmem:[%s3561_s4 + $0x3e8] sm:$0xff] }
  0x4d   : > { %902 = vmatmul.f32.gmra.mxu3 %v338_v20  ;;  %1264 = vmatpush.msrb.mxu0 %v727_v21  ;;  %v751_v19 = vld [vmem:[%s3561_s4 + $0x2e8] sm:$0xff]  ;;  %v412_v20 = vsel %vm404_vm0, %v410_v42, %v411_v9 }
  0x4e   : > { %927 = vmatpush.msrb.mxu1 %v677_v22  ;;  %1041 = vmatpush.msrb.mxu2 %v692_v23  ;;  %v301_v21 = vld [vmem:[%s2271_s9 + $0x28] sm:$0x3]  ;;  %v409_v22 = vsel %vm404_vm0, %v406_v3, %v408_v12  ;;  %v536_v23 = vsel %vm531_vm1, %v533_v4, %v535_v13  ;;  %v423_v4 = vrot.slane %v307_v2, 1  ;;  %v780_v12 = vld [vmem:[%s3561_s4 + $0x3d0] sm:$0xff] }
  0x4f   : > { %1154 = vmatpush.msrb.mxu3 %v708_v24  ;;  %1265 = vmatpush.msrb.mxu0 %v726_v25  ;;  %v413_v24 = vrot.slane %v301_v21, 1  ;;  %v537_v25 = vrot.slane %v2405_v58, 2 }
  0x50   : > { %928 = vmatpush.msrb.mxu1 %v676_v27  ;;  %1042 = vmatpush.msrb.mxu2 %v691_v28  ;;  %v538_v27 = vrot.slane %v2454_v10, 2  ;;  %v799_v28 = vld [vmem:[%s3561_s4 + $0x468] sm:$0xff] }
  0x51   : > { %830 = vmatmul.f32.gmra.mxu0 %v2503_v29  ;;  %1155 = vmatpush.msrb.mxu3 %v707_v32  ;;  %v414_v32 = vsel %vm404_vm0, %v411_v9, %v413_v24  ;;  %v426_v9 = vrot.slane %v2319_v30, 1  ;;  %v796_v24 = vld [vmem:[%s3561_s4 + $0x450] sm:$0xff] }
  0x52   : > { %1266 = vmatpush.msrb.mxu0 %v725_v33  ;;  %929 = vmatpush.msrb.mxu1 %v675_v34  ;;  %v2627_v33 = vsel %vm531_vm1, %v537_v25, %v538_v27  ;;  %v415_v34 = vrot.slane %v2503_v29, 1 }
  0x53   : > { %857 = vmatmul.f32.gmra.mxu1 %v2515_v35  ;;  %881 = vmatmul.f32.gmra.mxu2 %v2518_v36 }
  0x54   : > { %1043 = vmatpush.msrb.mxu2 %v690_v37  ;;  %1156 = vmatpush.msrb.mxu3 %v706_v38  ;;  %v540_v37 = vrot.slane %v301_v21, 2  ;;  %v782_v38 = vld [vmem:[%s3561_s4 + $0x3e0] sm:$0xff] }
  0x55   : > { %905 = vmatmul.f32.gmra.mxu3 %v339_v39  ;;  %1267 = vmatpush.msrb.mxu0 %v724_v40  ;;  %v750_v39 = vld [vmem:[%s3561_s4 + $0x2e0] sm:$0xff] }
  0x56   : > { %930 = vmatpush.msrb.mxu1 %v674_v41  ;;  %1480 = vmatpush.msra.mxu2 %v769_v43  ;;  %v304_v41 = vld [vmem:[%s2271_s9 + $0x40] sm:$0x3]  ;;  %v2647_v43 = vsel %vm531_vm1, %v538_v27, %v540_v37 }
  0x57   : > { %1268 = vmatpush.msrb.mxu0 %v723_v44  ;;  %1593 = vmatpush.msra.mxu3 %v785_v45  ;;  %v418_v44 = vrot.slane %v304_v41, 1  ;;  %v542_v45 = vrot.slane %v2503_v29, 2 }
  0x58   : > { %1367 = vmatpush.msra.mxu1 %v753_v48  ;;  %1481 = vmatpush.msra.mxu2 %v768_v55  ;;  %v543_v48 = vrot.slane %v2549_v49, 2  ;;  %v421_v55 = vrot.slane %v2597_v6, 1 }
  0x59   : > { %833 = vmatmul.f32.gmra.mxu0 %v2549_v49  ;;  %1594 = vmatpush.msra.mxu3 %v784_v56  ;;  %v545_v56 = vrot.slane %v304_v41, 2  ;;  %v313_v41 = vld [vmem:[%s2271_s9 + $0x88] sm:$0x3] }
  0x5a   : > { %1269 = vmatpush.msrb.mxu0 %v722_v50  ;;  %1368 = vmatpush.msra.mxu1 %v752_v57  ;;  %v798_v50 = vld [vmem:[%s3561_s4 + $0x460] sm:$0xff]  ;;  %v781_v57 = vld [vmem:[%s3561_s4 + $0x3d8] sm:$0xff]  ;;  %v2695_v26 = vsel %vm404_vm0, %v421_v55, %v423_v4 }
  0x5b   : > { %860 = vmatmul.f32.gmra.mxu1 %v2555_v51  ;;  %884 = vmatmul.f32.gmra.mxu2 %v2558_v52  ;;  %v2683_v3 = vsel %vm531_vm1, %v543_v48, %v545_v56 }
  0x5c   : > { %1706 = vmatpush.msra.mxu0 %v801_v53  ;;  %1482 = vmatpush.msra.mxu2 %v767_v11  ;;  %v550_v11 = vrot.slane %v307_v2, 2 }
  0x5d   : > { %908 = vmatmul.f32.gmra.mxu3 %v341_v54  ;;  %1369 = vmatpush.msra.mxu1 %v751_v19  ;;  %v2661_v54 = vsel %vm531_vm1, %v542_v45, %v543_v48  ;;  %v310_v19 = vld [vmem:[%s2271_s9 + $0x70] sm:$0x3] }
  0x5e   : > { %1707 = vmatpush.msra.mxu0 %v800_v5  ;;  %1595 = vmatpush.msra.mxu3 %v783_v18  ;;  %v547_v5 = vrot.slane %v2577_v59, 2  ;;  %v748_v18 = vld [vmem:[%s3561_s4 + $0x2d0] sm:$0xff]  ;;  %v428_v21 = vrot.slane %v310_v19, 1 }
  0x5f   : > { %1370 = vmatpush.msra.mxu1 %v750_v39  ;;  %v747_v39 = vld [vmem:[%s3561_s4 + $0x2c8] sm:$0xff] }
  0x60   : > { %1708 = vmatpush.msra.mxu0 %v799_v28  ;;  %1596 = vmatpush.msra.mxu3 %v782_v38  ;;  %v2732_v25 = vsel %vm404_vm0, %v426_v9, %v428_v21 }
  0x61   : > { %836 = vmatmul.f32.gmra.mxu0 %v2577_v59  ;;  %1371 = vmatpush.msra.mxu1 %v749_v1 }
  0x62   : > { %1709 = vmatpush.msra.mxu0 %v798_v50  ;;  %1597 = vmatpush.msra.mxu3 %v781_v57  ;;  %v433_v50 = vrot.slane %v313_v41, 1 }
  0x63   : > { %863 = vmatmul.f32.gmra.mxu1 %v2580_v60  ;;  %887 = vmatmul.f32.gmra.mxu2 %v2583_v61 }
  0x64   : > { %1598 = vmatpush.msra.mxu3 %v780_v12  ;;  %1372 = vmatpush.msra.mxu1 %v748_v18  ;;  %v746_v12 = vld [vmem:[%s3561_s4 + $0x2c0] sm:$0xff] }
  0x65   : > { %911 = vmatmul.f32.gmra.mxu3 %v342_v0  ;;  %v316_v18 = vld [vmem:[%s2271_s9 + $0xa0] sm:$0x3] }
  0x66   : > { %1373 = vmatpush.msra.mxu1 %v747_v39 }
  0x68   : > { %1374 = vmatpush.msra.mxu1 %v746_v12 }
  0x69   : > { %839 = vmatmul.f32.gmra.mxu0 %v2597_v6 }
  0x6b   : > { %931 = vmatmul.f32.vlgmr.msrb.gmra.mxu1 %v407_v7  ;;  %1044 = vmatmul.f32.vlgmr.msrb.gmra.mxu2 %v534_v8  ;;  %v548_v7 = vrot.slane %v2597_v6, 2  ;;  %v797_v8 = vld [vmem:[%s3561_s4 + $0x458] sm:$0xff] }
  0x6c   : > { %1710 = vmatpush.msra.mxu0 %v797_v8  ;;  %v560_v8 = vrot.slane %v313_v41, 2 }
  0x6d   : > { %1157 = vmatmul.f32.vlgmr.msrb.gmra.mxu3 %v2405_v58  ;;  %v416_v58 = vrot.slane %v2549_v49, 1  ;;  %v2698_v42 = vsel %vm531_vm1, %v547_v5, %v548_v7  ;;  %v436_v5 = vrot.slane %v2515_v35, 1 }
  0x6e   : > { %1711 = vmatpush.msra.mxu0 %v796_v24  ;;  %v562_v24 = vrot.slane %v2466_v14, 2 }
  0x6f   : > { %v2643_v40 = vsel %vm404_vm0, %v415_v34, %v416_v58  ;;  %v2658_v53 = vsel %vm404_vm0, %v416_v58, %v418_v44  ;;  %v555_v34 = vrot.slane %v310_v19, 2  ;;  %v779_v58 = vld [vmem:[%s3561_s4 + $0x3c8] sm:$0xff] }
  0x70   : > { %1599 = vmatpush.msra.mxu3 %v779_v58 }
  0x71   : > { %1270 = vmatmul.f32.vlgmr.msrb.gmra.mxu0 %v412_v20 }
  0x73   : > { %934 = vmatmul.f32.gmra.mxu1 %v409_v22  ;;  %1047 = vmatmul.f32.gmra.mxu2 %v536_v23  ;;  %v552_v22 = vrot.slane %v2277_v16, 2  ;;  %v553_v23 = vrot.slane %v2319_v30, 2 }
  0x75   : > { %1160 = vmatmul.f32.gmra.mxu3 %v2454_v10  ;;  %v766_v10 = vld [vmem:[%s3561_s4 + $0x360] sm:$0xff]  ;;  %v2737_v28 = vsel %vm531_vm1, %v552_v22, %v553_v23  ;;  %v2767_v48 = vsel %vm531_vm1, %v553_v23, %v555_v34  ;;  %v438_v23 = vrot.slane %v316_v18, 1 }
  0x76   : > { %1483 = vmatpush.msra.mxu2 %v766_v10 }
  0x77   : > { %v2836_v58 = vsel %vm404_vm0, %v436_v5, %v438_v23 }
  0x78   : > { %3611 = vst [vmem:[#allocation8_spill] sm:$0xff] %v2836_v58 }
  0x79   : > { %1273 = vmatmul.f32.gmra.mxu0 %v414_v32 }
  0x7b   : > { %937 = vmatmul.f32.gmra.mxu1 %v412_v20  ;;  %1050 = vmatmul.f32.gmra.mxu2 %v2627_v33  ;;  %v2720_v20 = vsel %vm531_vm1, %v548_v7, %v550_v11  ;;  %v762_v7 = vld [vmem:[%s3561_s4 + $0x340] sm:$0xff] }
  0x7d   : > { %1163 = vmatmul.f32.gmra.mxu3 %v2503_v29  ;;  %v420_v29 = vrot.slane %v2577_v59, 1 }
  0x7f   : > { %v2676_v0 = vsel %vm404_vm0, %v420_v29, %v421_v55  ;;  %v557_v29 = vrot.slane %v2368_v46, 2  ;;  %v558_v55 = vrot.slane %v2417_v62, 2 }
  0x81   : > { %1276 = vmatmul.f32.gmra.mxu0 %v2643_v40  ;;  %v2820_v22 = vsel %vm531_vm1, %v558_v55, %v560_v8  ;;  %v319_v8 = vld [vmem:[%s2271_s9 + $0xb8] sm:$0x3] }
  0x82   : > { %3610 = vst [vmem:[#allocation7_spill] sm:$0xff] %v2820_v22 }
  0x83   : > { %940 = vmatmul.f32.gmra.mxu1 %v414_v32  ;;  %1053 = vmatmul.f32.gmra.mxu2 %v2647_v43  ;;  %v763_v32 = vld [vmem:[%s3561_s4 + $0x348] sm:$0xff] }
  0x85   : > { %1166 = vmatmul.f32.gmra.mxu3 %v2549_v49  ;;  %v765_v49 = vld [vmem:[%s3561_s4 + $0x358] sm:$0xff] }
  0x86   : > { %1484 = vmatpush.msra.mxu2 %v765_v49  ;;  %v795_v49 = vld [vmem:[%s3561_s4 + $0x448] sm:$0xff] }
  0x87   : > { %1712 = vmatpush.msra.mxu0 %v795_v49  ;;  %v777_v49 = vld [vmem:[%s3561_s4 + $0x3b8] sm:$0xff] }
  0x89   : > { %1279 = vmatmul.f32.gmra.mxu0 %v2658_v53 }
  0x8b   : > { %943 = vmatmul.f32.gmra.mxu1 %v2643_v40  ;;  %1056 = vmatmul.f32.gmra.mxu2 %v2661_v54 }
  0x8d   : > { %1169 = vmatmul.f32.gmra.mxu3 %v2577_v59  ;;  %v425_v59 = vrot.slane %v2277_v16, 1 }
  0x8f   : > { %v2713_v13 = vsel %vm404_vm0, %v425_v59, %v426_v9  ;;  %v778_v59 = vld [vmem:[%s3561_s4 + $0x3c0] sm:$0xff] }
  0x90   : > { %1600 = vmatpush.msra.mxu3 %v778_v59  ;;  %v745_v59 = vld [vmem:[%s3561_s4 + $0x2b8] sm:$0xff] }
  0x91   : > { %1282 = vmatmul.f32.gmra.mxu0 %v2676_v0  ;;  %1375 = vmatpush.msra.mxu1 %v745_v59 }
  0x92   : > { %1601 = vmatpush.msra.mxu3 %v777_v49 }
  0x93   : > { %946 = vmatmul.f32.gmra.mxu1 %v2658_v53  ;;  %1059 = vmatmul.f32.gmra.mxu2 %v2683_v3 }
  0x95   : > { %1172 = vmatmul.f32.gmra.mxu3 %v2597_v6  ;;  %v764_v6 = vld [vmem:[%s3561_s4 + $0x350] sm:$0xff] }
  0x96   : > { %1485 = vmatpush.msra.mxu2 %v764_v6 }
  0x98   : > { %1486 = vmatpush.msra.mxu2 %v763_v32 }
  0x99   : > { %1285 = vmatmul.f32.gmra.mxu0 %v2695_v26 }
  0x9a   : > { %1487 = vmatpush.msra.mxu2 %v762_v7 }
  0x9b   : > { %949 = vmatmul.f32.gmra.mxu1 %v2676_v0  ;;  %1062 = vmatmul.f32.gmra.mxu2 %v2698_v42 }
  0x9d   : > { %1175 = vmatmul.f32.gmra.mxu3 %v2277_v16  ;;  %v430_v16 = vrot.slane %v2368_v46, 1 }
  0xa1   : > { %1288 = vmatmul.f32.gmra.mxu0 %v2713_v13 }
  0xa3   : > { %952 = vmatmul.f32.gmra.mxu1 %v2695_v26  ;;  %1065 = vmatmul.f32.gmra.mxu2 %v2720_v20 }
  0xa5   : > { %1178 = vmatmul.f32.gmra.mxu3 %v2319_v30  ;;  %v431_v30 = vrot.slane %v2417_v62, 1 }
  0xa7   : > { %v2756_v38 = vsel %vm404_vm0, %v430_v16, %v431_v30  ;;  %v2783_v1 = vsel %vm404_vm0, %v431_v30, %v433_v50  ;;  %v563_v16 = vrot.slane %v2515_v35, 2  ;;  %v794_v30 = vld [vmem:[%s3561_s4 + $0x440] sm:$0xff]  ;;  %v441_v50 = vrot.slane %v2580_v60, 1 }
  0xa8   : > { %v2734_v27 = vpop.f32.mrf.mxu1  ;;  %3606 = vst [vmem:[#allocation3_spill] sm:$0xff] %v2783_v1  ;;  %1713 = vmatpush.msra.mxu0 %v794_v30  ;;  %v567_v30 = vrot.slane %v2555_v51, 2 }
  0xa9   : > { %1291 = vmatmul.f32.gmra.mxu0 %v2732_v25 }
  0xab   : > { %955 = vmatmul.f32.gmra.mxu1 %v2713_v13  ;;  %1068 = vmatmul.f32.gmra.mxu2 %v2737_v28 }
  0xad   : > { %1181 = vmatmul.f32.gmra.mxu3 %v2368_v46  ;;  %v2790_v46 = vsel %vm531_vm1, %v557_v29, %v558_v55  ;;  %v761_v29 = vld [vmem:[%s3561_s4 + $0x338] sm:$0xff]  ;;  %v565_v55 = vrot.slane %v316_v18, 2 }
  0xae   : > { %v2751_v10 = vpop.f32.mrf.mxu2  ;;  %v2753_v37 = vpop.f32.mrf.mxu0  ;;  %1488 = vmatpush.msra.mxu2 %v761_v29  ;;  %v793_v29 = vld [vmem:[%s3561_s4 + $0x438] sm:$0xff] }
  0xaf   : > { %v2873_v23 = vsel %vm531_vm1, %v563_v16, %v565_v55  ;;  %1714 = vmatpush.msra.mxu0 %v793_v29 }
  0xb0   : > { %v2762_v44 = vpop.f32.mrf.mxu1  ;;  %v2764_v45 = vpop.f32.mrf.mxu3  ;;  %3616 = vst [vmem:[#allocation13_spill] sm:$0xff] %v2873_v23 }
  0xb1   : > { %3605 = vst [vmem:[#allocation2_spill] sm:$0xff] %v2764_v45  ;;  %1294 = vmatmul.f32.gmra.mxu0 %v2756_v38 }
  0xb3   : > { %958 = vmatmul.f32.gmra.mxu1 %v2732_v25  ;;  %1071 = vmatmul.f32.gmra.mxu2 %v2767_v48 }
  0xb5   : > { %1184 = vmatmul.f32.gmra.mxu3 %v2417_v62  ;;  %v435_v62 = vrot.slane %v2466_v14, 1 }
  0xb6   : > { %v2778_v56 = vpop.f32.mrf.mxu2  ;;  %v2780_v57 = vpop.f32.mrf.mxu0 }
  0xb7   : > { %v2809_v11 = vsel %vm404_vm0, %v435_v62, %v436_v5 }
  0xb8   : > { %v2785_v2 = vpop.f32.mrf.mxu1  ;;  %v2787_v4 = vpop.f32.mrf.mxu3  ;;  %3608 = vst [vmem:[#allocation5_spill] sm:$0xff] %v2809_v11 }
  0xb9   : > { %3607 = vst [vmem:[#allocation4_spill] sm:$0xff] %v2787_v4  ;;  %1297 = vmatmul.f32.gmra.mxu0 %v2783_v1  ;;  %v451_v4 = vrot.slane %v2420_v63, 1 }
  0xbb   : > { %961 = vmatmul.f32.gmra.mxu1 %v2756_v38  ;;  %1074 = vmatmul.f32.gmra.mxu2 %v2790_v46 }
  0xbd   : > { %1187 = vmatmul.f32.gmra.mxu3 %v2466_v14  ;;  %v2843_v14 = vsel %vm531_vm1, %v562_v24, %v563_v16  ;;  %v443_v24 = vrot.slane %v319_v8, 1 }
  0xbe   : > { %v2804_v9 = vpop.f32.mrf.mxu2  ;;  %v2806_v6 = vpop.f32.mrf.mxu0  ;;  %3613 = vst [vmem:[#allocation10_spill] sm:$0xff] %v2843_v14 }
  0xbf   : > { %v2889_v49 = vsel %vm404_vm0, %v441_v50, %v443_v24  ;;  %v570_v24 = vrot.slane %v319_v8, 2  ;;  %v744_v8 = vld [vmem:[%s3561_s4 + $0x2b0] sm:$0xff] }
  0xc0   : > { %v2815_v19 = vpop.f32.mrf.mxu1  ;;  %v2817_v21 = vpop.f32.mrf.mxu3  ;;  %3617 = vst [vmem:[#allocation14_spill] sm:$0xff] %v2889_v49  ;;  %1376 = vmatpush.msra.mxu1 %v744_v8 }
  0xc1   : > { %3609 = vst [vmem:[#allocation6_spill] sm:$0xff] %v2817_v21  ;;  %1300 = vmatmul.f32.gmra.mxu0 %v2809_v11 }
  0xc3   : > { %964 = vmatmul.f32.gmra.mxu1 %v2783_v1  ;;  %1077 = vmatmul.f32.gmra.mxu2 %v2820_v22 }
  0xc5   : > { %1190 = vmatmul.f32.gmra.mxu3 %v2515_v35  ;;  %v440_v35 = vrot.slane %v2555_v51, 1 }
  0xc6   : > { %v2831_v32 = vpop.f32.mrf.mxu2  ;;  %v2833_v34 = vpop.f32.mrf.mxu0 }
  0xc7   : > { %v2862_v7 = vsel %vm404_vm0, %v440_v35, %v441_v50  ;;  %v568_v35 = vrot.slane %v2580_v60, 2  ;;  %v760_v50 = vld [vmem:[%s3561_s4 + $0x330] sm:$0xff] }
  0xc8   : > { %v2838_v39 = vpop.f32.mrf.mxu1  ;;  %v2840_v41 = vpop.f32.mrf.mxu3  ;;  %3614 = vst [vmem:[#allocation11_spill] sm:$0xff] %v2862_v7  ;;  %1489 = vmatpush.msra.mxu2 %v760_v50 }
  0xc9   : > { %3612 = vst [vmem:[#allocation9_spill] sm:$0xff] %v2840_v41  ;;  %1303 = vmatmul.f32.gmra.mxu0 %v2836_v58  ;;  %v446_v41 = vrot.slane %v2322_v31, 1 }
  0xcb   : > { %967 = vmatmul.f32.gmra.mxu1 %v2809_v11  ;;  %1080 = vmatmul.f32.gmra.mxu2 %v2843_v14  ;;  %v325_v11 = vld [vmem:[%s2271_s9 + $0xe8] sm:$0x3] }
  0xcc   : > { %v453_v22 = vrot.slane %v325_v11, 1 }
  0xcd   : > { %1193 = vmatmul.f32.gmra.mxu3 %v2555_v51  ;;  %v2896_v51 = vsel %vm531_vm1, %v567_v30, %v568_v35  ;;  %v776_v30 = vld [vmem:[%s3561_s4 + $0x3b0] sm:$0xff] }
  0xce   : > { %v2857_v62 = vpop.f32.mrf.mxu2  ;;  %v2859_v5 = vpop.f32.mrf.mxu0  ;;  %3619 = vst [vmem:[#allocation16_spill] sm:$0xff] %v2896_v51  ;;  %1602 = vmatpush.msra.mxu3 %v776_v30  ;;  %v573_v30 = vrot.slane %v2322_v31, 2 }
  0xd0   : > { %v2868_v12 = vpop.f32.mrf.mxu1  ;;  %v2870_v18 = vpop.f32.mrf.mxu3 }
  0xd1   : > { %3615 = vst [vmem:[#allocation12_spill] sm:$0xff] %v2870_v18  ;;  %1306 = vmatmul.f32.gmra.mxu0 %v2862_v7 }
  0xd3   : > { %970 = vmatmul.f32.gmra.mxu1 %v2836_v58  ;;  %1083 = vmatmul.f32.gmra.mxu2 %v2873_v23  ;;  %v2926_v23 = vsel %vm531_vm1, %v568_v35, %v570_v24 }
  0xd4   : > { %3622 = vst [vmem:[#allocation19_spill] sm:$0xff] %v2926_v23 }
  0xd5   : > { %1196 = vmatmul.f32.gmra.mxu3 %v2580_v60  ;;  %v445_v60 = vrot.slane %v2280_v17, 1 }
  0xd6   : > { %v2884_v16 = vpop.f32.mrf.mxu2  ;;  %v2886_v55 = vpop.f32.mrf.mxu0 }
  0xd8   : > { %v2891_v59 = vpop.f32.mrf.mxu1  ;;  %v2893_v18 = vpop.f32.mrf.mxu3 }
  0xd9   : > { %3618 = vst [vmem:[#allocation15_spill] sm:$0xff] %v2893_v18  ;;  %1309 = vmatmul.f32.gmra.mxu0 %v2889_v49 }
  0xdb   : > { %973 = vmatmul.f32.gmra.mxu1 %v2862_v7  ;;  %1086 = vmatmul.f32.gmra.mxu2 %v2896_v51  ;;  %v2915_v7 = vsel %vm404_vm0, %v445_v60, %v446_v41  ;;  %v322_v51 = vld [vmem:[%s2271_s9 + $0xd0] sm:$0x3]  ;;  %v572_v60 = vrot.slane %v2280_v17, 2 }
  0xdc   : > { %3620 = vst [vmem:[#allocation17_spill] sm:$0xff] %v2915_v7  ;;  %v448_v58 = vrot.slane %v322_v51, 1 }
  0xdd   : > { %1199 = vmatmul.f32.gmra.mxu3 %v2280_v17  ;;  %v2947_v17 = vsel %vm531_vm1, %v572_v60, %v573_v30  ;;  %v775_v60 = vld [vmem:[%s3561_s4 + $0x3a8] sm:$0xff] }
  0xde   : > { %v2910_v29 = vpop.f32.mrf.mxu2  ;;  %v2912_v18 = vpop.f32.mrf.mxu0  ;;  %v2942_v8 = vsel %vm404_vm0, %v446_v41, %v448_v58  ;;  %3624 = vst [vmem:[#allocation21_spill] sm:$0xff] %v2947_v17  ;;  %v575_v58 = vrot.slane %v322_v51, 2  ;;  %1603 = vmatpush.msra.mxu3 %v775_v60  ;;  %v743_v51 = vld [vmem:[%s3561_s4 + $0x2a8] sm:$0xff] }
  0xdf   : > { %1377 = vmatpush.msra.mxu1 %v743_v51 }
  0xe0   : > { %v2921_v50 = vpop.f32.mrf.mxu1  ;;  %v2923_v21 = vpop.f32.mrf.mxu3 }
  0xe1   : > { %3621 = vst [vmem:[#allocation18_spill] sm:$0xff] %v2923_v21  ;;  %1312 = vmatmul.f32.gmra.mxu0 %v2915_v7  ;;  %v792_v21 = vld [vmem:[%s3561_s4 + $0x430] sm:$0xff] }
  0xe2   : > { %1715 = vmatpush.msra.mxu0 %v792_v21  ;;  %v759_v21 = vld [vmem:[%s3561_s4 + $0x328] sm:$0xff] }
  0xe3   : > { %976 = vmatmul.f32.gmra.mxu1 %v2889_v49  ;;  %1089 = vmatmul.f32.gmra.mxu2 %v2926_v23 }
  0xe4   : > { %1490 = vmatpush.msra.mxu2 %v759_v21 }
  0xe5   : > { %1202 = vmatmul.f32.gmra.mxu3 %v2322_v31  ;;  %v450_v31 = vrot.slane %v2371_v47, 1 }
  0xe6   : > { %v2937_v35 = vpop.f32.mrf.mxu2  ;;  %v2939_v24 = vpop.f32.mrf.mxu0 }
  0xe8   : > { %v2944_v49 = vpop.f32.mrf.mxu3  ;;  %v932_v23 = vpop.f32.mrf.mxu1 }
  0xe9   : > { %3623 = vst [vmem:[#allocation20_spill] sm:$0xff] %v2944_v49  ;;  %1315 = vmatmul.f32.gmra.mxu0 %v2942_v8  ;;  %v933_v41 = vadd.f32 %v932_v23, %v2753_v37  ;;  %v2970_v23 = vsel %vm531_vm1, %v573_v30, %v575_v58  ;;  %v791_v30 = vld [vmem:[%s3561_s4 + $0x428] sm:$0xff] }
  0xea   : > { %1716 = vmatpush.msra.mxu0 %v791_v30 }
  0xeb   : > { %979 = vmatmul.f32.gmra.mxu1 %v2915_v7  ;;  %1092 = vmatmul.f32.gmra.mxu2 %v2947_v17  ;;  %v2963_v7 = vsel %vm404_vm0, %v450_v31, %v451_v4  ;;  %v578_v31 = vrot.slane %v2420_v63, 2 }
  0xed   : > { %1205 = vmatmul.f32.gmra.mxu3 %v2371_v47 }
  0xee   : > { %v1045_v49 = vpop.f32.mrf.mxu2  ;;  %v1271_v14 = vpop.f32.mrf.mxu0 }
  0xef   : > { %v1046_v17 = vadd.f32 %v1045_v49, %v933_v41  ;;  %v577_v49 = vrot.slane %v2371_v47, 2 }
  0xf0   : > { %v935_v21 = vpop.f32.mrf.mxu1  ;;  %v1158_v37 = vpop.f32.mrf.mxu3 }
  0xf1   : > { %v1159_v45 = vadd.f32 %v1158_v37, %v1046_v17  ;;  %1318 = vmatmul.f32.gmra.mxu0 %v2963_v7  ;;  %v936_v41 = vadd.f32 %v935_v21, %v2780_v57  ;;  %v2988_v47 = vsel %vm531_vm1, %v577_v49, %v578_v31  ;;  %v456_v57 = vrot.slane %v2518_v36, 1 }
  0xf3   : > { %v2973_v1 = vadd.f32 %v1271_v14, %v1159_v45  ;;  %982 = vmatmul.f32.gmra.mxu1 %v2942_v8  ;;  %1095 = vmatmul.f32.gmra.mxu2 %v2970_v23  ;;  %v2985_v45 = vsel %vm404_vm0, %v451_v4, %v453_v22  ;;  %v758_v4 = vld [vmem:[%s3561_s4 + $0x320] sm:$0xff]  ;;  %v580_v22 = vrot.slane %v325_v11, 2 }
  0xf4   : > { %1491 = vmatpush.msra.mxu2 %v758_v4  ;;  %v742_v11 = vld [vmem:[%s3561_s4 + $0x2a0] sm:$0xff] }
  0xf5   : > { %3625 = vst [vmem:[#allocation22_spill] sm:$0xff] %v2973_v1  ;;  %1208 = vmatmul.f32.gmra.mxu3 %v2420_v63  ;;  %v455_v63 = vrot.slane %v2469_v15, 1  ;;  %1378 = vmatpush.msra.mxu1 %v742_v11 }
  0xf6   : > { %v1048_v17 = vpop.f32.mrf.mxu2  ;;  %v1274_v58 = vpop.f32.mrf.mxu0 }
  0xf7   : > { %v1049_v14 = vadd.f32 %v1048_v17, %v936_v41  ;;  %v774_v41 = vld [vmem:[%s3561_s4 + $0x3a0] sm:$0xff] }
  0xf8   : > { %v938_v60 = vpop.f32.mrf.mxu1  ;;  %v1161_v51 = vpop.f32.mrf.mxu3  ;;  %1604 = vmatpush.msra.mxu3 %v774_v41 }
  0xf9   : > { %v1162_v37 = vadd.f32 %v1161_v51, %v1049_v14  ;;  %1321 = vmatmul.f32.gmra.mxu0 %v2985_v45  ;;  %v939_v49 = vadd.f32 %v938_v60, %v2806_v6  ;;  %v328_v51 = vld [vmem:[%s2271_s9 + $0x100] sm:$0x3]  ;;  %v3013_v60 = vsel %vm531_vm1, %v578_v31, %v580_v22 }
  0xfa   : > { %v790_v31 = vld [vmem:[%s3561_s4 + $0x420] sm:$0xff] }
  0xfb   : > { %v2993_v21 = vadd.f32 %v1274_v58, %v1162_v37  ;;  %985 = vmatmul.f32.gmra.mxu1 %v2963_v7  ;;  %1098 = vmatmul.f32.gmra.mxu2 %v2988_v47  ;;  %v3006_v58 = vsel %vm404_vm0, %v455_v63, %v456_v57  ;;  %v582_v63 = vrot.slane %v2469_v15, 2 }
  0xfc   : > { %1717 = vmatpush.msra.mxu0 %v790_v31 }
  0xfd   : > { %3626 = vst [vmem:[#allocation23_spill] sm:$0xff] %v2993_v21  ;;  %1211 = vmatmul.f32.gmra.mxu3 %v2469_v15  ;;  %v458_v21 = vrot.slane %v328_v51, 1 }
  0xfe   : > { %v1051_v30 = vpop.f32.mrf.mxu2  ;;  %v1277_v17 = vpop.f32.mrf.mxu0 }
  0xff   : > { %v1052_v14 = vadd.f32 %v1051_v30, %v939_v49  ;;  %v583_v49 = vrot.slane %v2518_v36, 2 }
 0x100   : > { %v941_v37 = vpop.f32.mrf.mxu1  ;;  %v1164_v6 = vpop.f32.mrf.mxu3 }
 0x101   : > { %v1165_v4 = vadd.f32 %v1164_v6, %v1052_v14  ;;  %1324 = vmatmul.f32.gmra.mxu0 %v3006_v58  ;;  %v942_v41 = vadd.f32 %v941_v37, %v2833_v34  ;;  %v3031_v15 = vsel %vm531_vm1, %v582_v63, %v583_v49  ;;  %v461_v34 = vrot.slane %v2583_v61, 1 }
 0x103   : > { %v3016_v1 = vadd.f32 %v1277_v17, %v1165_v4  ;;  %988 = vmatmul.f32.gmra.mxu1 %v2985_v45  ;;  %1101 = vmatmul.f32.gmra.mxu2 %v3013_v60  ;;  %v3028_v17 = vsel %vm404_vm0, %v456_v57, %v458_v21  ;;  %v757_v57 = vld [vmem:[%s3561_s4 + $0x318] sm:$0xff]  ;;  %v585_v21 = vrot.slane %v328_v51, 2 }
 0x104   : > { %1492 = vmatpush.msra.mxu2 %v757_v57  ;;  %v741_v51 = vld [vmem:[%s3561_s4 + $0x298] sm:$0xff] }
 0x105   : > { %3627 = vst [vmem:[#allocation24_spill] sm:$0xff] %v3016_v1  ;;  %1214 = vmatmul.f32.gmra.mxu3 %v2518_v36  ;;  %v460_v36 = vrot.slane %v2558_v52, 1  ;;  %1379 = vmatpush.msra.mxu1 %v741_v51 }
 0x106   : > { %v1054_v22 = vpop.f32.mrf.mxu2  ;;  %v1280_v30 = vpop.f32.mrf.mxu0 }
 0x107   : > { %v1055_v14 = vadd.f32 %v1054_v22, %v942_v41  ;;  %v773_v41 = vld [vmem:[%s3561_s4 + $0x398] sm:$0xff] }
 0x108   : > { %v944_v11 = vpop.f32.mrf.mxu1  ;;  %v1167_v6 = vpop.f32.mrf.mxu3  ;;  %1605 = vmatpush.msra.mxu3 %v773_v41 }
 0x109   : > { %v1168_v4 = vadd.f32 %v1167_v6, %v1055_v14  ;;  %1327 = vmatmul.f32.gmra.mxu0 %v3028_v17  ;;  %v945_v63 = vadd.f32 %v944_v11, %v2859_v5  ;;  %v331_v6 = vld [vmem:[%s2271_s9 + $0x118] sm:$0x3]  ;;  %v3056_v11 = vsel %vm531_vm1, %v583_v49, %v585_v21 }
 0x10a   : > { %v789_v21 = vld [vmem:[%s3561_s4 + $0x418] sm:$0xff] }
 0x10b   : > { %v3036_v37 = vadd.f32 %v1280_v30, %v1168_v4  ;;  %991 = vmatmul.f32.gmra.mxu1 %v3006_v58  ;;  %1104 = vmatmul.f32.gmra.mxu2 %v3031_v15  ;;  %v3049_v30 = vsel %vm404_vm0, %v460_v36, %v461_v34  ;;  %v587_v36 = vrot.slane %v2558_v52, 2 }
 0x10c   : > { %3629 = vst [vmem:[#allocation26_spill] sm:$0xff] %v3049_v30  ;;  %1718 = vmatpush.msra.mxu0 %v789_v21 }
 0x10d   : > { %3628 = vst [vmem:[#allocation25_spill] sm:$0xff] %v3036_v37  ;;  %1217 = vmatmul.f32.gmra.mxu3 %v2558_v52  ;;  %v463_v37 = vrot.slane %v331_v6, 1 }
 0x10e   : > { %v1057_v31 = vpop.f32.mrf.mxu2  ;;  %v1283_v22 = vpop.f32.mrf.mxu0 }
 0x10f   : > { %v1058_v14 = vadd.f32 %v1057_v31, %v945_v63  ;;  %v588_v63 = vrot.slane %v2583_v61, 2 }
 0x110   : > { %v947_v4 = vpop.f32.mrf.mxu1  ;;  %v1170_v5 = vpop.f32.mrf.mxu3 }
 0x111   : > { %v1171_v57 = vadd.f32 %v1170_v5, %v1058_v14  ;;  %1330 = vmatmul.f32.gmra.mxu0 %v3049_v30  ;;  %v948_v49 = vadd.f32 %v947_v4, %v2886_v55  ;;  %v3074_v5 = vsel %vm531_vm1, %v587_v36, %v588_v63  ;;  %v3082_v4 = vld [vmem:[%s2271_s9 + $0x128] sm:$0xff]  ;;  %v756_v36 = vld [vmem:[%s3561_s4 + $0x310] sm:$0xff] }
 0x112   : > { %3631 = vst [vmem:[#allocation28_spill] sm:$0xff] %v3074_v5  ;;  %1493 = vmatpush.msra.mxu2 %v756_v36 }
 0x113   : > { %v3059_v1 = vadd.f32 %v1283_v22, %v1171_v57  ;;  %994 = vmatmul.f32.gmra.mxu1 %v3028_v17  ;;  %1107 = vmatmul.f32.gmra.mxu2 %v3056_v11  ;;  %v3071_v22 = vsel %vm404_vm0, %v461_v34, %v463_v37  ;;  %3633 = vst [vmem:[#allocation30_spill] sm:$0xff] %v3082_v4  ;;  %v466_v34 = vrot.slane %v3082_v4, 1 }
 0x115   : > { %3630 = vst [vmem:[#allocation27_spill] sm:$0xff] %v3059_v1  ;;  %1220 = vmatmul.f32.gmra.mxu3 %v2583_v61  ;;  %v3078_v61 = vld [vmem:[%s2271_s9 + $0x120] sm:$0xff] }
 0x116   : > { %v1060_v41 = vpop.f32.mrf.mxu2  ;;  %v1286_v31 = vpop.f32.mrf.mxu0  ;;  %3632 = vst [vmem:[#allocation29_spill] sm:$0xff] %v3078_v61  ;;  %v465_v55 = vrot.slane %v3078_v61, 1 }
 0x117   : > { %v1061_v14 = vadd.f32 %v1060_v41, %v948_v49  ;;  %v590_v49 = vrot.slane %v331_v6, 2  ;;  %v772_v41 = vld [vmem:[%s3561_s4 + $0x390] sm:$0xff] }
 0x118   : > { %v950_v51 = vpop.f32.mrf.mxu1  ;;  %v1173_v52 = vpop.f32.mrf.mxu3  ;;  %1606 = vmatpush.msra.mxu3 %v772_v41  ;;  %v740_v6 = vld [vmem:[%s3561_s4 + $0x290] sm:$0xff] }
 0x119   : > { %v1174_v57 = vadd.f32 %v1173_v52, %v1061_v14  ;;  %1333 = vmatmul.f32.gmra.mxu0 %v3071_v22  ;;  %v951_v21 = vadd.f32 %v950_v51, %v2912_v18  ;;  %v3098_v52 = vsel %vm404_vm0, %v465_v55, %v466_v34  ;;  %v3105_v51 = vsel %vm531_vm1, %v588_v63, %v590_v49  ;;  %v788_v49 = vld [vmem:[%s3561_s4 + $0x410] sm:$0xff] }
 0x11a   : > { %3635 = vst [vmem:[#allocation32_spill] sm:$0xff] %v3098_v52  ;;  %1380 = vmatpush.msra.mxu1 %v740_v6  ;;  %v592_v55 = vrot.slane %v3078_v61, 2  ;;  %1719 = vmatpush.msra.mxu0 %v788_v49 }
 0x11b   : > { %v3085_v37 = vadd.f32 %v1286_v31, %v1174_v57  ;;  %997 = vmatmul.f32.gmra.mxu1 %v3049_v30  ;;  %1110 = vmatmul.f32.gmra.mxu2 %v3074_v5 }
 0x11d   : > { %3634 = vst [vmem:[#allocation31_spill] sm:$0xff] %v3085_v37  ;;  %1223 = vmatmul.f32.gmra.mxu3 %v3078_v61  ;;  %v334_v37 = vld [vmem:[%s2271_s9 + $0x130] sm:$0x3] }
 0x11e   : > { %v1063_v31 = vpop.f32.mrf.mxu2  ;;  %v1289_v14 = vpop.f32.mrf.mxu0  ;;  %v468_v5 = vrot.slane %v334_v37, 1 }
 0x11f   : > { %v1064_v57 = vadd.f32 %v1063_v31, %v951_v21  ;;  %v593_v21 = vrot.slane %v3082_v4, 2 }
 0x120   : > { %v953_v36 = vpop.f32.mrf.mxu1  ;;  %v1176_v18 = vpop.f32.mrf.mxu3  ;;  %v3120_v31 = vsel %vm404_vm0, %v466_v34, %v468_v5 }
 0x121   : > { %v1177_v1 = vadd.f32 %v1176_v18, %v1064_v57  ;;  %1336 = vmatmul.f32.gmra.mxu0 %v3098_v52  ;;  %v954_v63 = vadd.f32 %v953_v36, %v2939_v24  ;;  %v3123_v18 = vsel %vm531_vm1, %v592_v55, %v593_v21  ;;  %v3127_v24 = vld [vmem:[%s2271_s9 + $0x138] sm:$0xff]  ;;  %v755_v55 = vld [vmem:[%s3561_s4 + $0x308] sm:$0xff] }
 0x122   : > { %3637 = vst [vmem:[#allocation34_spill] sm:$0xff] %v3123_v18  ;;  %v470_v36 = vrot.slane %v3127_v24, 1  ;;  %1494 = vmatpush.msra.mxu2 %v755_v55 }
 0x123   : > { %v3108_v30 = vadd.f32 %v1289_v14, %v1177_v1  ;;  %1000 = vmatmul.f32.gmra.mxu1 %v3071_v22  ;;  %1113 = vmatmul.f32.gmra.mxu2 %v3105_v51  ;;  %3638 = vst [vmem:[#allocation35_spill] sm:$0xff] %v3127_v24 }
 0x125   : > { %3636 = vst [vmem:[#allocation33_spill] sm:$0xff] %v3108_v30  ;;  %1226 = vmatmul.f32.gmra.mxu3 %v3082_v4  ;;  %v3131_v4 = vld [vmem:[%s2271_s9 + $0x140] sm:$0xff] }
 0x126   : > { %v1066_v1 = vpop.f32.mrf.mxu2  ;;  %v1292_v41 = vpop.f32.mrf.mxu0  ;;  %3639 = vst [vmem:[#allocation36_spill] sm:$0xff] %v3131_v4  ;;  %v471_v5 = vrot.slane %v3131_v4, 1 }
 0x127   : > { %v1067_v14 = vadd.f32 %v1066_v1, %v954_v63  ;;  %v595_v63 = vrot.slane %v334_v37, 2  ;;  %v771_v1 = vld [vmem:[%s3561_s4 + $0x388] sm:$0xff] }
 0x128   : > { %v956_v57 = vpop.f32.mrf.mxu1  ;;  %v1179_v6 = vpop.f32.mrf.mxu3  ;;  %1607 = vmatpush.msra.mxu3 %v771_v1  ;;  %v739_v37 = vld [vmem:[%s3561_s4 + $0x288] sm:$0xff] }
 0x129   : > { %v1180_v30 = vadd.f32 %v1179_v6, %v1067_v14  ;;  %1339 = vmatmul.f32.gmra.mxu0 %v3120_v31  ;;  %v957_v49 = vadd.f32 %v956_v57, %v2734_v27  ;;  %v3147_v14 = vsel %vm404_vm0, %v470_v36, %v471_v5  ;;  %v3154_v57 = vsel %vm531_vm1, %v593_v21, %v595_v63  ;;  %v787_v63 = vld [vmem:[%s3561_s4 + $0x408] sm:$0xff] }
 0x12a   : > { %3641 = vst [vmem:[#allocation38_spill] sm:$0xff] %v3147_v14  ;;  %1381 = vmatpush.msra.mxu1 %v739_v37  ;;  %v597_v36 = vrot.slane %v3127_v24, 2  ;;  %1720 = vmatpush.msra.mxu0 %v787_v63 }
 0x12b   : > { %v3134_v34 = vadd.f32 %v1292_v41, %v1180_v30  ;;  %1003 = vmatmul.f32.gmra.mxu1 %v3098_v52  ;;  %1116 = vmatmul.f32.gmra.mxu2 %v3123_v18 }
 0x12d   : > { %3640 = vst [vmem:[#allocation37_spill] sm:$0xff] %v3134_v34  ;;  %1229 = vmatmul.f32.gmra.mxu3 %v3127_v24  ;;  %v337_v34 = vld [vmem:[%s2271_s9 + $0x148] sm:$0x3] }
 0x12e   : > { %v1069_v30 = vpop.f32.mrf.mxu2  ;;  %v1295_v41 = vpop.f32.mrf.mxu0  ;;  %v473_v52 = vrot.slane %v337_v34, 1 }
 0x12f   : > { %v1070_v6 = vadd.f32 %v1069_v30, %v957_v49  ;;  %v598_v49 = vrot.slane %v3131_v4, 2 }
 0x130   : > { %v959_v55 = vpop.f32.mrf.mxu1  ;;  %v1182_v27 = vpop.f32.mrf.mxu3  ;;  %v3169_v30 = vsel %vm404_vm0, %v471_v5, %v473_v52 }
 0x131   : > { %v1183_v18 = vadd.f32 %v1182_v27, %v1070_v6  ;;  %1342 = vmatmul.f32.gmra.mxu0 %v3147_v14  ;;  %v960_v21 = vadd.f32 %v959_v55, %v2762_v44  ;;  %3643 = vst [vmem:[#allocation40_spill] sm:$0xff] %v3169_v30  ;;  %v3172_v27 = vsel %vm531_vm1, %v597_v36, %v598_v49  ;;  %v3176_v44 = vld [vmem:[%s2271_s9 + $0x150] sm:$0xff]  ;;  %v754_v36 = vld [vmem:[%s3561_s4 + $0x300] sm:$0xff] }
 0x132   : > { %3644 = vst [vmem:[#allocation41_spill] sm:$0xff] %v3172_v27  ;;  %v475_v55 = vrot.slane %v3176_v44, 1  ;;  %1495 = vmatpush.msra.mxu2 %v754_v36 }
 0x133   : > { %v3157_v61 = vadd.f32 %v1295_v41, %v1183_v18  ;;  %1006 = vmatmul.f32.gmra.mxu1 %v3120_v31  ;;  %1119 = vmatmul.f32.gmra.mxu2 %v3154_v57  ;;  %3645 = vst [vmem:[#allocation42_spill] sm:$0xff] %v3176_v44 }
 0x135   : > { %3642 = vst [vmem:[#allocation39_spill] sm:$0xff] %v3157_v61  ;;  %1232 = vmatmul.f32.gmra.mxu3 %v3131_v4  ;;  %v3180_v4 = vld [vmem:[%s2271_s9 + $0x158] sm:$0xff] }
 0x136   : > { %v1072_v18 = vpop.f32.mrf.mxu2  ;;  %v1298_v1 = vpop.f32.mrf.mxu0  ;;  %3646 = vst [vmem:[#allocation43_spill] sm:$0xff] %v3180_v4  ;;  %v476_v52 = vrot.slane %v3180_v4, 1 }
 0x137   : > { %v1073_v41 = vadd.f32 %v1072_v18, %v960_v21  ;;  %v600_v21 = vrot.slane %v337_v34, 2  ;;  %v770_v18 = vld [vmem:[%s3561_s4 + $0x380] sm:$0xff] }
 0x138   : > { %v962_v6 = vpop.f32.mrf.mxu1  ;;  %v1185_v37 = vpop.f32.mrf.mxu3  ;;  %1608 = vmatpush.msra.mxu3 %v770_v18  ;;  %v738_v34 = vld [vmem:[%s3561_s4 + $0x280] sm:$0xff] }
 0x139   : > { %v1186_v61 = vadd.f32 %v1185_v37, %v1073_v41  ;;  %1345 = vmatmul.f32.gmra.mxu0 %v3169_v30  ;;  %v963_v63 = vadd.f32 %v962_v6, %v2785_v2  ;;  %v3196_v41 = vsel %vm404_vm0, %v475_v55, %v476_v52  ;;  %v3203_v6 = vsel %vm531_vm1, %v598_v49, %v600_v21  ;;  %v786_v21 = vld [vmem:[%s3561_s4 + $0x400] sm:$0xff] }
 0x13a   : > { %3648 = vst [vmem:[#allocation45_spill] sm:$0xff] %v3203_v6  ;;  %1382 = vmatpush.msra.mxu1 %v738_v34  ;;  %v602_v55 = vrot.slane %v3176_v44, 2  ;;  %1721 = vmatpush.msra.mxu0 %v786_v21 }
 0x13b   : > { %v3183_v5 = vadd.f32 %v1298_v1, %v1186_v61  ;;  %1009 = vmatmul.f32.gmra.mxu1 %v3147_v14  ;;  %1122 = vmatmul.f32.gmra.mxu2 %v3172_v27 }
 0x13d   : > { %3647 = vst [vmem:[#allocation44_spill] sm:$0xff] %v3183_v5  ;;  %1235 = vmatmul.f32.gmra.mxu3 %v3176_v44  ;;  %v340_v5 = vld [vmem:[%s2271_s9 + $0x160] sm:$0x3]  ;;  %v343_v44 = vld [vmem:[%s2271_s9 + $0x178] sm:$0x3] }
 0x13e   : > { %v1075_v61 = vpop.f32.mrf.mxu2  ;;  %v1301_v1 = vpop.f32.mrf.mxu0  ;;  %v478_v14 = vrot.slane %v340_v5, 1 }
 0x13f   : > { %v1076_v37 = vadd.f32 %v1075_v61, %v963_v63  ;;  %v603_v63 = vrot.slane %v3180_v4, 2 }
 0x140   : > { %v965_v36 = vpop.f32.mrf.mxu1  ;;  %v1188_v2 = vpop.f32.mrf.mxu3  ;;  %v3218_v61 = vsel %vm404_vm0, %v476_v52, %v478_v14 }
 0x141   : > { %v1189_v27 = vadd.f32 %v1188_v2, %v1076_v37  ;;  %1348 = vmatmul.f32.gmra.mxu0 %v3196_v41  ;;  %v966_v49 = vadd.f32 %v965_v36, %v2815_v19  ;;  %v3221_v2 = vsel %vm531_vm1, %v602_v55, %v603_v63  ;;  %v3225_v19 = vld [vmem:[%s2271_s9 + $0x168] sm:$0xff]  ;;  %v605_v55 = vrot.slane %v340_v5, 2 }
 0x142   : > { %3650 = vst [vmem:[#allocation47_spill] sm:$0xff] %v3225_v19  ;;  %v480_v36 = vrot.slane %v3225_v19, 1  ;;  %v483_v5 = vrot.slane %v343_v44, 1 }
 0x143   : > { %v3206_v24 = vadd.f32 %v1301_v1, %v1189_v27  ;;  %1012 = vmatmul.f32.gmra.mxu1 %v3169_v30  ;;  %1125 = vmatmul.f32.gmra.mxu2 %v3203_v6 }
 0x145   : > { %3649 = vst [vmem:[#allocation46_spill] sm:$0xff] %v3206_v24  ;;  %1238 = vmatmul.f32.gmra.mxu3 %v3180_v4  ;;  %v3229_v4 = vld [vmem:[%s2271_s9 + $0x170] sm:$0xff] }
 0x146   : > { %v1078_v27 = vpop.f32.mrf.mxu2  ;;  %v1304_v18 = vpop.f32.mrf.mxu0  ;;  %3651 = vst [vmem:[#allocation48_spill] sm:$0xff] %v3229_v4  ;;  %v481_v14 = vrot.slane %v3229_v4, 1 }
 0x147   : > { %v1079_v1 = vadd.f32 %v1078_v27, %v966_v49 }
 0x148   : > { %v968_v37 = vpop.f32.mrf.mxu1  ;;  %v1191_v34 = vpop.f32.mrf.mxu3 }
 0x149   : > { %v1192_v24 = vadd.f32 %v1191_v34, %v1079_v1  ;;  %1351 = vmatmul.f32.gmra.mxu0 %v3218_v61  ;;  %v969_v49 = vadd.f32 %v968_v37, %v2838_v39  ;;  %v3239_v1 = vsel %vm404_vm0, %v480_v36, %v481_v14  ;;  %v607_v37 = vrot.slane %v3225_v19, 2 }
 0x14a   : > { %v608_v36 = vrot.slane %v3229_v4, 2 }
 0x14b   : > { %v3232_v52 = vadd.f32 %v1304_v18, %v1192_v24  ;;  %1015 = vmatmul.f32.gmra.mxu1 %v3196_v41  ;;  %1128 = vmatmul.f32.gmra.mxu2 %v3221_v2  ;;  %v3243_v24 = vsel %vm531_vm1, %v603_v63, %v605_v55  ;;  %v3255_v55 = vsel %vm404_vm0, %v481_v14, %v483_v5  ;;  %v610_v5 = vrot.slane %v343_v44, 2 }
 0x14c   : > { %3653 = vst [vmem:[#allocation50_spill] sm:$0xff] %v3243_v24 }
 0x14d   : > { %3652 = vst [vmem:[#allocation49_spill] sm:$0xff] %v3232_v52  ;;  %1241 = vmatmul.f32.gmra.mxu3 %v3225_v19  ;;  %v3264_v19 = vld [vmem:[%s2271_s9 + $0x180] sm:$0xff] }
 0x14e   : > { %v1081_v21 = vpop.f32.mrf.mxu2  ;;  %v1307_v27 = vpop.f32.mrf.mxu0 }
 0x14f   : > { %v1082_v34 = vadd.f32 %v1081_v21, %v969_v49 }
 0x150   : > { %v971_v6 = vpop.f32.mrf.mxu1  ;;  %v1194_v30 = vpop.f32.mrf.mxu3 }
 0x151   : > { %v1195_v18 = vadd.f32 %v1194_v30, %v1082_v34  ;;  %1354 = vmatmul.f32.gmra.mxu0 %v3239_v1  ;;  %v972_v49 = vadd.f32 %v971_v6, %v2868_v12  ;;  %v485_v12 = vrot.slane %v3264_v19, 1 }
 0x153   : > { %v3246_v39 = vadd.f32 %v1307_v27, %v1195_v18  ;;  %1018 = vmatmul.f32.gmra.mxu1 %v3218_v61  ;;  %1131 = vmatmul.f32.gmra.mxu2 %v3243_v24  ;;  %v3258_v27 = vld [vmem:[%s2271_s9 + $0x188] sm:$0xff] }
 0x154   : > { %v486_v6 = vrot.slane %v3258_v27, 1 }
 0x155   : > { %3654 = vst [vmem:[#allocation51_spill] sm:$0xff] %v3246_v39  ;;  %1244 = vmatmul.f32.gmra.mxu3 %v3229_v4  ;;  %v3261_v39 = vsel %vm531_vm1, %v607_v37, %v608_v36  ;;  %v3279_v4 = vld [vmem:[%s2271_s9 + $0x190] sm:$0x3] }
 0x156   : > { %v1084_v63 = vpop.f32.mrf.mxu2  ;;  %v1310_v30 = vpop.f32.mrf.mxu0 }
 0x157   : > { %v1085_v21 = vadd.f32 %v1084_v63, %v972_v49 }
 0x158   : > { %v974_v34 = vpop.f32.mrf.mxu1  ;;  %v1197_v18 = vpop.f32.mrf.mxu3 }
 0x159   : > { %v1198_v52 = vadd.f32 %v1197_v18, %v1085_v21  ;;  %1357 = vmatmul.f32.gmra.mxu0 %v3255_v55  ;;  %v975_v37 = vadd.f32 %v974_v34, %v2891_v59  ;;  %v3276_v21 = vsel %vm404_vm0, %v485_v12, %v486_v6  ;;  %v488_v59 = vrot.slane %v3279_v4, 1 }
 0x15b   : > { %v3269_v14 = vadd.f32 %v1310_v30, %v1198_v52  ;;  %1021 = vmatmul.f32.gmra.mxu1 %v3239_v1  ;;  %1134 = vmatmul.f32.gmra.mxu2 %v3261_v39  ;;  %v3282_v30 = vsel %vm531_vm1, %v608_v36, %v610_v5  ;;  %v3293_v36 = vsel %vm404_vm0, %v486_v6, %v488_v59 }
 0x15d   : > { %3655 = vst [vmem:[#allocation52_spill] sm:$0xff] %v3269_v14  ;;  %1247 = vmatmul.f32.gmra.mxu3 %v3264_v19 }
 0x15e   : > { %v1087_v49 = vpop.f32.mrf.mxu2  ;;  %v1313_v63 = vpop.f32.mrf.mxu0 }
 0x15f   : > { %v1088_v18 = vadd.f32 %v1087_v49, %v975_v37 }
 0x160   : > { %v977_v24 = vpop.f32.mrf.mxu1  ;;  %v1200_v52 = vpop.f32.mrf.mxu3 }
 0x161   : > { %v1201_v14 = vadd.f32 %v1200_v52, %v1088_v18  ;;  %1360 = vmatmul.f32.gmra.mxu0 %v3276_v21  ;;  %v978_v34 = vadd.f32 %v977_v24, %v2921_v50 }
 0x163   : > { %v3286_v44 = vadd.f32 %v1313_v63, %v1201_v14  ;;  %1024 = vmatmul.f32.gmra.mxu1 %v3255_v55  ;;  %1137 = vmatmul.f32.gmra.mxu2 %v3282_v30  ;;  %v2140_v63 = vld [vmem:[%s2271_s9 + $0x30] sm:$0xff] }
 0x165   : > { %3656 = vst [vmem:[#allocation53_spill] sm:$0xff] %v3286_v44  ;;  %1250 = vmatmul.f32.gmra.mxu3 %v3258_v27 }
 0x166   : > { %v1090_v12 = vpop.f32.mrf.mxu2  ;;  %v1316_v37 = vpop.f32.mrf.mxu0 }
 0x167   : > { %v1091_v5 = vadd.f32 %v1090_v12, %v978_v34 }
 0x168   : > { %v980_v49 = vpop.f32.mrf.mxu1  ;;  %v1203_v18 = vpop.f32.mrf.mxu3 }
 0x169   : > { %v1204_v52 = vadd.f32 %v1203_v18, %v1091_v5  ;;  %1363 = vmatmul.f32.gmra.mxu0 %v3293_v36  ;;  %v981_v50 = vadd.f32 %v980_v49, %v2751_v10 }
 0x16b   : > { %v3296_v14 = vadd.f32 %v1316_v37, %v1204_v52  ;;  %1383 = vmatmul.f32.vlgmr.msra.gmra.mxu1 %v2627_v33  ;;  %1496 = vmatmul.f32.vlgmr.msra.gmra.mxu2 %v2140_v63  ;;  %v2141_v33 = vld [vmem:[%s2271_s9 + $0x38] sm:$0xff] }
 0x16d   : > { %1609 = vmatmul.f32.vlgmr.msra.gmra.mxu3 %v2643_v40 }
 0x16e   : > { %v1093_v24 = vpop.f32.mrf.mxu2  ;;  %v1319_v6 = vpop.f32.mrf.mxu0 }
 0x16f   : > { %v1094_v59 = vadd.f32 %v1093_v24, %v981_v50 }
 0x170   : > { %v983_v34 = vpop.f32.mrf.mxu1  ;;  %v1206_v12 = vpop.f32.mrf.mxu3 }
 0x171   : > { %v1207_v44 = vadd.f32 %v1206_v12, %v1094_v59  ;;  %1722 = vmatmul.f32.vlgmr.msra.gmra.mxu0 %v2661_v54  ;;  %v984_v37 = vadd.f32 %v983_v34, %v2778_v56 }
 0x173   : > { %v3303_v5 = vadd.f32 %v1319_v6, %v1207_v44  ;;  %1386 = vmatmul.f32.gmra.mxu1 %v2647_v43  ;;  %1499 = vmatmul.f32.gmra.mxu2 %v2141_v33  ;;  %v2142_v43 = vld [vmem:[%s2271_s9 + $0x48] sm:$0xff] }
 0x175   : > { %1612 = vmatmul.f32.gmra.mxu3 %v2658_v53 }
 0x176   : > { %v1096_v40 = vpop.f32.mrf.mxu2  ;;  %v1322_v10 = vpop.f32.mrf.mxu0 }
 0x177   : > { %v1097_v49 = vadd.f32 %v1096_v40, %v984_v37 }
 0x178   : > { %v986_v18 = vpop.f32.mrf.mxu1  ;;  %v1209_v52 = vpop.f32.mrf.mxu3 }
 0x179   : > { %v1210_v63 = vadd.f32 %v1209_v52, %v1097_v49  ;;  %1725 = vmatmul.f32.gmra.mxu0 %v2683_v3  ;;  %v987_v44 = vadd.f32 %v986_v18, %v2804_v9 }
 0x17b   : > { %v3310_v50 = vadd.f32 %v1322_v10, %v1210_v63  ;;  %1389 = vmatmul.f32.gmra.mxu1 %v2661_v54  ;;  %1502 = vmatmul.f32.gmra.mxu2 %v2142_v43  ;;  %v2143_v54 = vld [vmem:[%s2271_s9 + $0x50] sm:$0xff] }
 0x17d   : > { %1615 = vmatmul.f32.gmra.mxu3 %v2676_v0 }
 0x17e   : > { %v1099_v53 = vpop.f32.mrf.mxu2  ;;  %v1325_v56 = vpop.f32.mrf.mxu0 }
 0x17f   : > { %v1100_v24 = vadd.f32 %v1099_v53, %v987_v44 }
 0x180   : > { %v989_v6 = vpop.f32.mrf.mxu1  ;;  %v1212_v59 = vpop.f32.mrf.mxu3 }
 0x181   : > { %v1213_v34 = vadd.f32 %v1212_v59, %v1100_v24  ;;  %1728 = vmatmul.f32.gmra.mxu0 %v2698_v42  ;;  %v990_v33 = vadd.f32 %v989_v6, %v2831_v32 }
 0x183   : > { %v3317_v12 = vadd.f32 %v1325_v56, %v1213_v34  ;;  %1392 = vmatmul.f32.gmra.mxu1 %v2683_v3  ;;  %1505 = vmatmul.f32.gmra.mxu2 %v2143_v54  ;;  %v2144_v3 = vld [vmem:[%s2271_s9 + $0x60] sm:$0xff] }
 0x185   : > { %1618 = vmatmul.f32.gmra.mxu3 %v2695_v26 }
 0x186   : > { %v1102_v0 = vpop.f32.mrf.mxu2  ;;  %v1328_v9 = vpop.f32.mrf.mxu0 }
 0x187   : > { %v1103_v37 = vadd.f32 %v1102_v0, %v990_v33 }
 0x188   : > { %v992_v40 = vpop.f32.mrf.mxu1  ;;  %v1215_v10 = vpop.f32.mrf.mxu3 }
 0x189   : > { %v1216_v49 = vadd.f32 %v1215_v10, %v1103_v37  ;;  %1731 = vmatmul.f32.gmra.mxu0 %v2720_v20  ;;  %v993_v52 = vadd.f32 %v992_v40, %v2857_v62 }
 0x18b   : > { %v3324_v18 = vadd.f32 %v1328_v9, %v1216_v49  ;;  %1395 = vmatmul.f32.gmra.mxu1 %v2698_v42  ;;  %1508 = vmatmul.f32.gmra.mxu2 %v2144_v3  ;;  %v2145_v42 = vld [vmem:[%s2271_s9 + $0x68] sm:$0xff] }
 0x18d   : > { %1621 = vmatmul.f32.gmra.mxu3 %v2713_v13 }
 0x18e   : > { %v1105_v26 = vpop.f32.mrf.mxu2  ;;  %v1331_v32 = vpop.f32.mrf.mxu0 }
 0x18f   : > { %v1106_v63 = vadd.f32 %v1105_v26, %v993_v52 }
 0x190   : > { %v995_v43 = vpop.f32.mrf.mxu1  ;;  %v1218_v44 = vpop.f32.mrf.mxu3 }
 0x191   : > { %v1219_v53 = vadd.f32 %v1218_v44, %v1106_v63  ;;  %1734 = vmatmul.f32.gmra.mxu0 %v2737_v28  ;;  %v996_v24 = vadd.f32 %v995_v43, %v2884_v16  ;;  %v3658_v44 = vld [vmem:[#allocation7_spill] sm:$0xff] }
 0x193   : > { %v3331_v56 = vadd.f32 %v1331_v32, %v1219_v53  ;;  %1398 = vmatmul.f32.gmra.mxu1 %v2720_v20  ;;  %1511 = vmatmul.f32.gmra.mxu2 %v2145_v42  ;;  %v2146_v20 = vld [vmem:[%s2271_s9 + $0x78] sm:$0xff]  ;;  %v3659_v42 = vld [vmem:[#allocation2_spill] sm:$0xff] }
 0x195   : > { %1624 = vmatmul.f32.gmra.mxu3 %v2732_v25 }
 0x196   : > { %v1108_v13 = vpop.f32.mrf.mxu2  ;;  %v1334_v62 = vpop.f32.mrf.mxu0 }
 0x197   : > { %v1109_v6 = vadd.f32 %v1108_v13, %v996_v24 }
 0x198   : > { %v998_v59 = vpop.f32.mrf.mxu1  ;;  %v1221_v34 = vpop.f32.mrf.mxu3 }
 0x199   : > { %v1222_v54 = vadd.f32 %v1221_v34, %v1109_v6  ;;  %1737 = vmatmul.f32.gmra.mxu0 %v2767_v48  ;;  %v999_v0 = vadd.f32 %v998_v59, %v2910_v29  ;;  %v3657_v29 = vld [vmem:[#allocation3_spill] sm:$0xff] }
 0x19b   : > { %v3338_v33 = vadd.f32 %v1334_v62, %v1222_v54  ;;  %1401 = vmatmul.f32.gmra.mxu1 %v2737_v28  ;;  %1514 = vmatmul.f32.gmra.mxu2 %v2146_v20  ;;  %v2147_v28 = vld [vmem:[%s2271_s9 + $0x80] sm:$0xff] }
 0x19c   : > { %v3661_v20 = vld [vmem:[#allocation10_spill] sm:$0xff] }
 0x19d   : > { %1627 = vmatmul.f32.gmra.mxu3 %v2756_v38 }
 0x19e   : > { %v1111_v25 = vpop.f32.mrf.mxu2  ;;  %v1337_v16 = vpop.f32.mrf.mxu0 }
 0x19f   : > { %v1112_v9 = vadd.f32 %v1111_v25, %v999_v0  ;;  %v3662_v25 = vld [vmem:[#allocation4_spill] sm:$0xff] }
 0x1a0   : > { %v1001_v37 = vpop.f32.mrf.mxu1  ;;  %v1224_v40 = vpop.f32.mrf.mxu3 }
 0x1a1   : > { %v1225_v10 = vadd.f32 %v1224_v40, %v1112_v9  ;;  %1740 = vmatmul.f32.gmra.mxu0 %v2790_v46  ;;  %v1002_v3 = vadd.f32 %v1001_v37, %v2937_v35  ;;  %v3660_v35 = vld [vmem:[#allocation5_spill] sm:$0xff]  ;;  %v3663_v9 = vld [vmem:[#allocation8_spill] sm:$0xff] }
 0x1a3   : > { %v3345_v49 = vadd.f32 %v1337_v16, %v1225_v10  ;;  %1404 = vmatmul.f32.gmra.mxu1 %v2767_v48  ;;  %1517 = vmatmul.f32.gmra.mxu2 %v2147_v28  ;;  %v2148_v48 = vld [vmem:[%s2271_s9 + $0x90] sm:$0xff] }
 0x1a5   : > { %1630 = vmatmul.f32.gmra.mxu3 %v3657_v29 }
 0x1a6   : > { %v1114_v38 = vpop.f32.mrf.mxu2  ;;  %v1340_v52 = vpop.f32.mrf.mxu0 }
 0x1a7   : > { %v1115_v26 = vadd.f32 %v1114_v38, %v1002_v3  ;;  %v3664_v38 = vld [vmem:[#allocation13_spill] sm:$0xff] }
 0x1a8   : > { %v1004_v32 = vpop.f32.mrf.mxu1  ;;  %v1227_v63 = vpop.f32.mrf.mxu3 }
 0x1a9   : > { %v1228_v43 = vadd.f32 %v1227_v63, %v1115_v26  ;;  %1743 = vmatmul.f32.gmra.mxu0 %v3658_v44  ;;  %v1005_v24 = vadd.f32 %v1004_v32, %v3659_v42  ;;  %v2150_v26 = vld [vmem:[%s2271_s9 + $0xa8] sm:$0xff]  ;;  %v3665_v32 = vld [vmem:[#allocation6_spill] sm:$0xff] }
 0x1ab   : > { %v3352_v53 = vadd.f32 %v1340_v52, %v1228_v43  ;;  %1407 = vmatmul.f32.gmra.mxu1 %v2790_v46  ;;  %1520 = vmatmul.f32.gmra.mxu2 %v2148_v48  ;;  %v2149_v46 = vld [vmem:[%s2271_s9 + $0x98] sm:$0xff]  ;;  %v3666_v43 = vld [vmem:[#allocation11_spill] sm:$0xff] }
 0x1ad   : > { %1633 = vmatmul.f32.gmra.mxu3 %v3660_v35 }
 0x1ae   : > { %v1117_v13 = vpop.f32.mrf.mxu2  ;;  %v1343_v62 = vpop.f32.mrf.mxu0 }
 0x1af   : > { %v1118_v6 = vadd.f32 %v1117_v13, %v1005_v24 }
 0x1b0   : > { %v1007_v59 = vpop.f32.mrf.mxu1  ;;  %v1230_v34 = vpop.f32.mrf.mxu3 }
 0x1b1   : > { %v1231_v54 = vadd.f32 %v1230_v34, %v1118_v6  ;;  %1746 = vmatmul.f32.gmra.mxu0 %v3661_v20  ;;  %v1008_v16 = vadd.f32 %v1007_v59, %v3662_v25  ;;  %v2151_v59 = vld [vmem:[%s2271_s9 + $0xb0] sm:$0xff]  ;;  %v3668_v34 = vld [vmem:[#allocation9_spill] sm:$0xff] }
 0x1b3   : > { %v3359_v0 = vadd.f32 %v1343_v62, %v1231_v54  ;;  %1410 = vmatmul.f32.gmra.mxu1 %v3658_v44  ;;  %1523 = vmatmul.f32.gmra.mxu2 %v2149_v46  ;;  %v3667_v62 = vld [vmem:[#allocation16_spill] sm:$0xff] }
 0x1b5   : > { %1636 = vmatmul.f32.gmra.mxu3 %v3663_v9 }
 0x1b6   : > { %v1120_v37 = vpop.f32.mrf.mxu2  ;;  %v1346_v40 = vpop.f32.mrf.mxu0 }
 0x1b7   : > { %v1121_v10 = vadd.f32 %v1120_v37, %v1008_v16 }
 0x1b8   : > { %v1010_v28 = vpop.f32.mrf.mxu1  ;;  %v1233_v3 = vpop.f32.mrf.mxu3 }
 0x1b9   : > { %v1234_v29 = vadd.f32 %v1233_v3, %v1121_v10  ;;  %1749 = vmatmul.f32.gmra.mxu0 %v3664_v38  ;;  %v1011_v63 = vadd.f32 %v1010_v28, %v3665_v32  ;;  %v3670_v10 = vld [vmem:[#allocation19_spill] sm:$0xff]  ;;  %v2152_v3 = vld [vmem:[%s2271_s9 + $0xc0] sm:$0xff] }
 0x1bb   : > { %v3366_v52 = vadd.f32 %v1346_v40, %v1234_v29  ;;  %1413 = vmatmul.f32.gmra.mxu1 %v3661_v20  ;;  %1526 = vmatmul.f32.gmra.mxu2 %v2150_v26  ;;  %v3669_v20 = vld [vmem:[#allocation14_spill] sm:$0xff]  ;;  %v3671_v29 = vld [vmem:[#allocation12_spill] sm:$0xff]  ;;  %v3672_v26 = vld [vmem:[#allocation17_spill] sm:$0xff] }
 0x1bd   : > { %1639 = vmatmul.f32.gmra.mxu3 %v3666_v43 }
 0x1be   : > { %v1123_v44 = vpop.f32.mrf.mxu2  ;;  %v1349_v48 = vpop.f32.mrf.mxu0 }
 0x1bf   : > { %v1124_v42 = vadd.f32 %v1123_v44, %v1011_v63 }
 0x1c0   : > { %v1013_v24 = vpop.f32.mrf.mxu1  ;;  %v1236_v35 = vpop.f32.mrf.mxu3 }
 0x1c1   : > { %v1237_v13 = vadd.f32 %v1236_v35, %v1124_v42  ;;  %1752 = vmatmul.f32.gmra.mxu0 %v3667_v62  ;;  %v1014_v54 = vadd.f32 %v1013_v24, %v3668_v34  ;;  %v3673_v24 = vld [vmem:[#allocation21_spill] sm:$0xff] }
 0x1c3   : > { %v3373_v6 = vadd.f32 %v1349_v48, %v1237_v13  ;;  %1416 = vmatmul.f32.gmra.mxu1 %v3664_v38  ;;  %1529 = vmatmul.f32.gmra.mxu2 %v2151_v59  ;;  %v2153_v13 = vld [vmem:[%s2271_s9 + $0xc8] sm:$0xff] }
 0x1c5   : > { %1642 = vmatmul.f32.gmra.mxu3 %v3669_v20 }
 0x1c6   : > { %v1126_v46 = vpop.f32.mrf.mxu2  ;;  %v1352_v25 = vpop.f32.mrf.mxu0 }
 0x1c7   : > { %v1127_v16 = vadd.f32 %v1126_v46, %v1014_v54 }
 0x1c8   : > { %v1016_v9 = vpop.f32.mrf.mxu1  ;;  %v1239_v37 = vpop.f32.mrf.mxu3 }
 0x1c9   : > { %v1240_v40 = vadd.f32 %v1239_v37, %v1127_v16  ;;  %1755 = vmatmul.f32.gmra.mxu0 %v3670_v10  ;;  %v1017_v38 = vadd.f32 %v1016_v9, %v3671_v29  ;;  %v2154_v37 = vld [vmem:[%s2271_s9 + $0xd8] sm:$0xff] }
 0x1cb   : > { %v3380_v28 = vadd.f32 %v1352_v25, %v1240_v40  ;;  %1419 = vmatmul.f32.gmra.mxu1 %v3667_v62  ;;  %1532 = vmatmul.f32.gmra.mxu2 %v2152_v3  ;;  %v3674_v62 = vld [vmem:[#allocation15_spill] sm:$0xff]  ;;  %v3675_v40 = vld [vmem:[#allocation18_spill] sm:$0xff] }
 0x1cd   : > { %1645 = vmatmul.f32.gmra.mxu3 %v3672_v26 }
 0x1ce   : > { %v1129_v32 = vpop.f32.mrf.mxu2  ;;  %v1355_v63 = vpop.f32.mrf.mxu0 }
 0x1cf   : > { %v1130_v43 = vadd.f32 %v1129_v32, %v1017_v38 }
 0x1d0   : > { %v1019_v44 = vpop.f32.mrf.mxu1  ;;  %v1242_v48 = vpop.f32.mrf.mxu3 }
 0x1d1   : > { %v1243_v42 = vadd.f32 %v1242_v48, %v1130_v43  ;;  %1758 = vmatmul.f32.gmra.mxu0 %v3673_v24  ;;  %v1020_v59 = vadd.f32 %v1019_v44, %v3674_v62  ;;  %v2155_v43 = vld [vmem:[%s2271_s9 + $0xe0] sm:$0xff]  ;;  %v3676_v44 = vld [vmem:[#allocation20_spill] sm:$0xff] }
 0x1d3   : > { %v3387_v35 = vadd.f32 %v1355_v63, %v1243_v42  ;;  %1422 = vmatmul.f32.gmra.mxu1 %v3670_v10  ;;  %1535 = vmatmul.f32.gmra.mxu2 %v2153_v13 }
 0x1d5   : > { %1648 = vmatmul.f32.gmra.mxu3 %v2942_v8 }
 0x1d6   : > { %v1132_v34 = vpop.f32.mrf.mxu2  ;;  %v1358_v54 = vpop.f32.mrf.mxu0 }
 0x1d7   : > { %v1133_v20 = vadd.f32 %v1132_v34, %v1020_v59 }
 0x1d8   : > { %v1022_v46 = vpop.f32.mrf.mxu1  ;;  %v1245_v25 = vpop.f32.mrf.mxu3 }
 0x1d9   : > { %v1246_v16 = vadd.f32 %v1245_v25, %v1133_v20  ;;  %1761 = vmatmul.f32.gmra.mxu0 %v2970_v23  ;;  %v1023_v10 = vadd.f32 %v1022_v46, %v3675_v40 }
 0x1db   : > { %v3394_v9 = vadd.f32 %v1358_v54, %v1246_v16  ;;  %1425 = vmatmul.f32.gmra.mxu1 %v3673_v24  ;;  %1538 = vmatmul.f32.gmra.mxu2 %v2154_v37  ;;  %v3677_v54 = vld [vmem:[#allocation22_spill] sm:$0xff] }
 0x1dd   : > { %1651 = vmatmul.f32.gmra.mxu3 %v2963_v7 }
 0x1de   : > { %v1135_v8 = vpop.f32.mrf.mxu2  ;;  %v1361_v3 = vpop.f32.mrf.mxu0 }
 0x1df   : > { %v1136_v29 = vadd.f32 %v1135_v8, %v1023_v10  ;;  %v3678_v10 = vld [vmem:[#allocation23_spill] sm:$0xff] }
 0x1e0   : > { %v1025_v38 = vpop.f32.mrf.mxu1  ;;  %v1248_v26 = vpop.f32.mrf.mxu3 }
 0x1e1   : > { %v1249_v32 = vadd.f32 %v1248_v26, %v1136_v29  ;;  %1764 = vmatmul.f32.gmra.mxu0 %v2988_v47  ;;  %v1026_v48 = vadd.f32 %v1025_v38, %v3676_v44 }
 0x1e3   : > { %v3401_v63 = vadd.f32 %v1361_v3, %v1249_v32  ;;  %1428 = vmatmul.f32.gmra.mxu1 %v2970_v23  ;;  %1541 = vmatmul.f32.gmra.mxu2 %v2155_v43  ;;  %v2156_v23 = vld [vmem:[%s2271_s9 + $0xf0] sm:$0xff] }
 0x1e5   : > { %1654 = vmatmul.f32.gmra.mxu3 %v2985_v45 }
 0x1e6   : > { %v1138_v7 = vpop.f32.mrf.mxu2  ;;  %v1364_v42 = vpop.f32.mrf.mxu0 }
 0x1e7   : > { %v1139_v24 = vadd.f32 %v1138_v7, %v1026_v48  ;;  %v3679_v7 = vld [vmem:[#allocation24_spill] sm:$0xff] }
 0x1e8   : > { %v1251_v13 = vpop.f32.mrf.mxu3  ;;  %v1384_v62 = vpop.f32.mrf.mxu1 }
 0x1e9   : > { %v1252_v59 = vadd.f32 %v1251_v13, %v1139_v24  ;;  %1767 = vmatmul.f32.gmra.mxu0 %v3013_v60  ;;  %v1385_v20 = vadd.f32 %v1384_v62, %v3677_v54  ;;  %v3680_v13 = vld [vmem:[#allocation26_spill] sm:$0xff] }
 0x1eb   : > { %v3408_v34 = vadd.f32 %v1364_v42, %v1252_v59  ;;  %1431 = vmatmul.f32.gmra.mxu1 %v2988_v47  ;;  %1544 = vmatmul.f32.gmra.mxu2 %v2156_v23 }
 0x1ed   : > { %1657 = vmatmul.f32.gmra.mxu3 %v3006_v58  ;;  %v2157_v58 = vld [vmem:[%s2271_s9 + $0xf8] sm:$0xff] }
 0x1ee   : > { %v1497_v45 = vpop.f32.mrf.mxu2  ;;  %v1723_v46 = vpop.f32.mrf.mxu0 }
 0x1ef   : > { %v1498_v25 = vadd.f32 %v1497_v45, %v1385_v20 }
 0x1f0   : > { %v1387_v16 = vpop.f32.mrf.mxu1  ;;  %v1610_v37 = vpop.f32.mrf.mxu3 }
 0x1f1   : > { %v1611_v40 = vadd.f32 %v1610_v37, %v1498_v25  ;;  %1770 = vmatmul.f32.gmra.mxu0 %v3031_v15  ;;  %v1388_v8 = vadd.f32 %v1387_v16, %v3678_v10  ;;  %v2159_v16 = vld [vmem:[%s2271_s9 + $0x110] sm:$0xff]  ;;  %v3682_v37 = vld [vmem:[#allocation25_spill] sm:$0xff] }
 0x1f3   : > { %v1724_v47 = vadd.f32 %v1723_v46, %v1611_v40  ;;  %1434 = vmatmul.f32.gmra.mxu1 %v3013_v60  ;;  %1547 = vmatmul.f32.gmra.mxu2 %v2157_v58  ;;  %v2158_v60 = vld [vmem:[%s2271_s9 + $0x108] sm:$0xff] }
 0x1f5   : > { %1819 = vst [vmem:[%s3419_s18] sm:$0xff] %v1724_v47  ;;  %1660 = vmatmul.f32.gmra.mxu3 %v3028_v17  ;;  %v1889_v48 = vmul.f32 %v1724_v47, %v1724_v47 }
 0x1f6   : > { %v1500_v3 = vpop.f32.mrf.mxu2  ;;  %v1726_v29 = vpop.f32.mrf.mxu0 }
 0x1f7   : > { %v1501_v38 = vadd.f32 %v1500_v3, %v1388_v8 }
 0x1f8   : > { %v1390_v26 = vpop.f32.mrf.mxu1  ;;  %v1613_v32 = vpop.f32.mrf.mxu3 }
 0x1f9   : > { %v1614_v43 = vadd.f32 %v1613_v32, %v1501_v38  ;;  %1773 = vmatmul.f32.gmra.mxu0 %v3056_v11  ;;  %v1391_v42 = vadd.f32 %v1390_v26, %v3679_v7  ;;  %v3685_v7 = vld [vmem:[#allocation32_spill] sm:$0xff] }
 0x1fb   : > { %v1727_v44 = vadd.f32 %v1726_v29, %v1614_v43  ;;  %1437 = vmatmul.f32.gmra.mxu1 %v3031_v15  ;;  %1550 = vmatmul.f32.gmra.mxu2 %v2158_v60  ;;  %v3681_v15 = vld [vmem:[#allocation28_spill] sm:$0xff]  ;;  %v3683_v43 = vld [vmem:[#allocation29_spill] sm:$0xff] }
 0x1fd   : > { %1820 = vst [vmem:[%s3419_s18 + $0x8] sm:$0xff] %v1727_v44  ;;  %v1851_v24 = vadd.f32 %v1727_v44, %v1724_v47  ;;  %v1890_v17 = vmul.f32 %v1727_v44, %v1727_v44  ;;  %1663 = vmatmul.f32.gmra.mxu3 %v3680_v13  ;;  %v3684_v44 = vld [vmem:[#allocation27_spill] sm:$0xff] }
 0x1fe   : > { %v1503_v62 = vpop.f32.mrf.mxu2  ;;  %v1729_v59 = vpop.f32.mrf.mxu0 }
 0x1ff   : > { %v1921_v23 = vadd.f32 %v1890_v17, %v1889_v48  ;;  %v1504_v54 = vadd.f32 %v1503_v62, %v1391_v42 }
 0x200   : > { %v1393_v20 = vpop.f32.mrf.mxu1  ;;  %v1616_v45 = vpop.f32.mrf.mxu3 }
 0x201   : > { %v1617_v46 = vadd.f32 %v1616_v45, %v1504_v54  ;;  %1776 = vmatmul.f32.gmra.mxu0 %v3681_v15  ;;  %v1394_v40 = vadd.f32 %v1393_v20, %v3682_v37  ;;  %v3686_v54 = vld [vmem:[#allocation34_spill] sm:$0xff] }
 0x202   : > { %v3687_v45 = vld [vmem:[#allocation30_spill] sm:$0xff] }
 0x203   : > { %v1730_v25 = vadd.f32 %v1729_v59, %v1617_v46  ;;  %1440 = vmatmul.f32.gmra.mxu1 %v3056_v11  ;;  %1553 = vmatmul.f32.gmra.mxu2 %v2159_v16  ;;  %v3688_v46 = vld [vmem:[#allocation31_spill] sm:$0xff] }
 0x205   : > { %1821 = vst [vmem:[%s3419_s18 + $0x10] sm:$0xff] %v1730_v25  ;;  %v1852_v47 = vadd.f32 %v1851_v24, %v1730_v25  ;;  %v1891_v58 = vmul.f32 %v1730_v25, %v1730_v25  ;;  %1666 = vmatmul.f32.gmra.mxu3 %v3071_v22 }
 0x206   : > { %v1506_v10 = vpop.f32.mrf.mxu2  ;;  %v1732_v8 = vpop.f32.mrf.mxu0 }
 0x207   : > { %v1922_v3 = vadd.f32 %v1921_v23, %v1891_v58  ;;  %v1507_v29 = vadd.f32 %v1506_v10, %v1394_v40 }
 0x208   : > { %v1396_v38 = vpop.f32.mrf.mxu1  ;;  %v1619_v26 = vpop.f32.mrf.mxu3 }
 0x209   : > { %v1620_v32 = vadd.f32 %v1619_v26, %v1507_v29  ;;  %1779 = vmatmul.f32.gmra.mxu0 %v3105_v51  ;;  %v1397_v60 = vadd.f32 %v1396_v38, %v3684_v44  ;;  %v3689_v29 = vld [vmem:[#allocation35_spill] sm:$0xff]  ;;  %v3690_v38 = vld [vmem:[#allocation33_spill] sm:$0xff] }
 0x20b   : > { %v1733_v11 = vadd.f32 %v1732_v8, %v1620_v32  ;;  %1443 = vmatmul.f32.gmra.mxu1 %v3681_v15  ;;  %1556 = vmatmul.f32.gmra.mxu2 %v3683_v43 }
 0x20d   : > { %1822 = vst [vmem:[%s3419_s18 + $0x18] sm:$0xff] %v1733_v11  ;;  %v1853_v48 = vadd.f32 %v1852_v47, %v1733_v11  ;;  %v1892_v22 = vmul.f32 %v1733_v11, %v1733_v11  ;;  %1669 = vmatmul.f32.gmra.mxu3 %v3685_v7  ;;  %v3691_v11 = vld [vmem:[#allocation38_spill] sm:$0xff] }
 0x20e   : > { %v1509_v42 = vpop.f32.mrf.mxu2  ;;  %v1735_v24 = vpop.f32.mrf.mxu0 }
 0x20f   : > { %v1923_v17 = vadd.f32 %v1922_v3, %v1892_v22  ;;  %v1510_v13 = vadd.f32 %v1509_v42, %v1397_v60 }
 0x210   : > { %v1399_v62 = vpop.f32.mrf.mxu1  ;;  %v1622_v59 = vpop.f32.mrf.mxu3 }
 0x211   : > { %v1623_v23 = vadd.f32 %v1622_v59, %v1510_v13  ;;  %1782 = vmatmul.f32.gmra.mxu0 %v3686_v54  ;;  %v1400_v15 = vadd.f32 %v1399_v62, %v3688_v46  ;;  %v3693_v13 = vld [vmem:[#allocation36_spill] sm:$0xff]  ;;  %v3694_v62 = vld [vmem:[#allocation37_spill] sm:$0xff] }
 0x213   : > { %v1736_v20 = vadd.f32 %v1735_v24, %v1623_v23  ;;  %1446 = vmatmul.f32.gmra.mxu1 %v3105_v51  ;;  %1559 = vmatmul.f32.gmra.mxu2 %v3687_v45  ;;  %v3692_v24 = vld [vmem:[#allocation41_spill] sm:$0xff] }
 0x215   : > { %1823 = vst [vmem:[%s3419_s18 + $0x20] sm:$0xff] %v1736_v20  ;;  %v1854_v25 = vadd.f32 %v1853_v48, %v1736_v20  ;;  %v1893_v16 = vmul.f32 %v1736_v20, %v1736_v20  ;;  %1672 = vmatmul.f32.gmra.mxu3 %v3120_v31  ;;  %v3695_v20 = vld [vmem:[#allocation40_spill] sm:$0xff] }
 0x216   : > { %v1512_v37 = vpop.f32.mrf.mxu2  ;;  %v1738_v40 = vpop.f32.mrf.mxu0 }
 0x217   : > { %v1924_v47 = vadd.f32 %v1923_v17, %v1893_v16  ;;  %v1513_v58 = vadd.f32 %v1512_v37, %v1400_v15 }
 0x218   : > { %v1402_v10 = vpop.f32.mrf.mxu1  ;;  %v1625_v8 = vpop.f32.mrf.mxu3 }
 0x219   : > { %v1626_v3 = vadd.f32 %v1625_v8, %v1513_v58  ;;  %1785 = vmatmul.f32.gmra.mxu0 %v3154_v57  ;;  %v1403_v26 = vadd.f32 %v1402_v10, %v3690_v38  ;;  %v3697_v58 = vld [vmem:[#allocation42_spill] sm:$0xff]  ;;  %v3698_v10 = vld [vmem:[#allocation39_spill] sm:$0xff] }
 0x21b   : > { %v1739_v51 = vadd.f32 %v1738_v40, %v1626_v3  ;;  %1449 = vmatmul.f32.gmra.mxu1 %v3686_v54  ;;  %1562 = vmatmul.f32.gmra.mxu2 %v3689_v29 }
 0x21d   : > { %1824 = vst [vmem:[%s3419_s18 + $0x28] sm:$0xff] %v1739_v51  ;;  %v1855_v32 = vadd.f32 %v1854_v25, %v1739_v51  ;;  %v1894_v31 = vmul.f32 %v1739_v51, %v1739_v51  ;;  %1675 = vmatmul.f32.gmra.mxu3 %v3691_v11 }
 0x21e   : > { %v1515_v43 = vpop.f32.mrf.mxu2  ;;  %v1741_v44 = vpop.f32.mrf.mxu0 }
 0x21f   : > { %v1925_v60 = vadd.f32 %v1924_v47, %v1894_v31  ;;  %v1516_v48 = vadd.f32 %v1515_v43, %v1403_v26  ;;  %v3696_v47 = vld [vmem:[#allocation45_spill] sm:$0xff] }
 0x220   : > { %v1405_v22 = vpop.f32.mrf.mxu1  ;;  %v1628_v7 = vpop.f32.mrf.mxu3 }
 0x221   : > { %v1629_v42 = vadd.f32 %v1628_v7, %v1516_v48  ;;  %1788 = vmatmul.f32.gmra.mxu0 %v3692_v24  ;;  %v1406_v59 = vadd.f32 %v1405_v22, %v3694_v62  ;;  %v3700_v48 = vld [vmem:[#allocation44_spill] sm:$0xff] }
 0x223   : > { %v1742_v17 = vadd.f32 %v1741_v44, %v1629_v42  ;;  %1452 = vmatmul.f32.gmra.mxu1 %v3154_v57  ;;  %1565 = vmatmul.f32.gmra.mxu2 %v3693_v13 }
 0x225   : > { %1825 = vst [vmem:[%s3419_s18 + $0x30] sm:$0xff] %v1742_v17  ;;  %v1856_v23 = vadd.f32 %v1855_v32, %v1742_v17  ;;  %v1895_v54 = vmul.f32 %v1742_v17, %v1742_v17  ;;  %1678 = vmatmul.f32.gmra.mxu3 %v3695_v20 }
 0x226   : > { %v1518_v45 = vpop.f32.mrf.mxu2  ;;  %v1744_v46 = vpop.f32.mrf.mxu0 }
 0x227   : > { %v1926_v15 = vadd.f32 %v1925_v60, %v1895_v54  ;;  %v1519_v25 = vadd.f32 %v1518_v45, %v1406_v59  ;;  %v3699_v60 = vld [vmem:[#allocation43_spill] sm:$0xff]  ;;  %v3701_v54 = vld [vmem:[#allocation50_spill] sm:$0xff] }
 0x228   : > { %v1408_v16 = vpop.f32.mrf.mxu1  ;;  %v1631_v37 = vpop.f32.mrf.mxu3  ;;  %v3702_v45 = vld [vmem:[#allocation47_spill] sm:$0xff] }
 0x229   : > { %v1632_v40 = vadd.f32 %v1631_v37, %v1519_v25  ;;  %1791 = vmatmul.f32.gmra.mxu0 %v3696_v47  ;;  %v1409_v8 = vadd.f32 %v1408_v16, %v3698_v10 }
 0x22b   : > { %v1745_v57 = vadd.f32 %v1744_v46, %v1632_v40  ;;  %1455 = vmatmul.f32.gmra.mxu1 %v3692_v24  ;;  %1568 = vmatmul.f32.gmra.mxu2 %v3697_v58  ;;  %v3703_v46 = vld [vmem:[#allocation46_spill] sm:$0xff] }
 0x22d   : > { %1826 = vst [vmem:[%s3419_s18 + $0x38] sm:$0xff] %v1745_v57  ;;  %v1857_v3 = vadd.f32 %v1856_v23, %v1745_v57  ;;  %v1896_v51 = vmul.f32 %v1745_v57, %v1745_v57  ;;  %1681 = vmatmul.f32.gmra.mxu3 %v3196_v41 }
 0x22e   : > { %v1521_v29 = vpop.f32.mrf.mxu2  ;;  %v1747_v38 = vpop.f32.mrf.mxu0 }
 0x22f   : > { %v1927_v26 = vadd.f32 %v1926_v15, %v1896_v51  ;;  %v1522_v32 = vadd.f32 %v1521_v29, %v1409_v8  ;;  %v3704_v8 = vld [vmem:[#allocation48_spill] sm:$0xff] }
 0x230   : > { %v1411_v31 = vpop.f32.mrf.mxu1  ;;  %v1634_v11 = vpop.f32.mrf.mxu3 }
 0x231   : > { %v1635_v43 = vadd.f32 %v1634_v11, %v1522_v32  ;;  %1794 = vmatmul.f32.gmra.mxu0 %v3221_v2  ;;  %v1412_v22 = vadd.f32 %v1411_v31, %v3700_v48  ;;  %v613_v48 = vrot.slane %v3258_v27, 2 }
 0x233   : > { %v1748_v44 = vadd.f32 %v1747_v38, %v1635_v43  ;;  %1458 = vmatmul.f32.gmra.mxu1 %v3696_v47  ;;  %1571 = vmatmul.f32.gmra.mxu2 %v3699_v60  ;;  %v612_v60 = vrot.slane %v3264_v19, 2 }
 0x235   : > { %1827 = vst [vmem:[%s3419_s18 + $0x40] sm:$0xff] %v1748_v44  ;;  %v1858_v7 = vadd.f32 %v1857_v3, %v1748_v44  ;;  %v1897_v41 = vmul.f32 %v1748_v44, %v1748_v44  ;;  %1684 = vmatmul.f32.gmra.mxu3 %v3218_v61  ;;  %v3705_v3 = vld [vmem:[#allocation49_spill] sm:$0xff] }
 0x236   : > { %v1524_v42 = vpop.f32.mrf.mxu2  ;;  %v1750_v24 = vpop.f32.mrf.mxu0 }
 0x237   : > { %v1928_v17 = vadd.f32 %v1927_v26, %v1897_v41  ;;  %v1525_v13 = vadd.f32 %v1524_v42, %v1412_v22 }
 0x238   : > { %v1414_v62 = vpop.f32.mrf.mxu1  ;;  %v1637_v59 = vpop.f32.mrf.mxu3 }
 0x239   : > { %v1638_v23 = vadd.f32 %v1637_v59, %v1525_v13  ;;  %1797 = vmatmul.f32.gmra.mxu0 %v3701_v54  ;;  %v1415_v15 = vadd.f32 %v1414_v62, %v3703_v46  ;;  %v614_v13 = vsel %vm531_vm1, %v612_v60, %v613_v48  ;;  %v3707_v46 = vld [vmem:[#allocation52_spill] sm:$0xff] }
 0x23b   : > { %v1751_v20 = vadd.f32 %v1750_v24, %v1638_v23  ;;  %1461 = vmatmul.f32.gmra.mxu1 %v3221_v2  ;;  %1574 = vmatmul.f32.gmra.mxu2 %v3702_v45  ;;  %v347_v45 = vld [vmem:[%s2271_s9 + $0x198] sm:$0xff] }
 0x23d   : > { %1828 = vst [vmem:[%s3419_s18 + $0x48] sm:$0xff] %v1751_v20  ;;  %v1859_v25 = vadd.f32 %v1858_v7, %v1751_v20  ;;  %v1898_v61 = vmul.f32 %v1751_v20, %v1751_v20  ;;  %1687 = vmatmul.f32.gmra.mxu3 %v3239_v1  ;;  %v3706_v7 = vld [vmem:[#allocation51_spill] sm:$0xff] }
 0x23e   : > { %v1527_v16 = vpop.f32.mrf.mxu2  ;;  %v1753_v37 = vpop.f32.mrf.mxu0 }
 0x23f   : > { %v1929_v40 = vadd.f32 %v1928_v17, %v1898_v61  ;;  %v1528_v47 = vadd.f32 %v1527_v16, %v1415_v15 }
 0x240   : > { %v1417_v57 = vpop.f32.mrf.mxu1  ;;  %v1640_v58 = vpop.f32.mrf.mxu3 }
 0x241   : > { %v1641_v10 = vadd.f32 %v1640_v58, %v1528_v47  ;;  %1800 = vmatmul.f32.gmra.mxu0 %v3261_v39  ;;  %v1418_v51 = vadd.f32 %v1417_v57, %v3705_v3 }
 0x243   : > { %v1754_v2 = vadd.f32 %v1753_v37, %v1641_v10  ;;  %1464 = vmatmul.f32.gmra.mxu1 %v3701_v54  ;;  %1577 = vmatmul.f32.gmra.mxu2 %v3704_v8 }
 0x245   : > { %1829 = vst [vmem:[%s3419_s18 + $0x50] sm:$0xff] %v1754_v2  ;;  %v1860_v29 = vadd.f32 %v1859_v25, %v1754_v2  ;;  %v1899_v38 = vmul.f32 %v1754_v2, %v1754_v2  ;;  %1690 = vmatmul.f32.gmra.mxu3 %v3255_v55  ;;  %v617_v2 = vrot.slane %v347_v45, 2 }
 0x246   : > { %v1530_v1 = vpop.f32.mrf.mxu2  ;;  %v1756_v26 = vpop.f32.mrf.mxu0 }
 0x247   : > { %v1930_v32 = vadd.f32 %v1929_v40, %v1899_v38  ;;  %v1531_v31 = vadd.f32 %v1530_v1, %v1418_v51  ;;  %v490_v40 = vrot.slane %v347_v45, 1 }
 0x248   : > { %v1420_v11 = vpop.f32.mrf.mxu1  ;;  %v1643_v43 = vpop.f32.mrf.mxu3 }
 0x249   : > { %v1644_v44 = vadd.f32 %v1643_v43, %v1531_v31  ;;  %1803 = vmatmul.f32.gmra.mxu0 %v3282_v30  ;;  %v1421_v55 = vadd.f32 %v1420_v11, %v3706_v7 }
 0x24b   : > { %v1757_v22 = vadd.f32 %v1756_v26, %v1644_v44  ;;  %1467 = vmatmul.f32.gmra.mxu1 %v3261_v39  ;;  %1580 = vmatmul.f32.gmra.mxu2 %v3264_v19  ;;  %v615_v19 = vrot.slane %v3279_v4, 2 }
 0x24d   : > { %1830 = vst [vmem:[%s3419_s18 + $0x58] sm:$0xff] %v1757_v22  ;;  %v1861_v41 = vadd.f32 %v1860_v29, %v1757_v22  ;;  %v1900_v42 = vmul.f32 %v1757_v22, %v1757_v22  ;;  %1693 = vmatmul.f32.gmra.mxu3 %v3276_v21  ;;  %v348_v21 = vld [vmem:[%s2271_s9 + $0x1a0] sm:$0xff]  ;;  %v616_v4 = vsel %vm531_vm1, %v613_v48, %v615_v19  ;;  %v3708_v29 = vld [vmem:[#allocation53_spill] sm:$0xff] }
 0x24e   : > { %v1533_v24 = vpop.f32.mrf.mxu2  ;;  %v1759_v17 = vpop.f32.mrf.mxu0  ;;  %v491_v47 = vrot.slane %v348_v21, 1  ;;  %v618_v3 = vrot.slane %v348_v21, 2 }
 0x24f   : > { %v1931_v62 = vadd.f32 %v1930_v32, %v1900_v42  ;;  %v1534_v59 = vadd.f32 %v1533_v24, %v1421_v55 }
 0x250   : > { %v1423_v23 = vpop.f32.mrf.mxu1  ;;  %v1646_v39 = vpop.f32.mrf.mxu3  ;;  %v492_v8 = vsel %vm404_vm0, %v490_v40, %v491_v47  ;;  %v619_v43 = vsel %vm531_vm1, %v617_v2, %v618_v3 }
 0x251   : > { %v1647_v54 = vadd.f32 %v1646_v39, %v1534_v59  ;;  %1806 = vmatmul.f32.gmra.mxu0 %v614_v13  ;;  %v1424_v15 = vadd.f32 %v1423_v23, %v3707_v46 }
 0x253   : > { %v1760_v20 = vadd.f32 %v1759_v17, %v1647_v54  ;;  %1470 = vmatmul.f32.gmra.mxu1 %v3282_v30  ;;  %1583 = vmatmul.f32.gmra.mxu2 %v3258_v27 }
 0x255   : > { %1831 = vst [vmem:[%s3419_s18 + $0x60] sm:$0xff] %v1760_v20  ;;  %v1862_v25 = vadd.f32 %v1861_v41, %v1760_v20  ;;  %v1901_v61 = vmul.f32 %v1760_v20, %v1760_v20  ;;  %1696 = vmatmul.f32.gmra.mxu3 %v3293_v36  ;;  %v349_v36 = vld [vmem:[%s2271_s9 + $0x1a8] sm:$0x3] }
 0x256   : > { %v1536_v16 = vpop.f32.mrf.mxu2  ;;  %v1762_v37 = vpop.f32.mrf.mxu0  ;;  %v493_v11 = vrot.slane %v349_v36, 1  ;;  %v620_v41 = vrot.slane %v349_v36, 2 }
 0x257   : > { %v1932_v30 = vadd.f32 %v1931_v62, %v1901_v61  ;;  %v1537_v57 = vadd.f32 %v1536_v16, %v1424_v15 }
 0x258   : > { %v1426_v27 = vpop.f32.mrf.mxu1  ;;  %v1649_v58 = vpop.f32.mrf.mxu3  ;;  %v494_v55 = vsel %vm404_vm0, %v491_v47, %v493_v11  ;;  %v621_v23 = vsel %vm531_vm1, %v618_v3, %v620_v41 }
 0x259   : > { %v1650_v10 = vadd.f32 %v1649_v58, %v1537_v57  ;;  %1809 = vmatmul.f32.gmra.mxu0 %v616_v4  ;;  %v1427_v38 = vadd.f32 %v1426_v27, %v3708_v29 }
 0x25b   : > { %v1763_v51 = vadd.f32 %v1762_v37, %v1650_v10  ;;  %1473 = vmatmul.f32.gmra.mxu1 %v614_v13  ;;  %1586 = vmatmul.f32.gmra.mxu2 %v347_v45 }
 0x25d   : > { %1832 = vst [vmem:[%s3419_s18 + $0x68] sm:$0xff] %v1763_v51  ;;  %v1863_v1 = vadd.f32 %v1862_v25, %v1763_v51  ;;  %v1902_v26 = vmul.f32 %v1763_v51, %v1763_v51  ;;  %1699 = vmatmul.f32.gmra.mxu3 %v492_v8 }
 0x25e   : > { %v1539_v32 = vpop.f32.mrf.mxu2  ;;  %v1765_v31 = vpop.f32.mrf.mxu0 }
 0x25f   : > { %v1933_v44 = vadd.f32 %v1932_v30, %v1902_v26  ;;  %v1540_v60 = vadd.f32 %v1539_v32, %v1427_v38 }
 0x260   : > { %v1429_v48 = vpop.f32.mrf.mxu1  ;;  %v1652_v22 = vpop.f32.mrf.mxu3 }
 0x261   : > { %v1653_v7 = vadd.f32 %v1652_v22, %v1540_v60  ;;  %1812 = vmatmul.f32.gmra.mxu0 %v619_v43  ;;  %v1430_v24 = vadd.f32 %v1429_v48, %v3296_v14 }
 0x263   : > { %v1766_v42 = vadd.f32 %v1765_v31, %v1653_v7  ;;  %1476 = vmatmul.f32.gmra.mxu1 %v616_v4  ;;  %1589 = vmatmul.f32.gmra.mxu2 %v348_v21 }
 0x265   : > { %1833 = vst [vmem:[%s3419_s18 + $0x70] sm:$0xff] %v1766_v42  ;;  %v1864_v17 = vadd.f32 %v1863_v1, %v1766_v42  ;;  %v1903_v13 = vmul.f32 %v1766_v42, %v1766_v42  ;;  %1702 = vmatmul.f32.gmra.mxu3 %v494_v55 }
 0x266   : > { %v1542_v62 = vpop.f32.mrf.mxu2  ;;  %v1768_v59 = vpop.f32.mrf.mxu0 }
 0x267   : > { %v1934_v39 = vadd.f32 %v1933_v44, %v1903_v13  ;;  %v1543_v54 = vadd.f32 %v1542_v62, %v1430_v24 }
 0x268   : > { %v1432_v19 = vpop.f32.mrf.mxu1  ;;  %v1655_v20 = vpop.f32.mrf.mxu3 }
 0x269   : > { %v1656_v45 = vadd.f32 %v1655_v20, %v1543_v54  ;;  %1815 = vmatmul.f32.gmra.mxu0 %v621_v23  ;;  %v1433_v21 = vadd.f32 %v1432_v19, %v3303_v5 }
 0x26b   : > { %v1769_v46 = vadd.f32 %v1768_v59, %v1656_v45 }
 0x26d   : > { %1834 = vst [vmem:[%s3419_s18 + $0x78] sm:$0xff] %v1769_v46  ;;  %v1865_v14 = vadd.f32 %v1864_v17, %v1769_v46  ;;  %v1904_v15 = vmul.f32 %v1769_v46, %v1769_v46 }
 0x26e   : > { %v1545_v25 = vpop.f32.mrf.mxu2  ;;  %v1771_v61 = vpop.f32.mrf.mxu0 }
 0x26f   : > { %v1935_v16 = vadd.f32 %v1934_v39, %v1904_v15  ;;  %v1546_v37 = vadd.f32 %v1545_v25, %v1433_v21 }
 0x270   : > { %v1435_v40 = vpop.f32.mrf.mxu1  ;;  %v1658_v47 = vpop.f32.mrf.mxu3 }
 0x271   : > { %v1659_v4 = vadd.f32 %v1658_v47, %v1546_v37  ;;  %v1436_v57 = vadd.f32 %v1435_v40, %v3310_v50 }
 0x273   : > { %v1772_v30 = vadd.f32 %v1771_v61, %v1659_v4 }
 0x275   : > { %1835 = vst [vmem:[%s3419_s18 + $0x80] sm:$0xff] %v1772_v30  ;;  %v1866_v27 = vadd.f32 %v1865_v14, %v1772_v30  ;;  %v1905_v58 = vmul.f32 %v1772_v30, %v1772_v30 }
 0x276   : > { %v1548_v10 = vpop.f32.mrf.mxu2  ;;  %v1774_v2 = vpop.f32.mrf.mxu0 }
 0x277   : > { %v1936_v5 = vadd.f32 %v1935_v16, %v1905_v58  ;;  %v1549_v8 = vadd.f32 %v1548_v10, %v1436_v57 }
 0x278   : > { %v1438_v3 = vpop.f32.mrf.mxu1  ;;  %v1661_v51 = vpop.f32.mrf.mxu3 }
 0x279   : > { %v1662_v36 = vadd.f32 %v1661_v51, %v1549_v8  ;;  %v1439_v38 = vadd.f32 %v1438_v3, %v3317_v12 }
 0x27b   : > { %v1775_v29 = vadd.f32 %v1774_v2, %v1662_v36 }
 0x27d   : > { %1836 = vst [vmem:[%s3419_s18 + $0x88] sm:$0xff] %v1775_v29  ;;  %v1867_v1 = vadd.f32 %v1866_v27, %v1775_v29  ;;  %v1906_v26 = vmul.f32 %v1775_v29, %v1775_v29 }
 0x27e   : > { %v1551_v32 = vpop.f32.mrf.mxu2  ;;  %v1777_v31 = vpop.f32.mrf.mxu0 }
 0x27f   : > { %v1937_v50 = vadd.f32 %v1936_v5, %v1906_v26  ;;  %v1552_v11 = vadd.f32 %v1551_v32, %v1439_v38 }
 0x280   : > { %v1441_v43 = vpop.f32.mrf.mxu1  ;;  %v1664_v44 = vpop.f32.mrf.mxu3 }
 0x281   : > { %v1665_v60 = vadd.f32 %v1664_v44, %v1552_v11  ;;  %v1442_v22 = vadd.f32 %v1441_v43, %v3324_v18 }
 0x283   : > { %v1778_v48 = vadd.f32 %v1777_v31, %v1665_v60 }
 0x285   : > { %1837 = vst [vmem:[%s3419_s18 + $0x90] sm:$0xff] %v1778_v48  ;;  %v1868_v7 = vadd.f32 %v1867_v1, %v1778_v48  ;;  %v1907_v55 = vmul.f32 %v1778_v48, %v1778_v48 }
 0x286   : > { %v1554_v41 = vpop.f32.mrf.mxu2  ;;  %v1780_v42 = vpop.f32.mrf.mxu0 }
 0x287   : > { %v1938_v12 = vadd.f32 %v1937_v50, %v1907_v55  ;;  %v1555_v24 = vadd.f32 %v1554_v41, %v1442_v22 }
 0x288   : > { %v1444_v17 = vpop.f32.mrf.mxu1  ;;  %v1667_v13 = vpop.f32.mrf.mxu3 }
 0x289   : > { %v1668_v62 = vadd.f32 %v1667_v13, %v1555_v24  ;;  %v1445_v23 = vadd.f32 %v1444_v17, %v3331_v56 }
 0x28b   : > { %v1781_v59 = vadd.f32 %v1780_v42, %v1668_v62 }
 0x28d   : > { %1838 = vst [vmem:[%s3419_s18 + $0x98] sm:$0xff] %v1781_v59  ;;  %v1869_v39 = vadd.f32 %v1868_v7, %v1781_v59  ;;  %v1908_v54 = vmul.f32 %v1781_v59, %v1781_v59 }
 0x28e   : > { %v1557_v19 = vpop.f32.mrf.mxu2  ;;  %v1783_v20 = vpop.f32.mrf.mxu0 }
 0x28f   : > { %v1939_v18 = vadd.f32 %v1938_v12, %v1908_v54  ;;  %v1558_v45 = vadd.f32 %v1557_v19, %v1445_v23 }
 0x290   : > { %v1447_v46 = vpop.f32.mrf.mxu1  ;;  %v1670_v21 = vpop.f32.mrf.mxu3 }
 0x291   : > { %v1671_v14 = vadd.f32 %v1670_v21, %v1558_v45  ;;  %v1448_v25 = vadd.f32 %v1447_v46, %v3338_v33 }
 0x293   : > { %v1784_v15 = vadd.f32 %v1783_v20, %v1671_v14 }
 0x295   : > { %1839 = vst [vmem:[%s3419_s18 + $0xa0] sm:$0xff] %v1784_v15  ;;  %v1870_v61 = vadd.f32 %v1869_v39, %v1784_v15  ;;  %v1909_v16 = vmul.f32 %v1784_v15, %v1784_v15 }
 0x296   : > { %v1560_v37 = vpop.f32.mrf.mxu2  ;;  %v1786_v40 = vpop.f32.mrf.mxu0 }
 0x297   : > { %v1940_v56 = vadd.f32 %v1939_v18, %v1909_v16  ;;  %v1561_v47 = vadd.f32 %v1560_v37, %v1448_v25 }
 0x298   : > { %v1450_v4 = vpop.f32.mrf.mxu1  ;;  %v1673_v30 = vpop.f32.mrf.mxu3 }
 0x299   : > { %v1674_v57 = vadd.f32 %v1673_v30, %v1561_v47  ;;  %v1451_v58 = vadd.f32 %v1450_v4, %v3345_v49 }
 0x29b   : > { %v1787_v27 = vadd.f32 %v1786_v40, %v1674_v57 }
 0x29d   : > { %1840 = vst [vmem:[%s3419_s18 + $0xa8] sm:$0xff] %v1787_v27  ;;  %v1871_v10 = vadd.f32 %v1870_v61, %v1787_v27  ;;  %v1910_v2 = vmul.f32 %v1787_v27, %v1787_v27 }
 0x29e   : > { %v1563_v5 = vpop.f32.mrf.mxu2  ;;  %v1789_v8 = vpop.f32.mrf.mxu0 }
 0x29f   : > { %v1941_v33 = vadd.f32 %v1940_v56, %v1910_v2  ;;  %v1564_v3 = vadd.f32 %v1563_v5, %v1451_v58 }
 0x2a0   : > { %v1453_v51 = vpop.f32.mrf.mxu1  ;;  %v1676_v36 = vpop.f32.mrf.mxu3 }
 0x2a1   : > { %v1677_v29 = vadd.f32 %v1676_v36, %v1564_v3  ;;  %v1454_v1 = vadd.f32 %v1453_v51, %v3352_v53 }
 0x2a3   : > { %v1790_v38 = vadd.f32 %v1789_v8, %v1677_v29 }
 0x2a5   : > { %1841 = vst [vmem:[%s3419_s18 + $0xb0] sm:$0xff] %v1790_v38  ;;  %v1872_v26 = vadd.f32 %v1871_v10, %v1790_v38  ;;  %v1911_v32 = vmul.f32 %v1790_v38, %v1790_v38 }
 0x2a6   : > { %v1566_v31 = vpop.f32.mrf.mxu2  ;;  %v1792_v50 = vpop.f32.mrf.mxu0 }
 0x2a7   : > { %v1942_v49 = vadd.f32 %v1941_v33, %v1911_v32  ;;  %v1567_v11 = vadd.f32 %v1566_v31, %v1454_v1 }
 0x2a8   : > { %v1456_v43 = vpop.f32.mrf.mxu1  ;;  %v1679_v44 = vpop.f32.mrf.mxu3 }
 0x2a9   : > { %v1680_v60 = vadd.f32 %v1679_v44, %v1567_v11  ;;  %v1457_v22 = vadd.f32 %v1456_v43, %v3359_v0 }
 0x2ab   : > { %v1793_v48 = vadd.f32 %v1792_v50, %v1680_v60 }
 0x2ad   : > { %1842 = vst [vmem:[%s3419_s18 + $0xb8] sm:$0xff] %v1793_v48  ;;  %v1873_v7 = vadd.f32 %v1872_v26, %v1793_v48  ;;  %v1912_v55 = vmul.f32 %v1793_v48, %v1793_v48 }
 0x2ae   : > { %v1569_v41 = vpop.f32.mrf.mxu2  ;;  %v1795_v42 = vpop.f32.mrf.mxu0 }
 0x2af   : > { %v1943_v53 = vadd.f32 %v1942_v49, %v1912_v55  ;;  %v1570_v12 = vadd.f32 %v1569_v41, %v1457_v22 }
 0x2b0   : > { %v1459_v24 = vpop.f32.mrf.mxu1  ;;  %v1682_v17 = vpop.f32.mrf.mxu3 }
 0x2b1   : > { %v1683_v13 = vadd.f32 %v1682_v17, %v1570_v12  ;;  %v1460_v59 = vadd.f32 %v1459_v24, %v3366_v52 }
 0x2b3   : > { %v1796_v62 = vadd.f32 %v1795_v42, %v1683_v13 }
 0x2b5   : > { %1843 = vst [vmem:[%s3419_s18 + $0xc0] sm:$0xff] %v1796_v62  ;;  %v1874_v23 = vadd.f32 %v1873_v7, %v1796_v62  ;;  %v1913_v39 = vmul.f32 %v1796_v62, %v1796_v62 }
 0x2b6   : > { %v1572_v54 = vpop.f32.mrf.mxu2  ;;  %v1798_v19 = vpop.f32.mrf.mxu0 }
 0x2b7   : > { %v1944_v0 = vadd.f32 %v1943_v53, %v1913_v39  ;;  %v1573_v20 = vadd.f32 %v1572_v54, %v1460_v59 }
 0x2b8   : > { %v1462_v18 = vpop.f32.mrf.mxu1  ;;  %v1685_v45 = vpop.f32.mrf.mxu3 }
 0x2b9   : > { %v1686_v46 = vadd.f32 %v1685_v45, %v1573_v20  ;;  %v1463_v14 = vadd.f32 %v1462_v18, %v3373_v6 }
 0x2bb   : > { %v1799_v21 = vadd.f32 %v1798_v19, %v1686_v46 }
 0x2bd   : > { %1844 = vst [vmem:[%s3419_s18 + $0xc8] sm:$0xff] %v1799_v21  ;;  %v1875_v15 = vadd.f32 %v1874_v23, %v1799_v21  ;;  %v1914_v25 = vmul.f32 %v1799_v21, %v1799_v21 }
 0x2be   : > { %v1575_v61 = vpop.f32.mrf.mxu2  ;;  %v1801_v16 = vpop.f32.mrf.mxu0 }
 0x2bf   : > { %v1945_v52 = vadd.f32 %v1944_v0, %v1914_v25  ;;  %v1576_v37 = vadd.f32 %v1575_v61, %v1463_v14 }
 0x2c0   : > { %v1465_v40 = vpop.f32.mrf.mxu1  ;;  %v1688_v56 = vpop.f32.mrf.mxu3 }
 0x2c1   : > { %v1689_v47 = vadd.f32 %v1688_v56, %v1576_v37  ;;  %v1466_v30 = vadd.f32 %v1465_v40, %v3380_v28 }
 0x2c3   : > { %v1802_v4 = vadd.f32 %v1801_v16, %v1689_v47 }
 0x2c5   : > { %1845 = vst [vmem:[%s3419_s18 + $0xd0] sm:$0xff] %v1802_v4  ;;  %v1876_v57 = vadd.f32 %v1875_v15, %v1802_v4  ;;  %v1915_v27 = vmul.f32 %v1802_v4, %v1802_v4 }
 0x2c6   : > { %v1578_v58 = vpop.f32.mrf.mxu2  ;;  %v1804_v10 = vpop.f32.mrf.mxu0 }
 0x2c7   : > { %v1946_v6 = vadd.f32 %v1945_v52, %v1915_v27  ;;  %v1579_v2 = vadd.f32 %v1578_v58, %v1466_v30 }
 0x2c8   : > { %v1468_v5 = vpop.f32.mrf.mxu1  ;;  %v1691_v8 = vpop.f32.mrf.mxu3 }
 0x2c9   : > { %v1692_v33 = vadd.f32 %v1691_v8, %v1579_v2  ;;  %v1469_v51 = vadd.f32 %v1468_v5, %v3387_v35 }
 0x2cb   : > { %v1805_v3 = vadd.f32 %v1804_v10, %v1692_v33 }
 0x2cd   : > { %1846 = vst [vmem:[%s3419_s18 + $0xd8] sm:$0xff] %v1805_v3  ;;  %v1877_v36 = vadd.f32 %v1876_v57, %v1805_v3  ;;  %v1916_v29 = vmul.f32 %v1805_v3, %v1805_v3 }
 0x2ce   : > { %v1581_v38 = vpop.f32.mrf.mxu2  ;;  %v1807_v1 = vpop.f32.mrf.mxu0 }
 0x2cf   : > { %v1947_v28 = vadd.f32 %v1946_v6, %v1916_v29  ;;  %v1582_v26 = vadd.f32 %v1581_v38, %v1469_v51 }
 0x2d0   : > { %v1471_v32 = vpop.f32.mrf.mxu1  ;;  %v1694_v31 = vpop.f32.mrf.mxu3 }
 0x2d1   : > { %v1695_v50 = vadd.f32 %v1694_v31, %v1582_v26  ;;  %v1472_v11 = vadd.f32 %v1471_v32, %v3394_v9 }
 0x2d3   : > { %v1808_v49 = vadd.f32 %v1807_v1, %v1695_v50 }
 0x2d5   : > { %1847 = vst [vmem:[%s3419_s18 + $0xe0] sm:$0xff] %v1808_v49  ;;  %v1878_v43 = vadd.f32 %v1877_v36, %v1808_v49  ;;  %v1917_v44 = vmul.f32 %v1808_v49, %v1808_v49 }
 0x2d6   : > { %v1584_v60 = vpop.f32.mrf.mxu2  ;;  %v1810_v48 = vpop.f32.mrf.mxu0 }
 0x2d7   : > { %v1948_v35 = vadd.f32 %v1947_v28, %v1917_v44  ;;  %v1585_v22 = vadd.f32 %v1584_v60, %v1472_v11 }
 0x2d8   : > { %v1474_v7 = vpop.f32.mrf.mxu1  ;;  %v1697_v55 = vpop.f32.mrf.mxu3 }
 0x2d9   : > { %v1698_v41 = vadd.f32 %v1697_v55, %v1585_v22  ;;  %v1475_v53 = vadd.f32 %v1474_v7, %v3401_v63 }
 0x2db   : > { %v1811_v42 = vadd.f32 %v1810_v48, %v1698_v41 }
 0x2dd   : > { %1848 = vst [vmem:[%s3419_s18 + $0xe8] sm:$0xff] %v1811_v42  ;;  %v1879_v12 = vadd.f32 %v1878_v43, %v1811_v42  ;;  %v1918_v24 = vmul.f32 %v1811_v42, %v1811_v42 }
 0x2de   : > { %v1587_v17 = vpop.f32.mrf.mxu2  ;;  %v1813_v13 = vpop.f32.mrf.mxu0 }
 0x2df   : > { %v1949_v9 = vadd.f32 %v1948_v35, %v1918_v24  ;;  %v1588_v62 = vadd.f32 %v1587_v17, %v1475_v53 }
 0x2e0   : > { %v1700_v59 = vpop.f32.mrf.mxu3  ;;  %v1477_v39 = vpop.f32.mrf.mxu1 }
 0x2e1   : > { %v1701_v23 = vadd.f32 %v1700_v59, %v1588_v62  ;;  %v1478_v19 = vadd.f32 %v1477_v39, %v3408_v34 }
 0x2e3   : > { %v1814_v54 = vadd.f32 %v1813_v13, %v1701_v23 }
 0x2e5   : > { %1849 = vst [vmem:[%s3419_s18 + $0xf0] sm:$0xff] %v1814_v54  ;;  %v1880_v0 = vadd.f32 %v1879_v12, %v1814_v54  ;;  %v1919_v20 = vmul.f32 %v1814_v54, %v1814_v54 }
 0x2e6   : > { %v1590_v18 = vpop.f32.mrf.mxu2  ;;  %v1816_v21 = vpop.f32.mrf.mxu0 }
 0x2e7   : > { %v1950_v45 = vadd.f32 %v1949_v9, %v1919_v20  ;;  %v1591_v63 = vadd.f32 %v1590_v18, %v1478_v19 }
 0x2e8   : > { %v1703_v46 = vpop.f32.mrf.mxu3 }
 0x2e9   : > { %v1704_v14 = vadd.f32 %v1703_v46, %v1591_v63 }
 0x2eb   : > { %v1817_v15 = vadd.f32 %v1816_v21, %v1704_v14 }
 0x2ed   : > { %1850 = vst [vmem:[%s3419_s18 + $0xf8] sm:$0xff] %v1817_v15  ;;  %v1881_v25 = vadd.f32 %v1880_v0, %v1817_v15  ;;  %v1920_v61 = vmul.f32 %v1817_v15, %v1817_v15 }
 0x2ef   : > { %v1882_v16 = vrot.slane %v1881_v25, 4  ;;  %v1951_v52 = vadd.f32 %v1950_v45, %v1920_v61 }
 0x2f1   : > { %v1883_v37 = vadd.f32 %v1882_v16, %v1881_v25  ;;  %v1952_v40 = vrot.slane %v1951_v52, 4 }
 0x2f3   : > { %v1884_v34 = vrot.slane %v1883_v37, 2  ;;  %v1953_v56 = vadd.f32 %v1952_v40, %v1951_v52 }
 0x2f5   : > { %v1885_v47 = vadd.f32 %v1884_v34, %v1883_v37  ;;  %v1954_v4 = vrot.slane %v1953_v56, 2 }
 0x2f7   : > { %v1886_v30 = vrot.slane %v1885_v47, 1  ;;  %v1955_v57 = vadd.f32 %v1954_v4, %v1953_v56 }
 0x2f9   : > { %v1887_v27 = vadd.f32 %v1886_v30, %v1885_v47  ;;  %v1956_v58 = vrot.slane %v1955_v57, 1 }
 0x2fb   : > { %1888 = vst [vmem:[%s292_s20] sm:$0x1] %v1887_v27  ;;  %v1957_v10 = vadd.f32 %v1956_v58, %v1955_v57 }
 0x2fd   : > { %1958 = vst [vmem:[%s295_s23] sm:$0x1] %v1957_v10 }
 0x2fe PF: > { %s18_s24 = sadd.s32 1, %s2166_s24  }
 0x2ff   : > { %p15_p4 = scmp.ge.s32.totalorder %s18_s24, 4  }
 0x301   :  { %17 = sbr.rel (!%p15_p4) target bundleno = 1 (0x1), region = 94 }

// kernel: residual_block.4
= control target key start
LH: loop header
LB: loop body
LE: loop exit
PB: predicated region body
PF: predicated region fallthrough
CT: control target
= control target key end

     0   :  { %s2739_s24 = smov 0   ;;  %s4411_s0 = inlined_call_operand.vmem [shape: f32[2,18,18,128], index: 0, kind: input, shape index: {}]   ;;  %s4412_s1 = inlined_call_operand.vmem [shape: f32[1,128], index: 1, kind: input, shape index: {}]   ;;  %s4413_s2 = inlined_call_operand.vmem [shape: f32[1,128], index: 2, kind: input, shape index: {}]   ;;  %s4414_s3 = inlined_call_operand.vmem [shape: f32[18,18,1], index: 3, kind: input, shape index: {}]   ;;  %s4415_s4 = inlined_call_operand.vmem [shape: f32[1152,128], index: 4, kind: input, shape index: {}]   ;;  %s4416_s5 = inlined_call_operand.vmem [shape: f32[2,16,16,128], index: 5, kind: output, shape index: {0}]   ;;  %s4417_s6 = inlined_call_operand.vmem [shape: f32[2,1,128], index: 6, kind: output, shape index: {1}]   ;;  %s4418_s7 = inlined_call_operand.vmem [shape: f32[2,1,128], index: 7, kind: output, shape index: {2}]  }
   0x1 LB: > { %s2612_s25 = sadd.s32 4294967295, %s2696_s24   ;;  %p2616_p0 = scmp.ge.s32.totalorder %s2696_s24, 1  ;;  %s2696_s24 = sphi %s2739_s24, %s18_s24  }
   0x2   : > { %p242_p1 = scmp.lt.s32.totalorder %s2696_s24, 3 }
   0x4   : > { %p243_p2 = pnand %p2616_p0, %p242_p1 }
   0x6   : > { %246 = sbr.rel (%p243_p2) target bundleno = 874 (0x36a), region = 40 }
   0xb   : > { %v544_v0 = vld [vmem:[%s4414_s3 + $0xc0] sm:$0xff]  ;;  %v2698_v3 = vmov 0   ;;  %v545_v4 = vld [vmem:[%s4414_s3 + $0xc8] sm:$0xff]  ;;  %v547_v7 = vld [vmem:[%s4414_s3 + $0xd8] sm:$0xff]  ;;  %p280_p3 = scmp.lt.s32.totalorder %s2612_s25, 1  ;;  %vm1079_vm0 = vcmask 1045504  }
   0xc   : > { %v532_v1 = vld [vmem:[%s4414_s3 + $0x60] sm:$0xff]  ;;  %2683 = vset.pattern.permute.xlu2 %v2698_v3  ;;  %2682 = vset.pattern.permute.xlu1 %v2698_v3  ;;  %v557_v6 = vld [vmem:[%s4414_s3 + $0x128] sm:$0xff]  ;;  %v535_v10 = vld [vmem:[%s4414_s3 + $0x78] sm:$0xff]  ;;  %vm952_vm1 = vcmask 1046528  }
   0xd   : > { %v520_v2 = vld [vmem:[%s4414_s3] sm:$0xff]  ;;  %2681 = vset.pattern.permute.xlu0 %v2698_v3  ;;  %636 = vperm.xlu1 %2682, %v532_v1   ;;  %v533_v8 = vld [vmem:[%s4414_s3 + $0x68] sm:$0xff]  ;;  %v559_v11 = vld [vmem:[%s4414_s3 + $0x138] sm:$0xff]  ;;  %s4649_s25 = smov (!%p280_p3, %s2612_s25), 1 }
   0xe   : > { %696 = vperm.xlu0 %2681, %v544_v0   ;;  %576 = vperm.xlu2 %2683, %v520_v2   ;;  %v556_v5 = vld [vmem:[%s4414_s3 + $0x120] sm:$0xff]  ;;  %v521_v9 = vld [vmem:[%s4414_s3 + $0x8] sm:$0xff]  ;;  %v523_v14 = vld [vmem:[%s4414_s3 + $0x18] sm:$0xff]  ;;  %s2671_s20 = smul.u32 432, %s4649_s25  ;;  %s2622_s11 = sshll.u32 %s4649_s25, 8 }
   0xf   : > { %v548_v12 = vld [vmem:[%s4414_s3 + $0xe0] sm:$0xff]  ;;  %v550_v17 = vld [vmem:[%s4414_s3 + $0xf0] sm:$0xff]  ;;  %v551_v19 = vld [vmem:[%s4414_s3 + $0xf8] sm:$0xff]  ;;  %s4264_s14 = scalar_lea.vmem %s4416_s5, %s2622_s11  ;;  %s292_s16 = scalar_lea.vmem %s4417_s6, %s4649_s25 }
  0x10   : > { %v560_v13 = vld [vmem:[%s4414_s3 + $0x140] sm:$0xff]  ;;  %v562_v18 = vld [vmem:[%s4414_s3 + $0x150] sm:$0xff]  ;;  %v1221_v22 = vld [vmem:[%s4415_s4 + $0x78] sm:$0xff]  ;;  %s2883_s29 = scalar_lea.vmem %s4411_s0, %s2671_s20  ;;  %s295_s19 = scalar_lea.vmem %s4418_s7, %s4649_s25 }
  0x11   : > { %v536_v15 = vld [vmem:[%s4414_s3 + $0x80] sm:$0xff]  ;;  %v538_v20 = vld [vmem:[%s4414_s3 + $0x90] sm:$0xff]  ;;  %1350 = vmatpush.msra.mxu0 %v1221_v22  ;;  %2624 = vmatpush.msra.mxu2 %v1221_v22  ;;  %v1219_v24 = vld [vmem:[%s4415_s4 + $0x68] sm:$0xff] }
  0x12   : > { %v524_v16 = vld [vmem:[%s4414_s3 + $0x20] sm:$0xff]  ;;  %v526_v21 = vld [vmem:[%s4414_s3 + $0x30] sm:$0xff]  ;;  %2623 = vmatpush.msra.mxu1 %v1221_v22  ;;  %2625 = vmatpush.msra.mxu3 %v1221_v22  ;;  %v539_v25 = vld [vmem:[%s4414_s3 + $0x98] sm:$0xff] }
  0x13   : > { %v1220_v23 = vld [vmem:[%s4415_s4 + $0x70] sm:$0xff]  ;;  %v563_v26 = vld [vmem:[%s4414_s3 + $0x158] sm:$0xff]  ;;  %v553_v27 = vld [vmem:[%s4414_s3 + $0x108] sm:$0xff] }
  0x14   : > { %1351 = vmatpush.msra.mxu0 %v1220_v23  ;;  %2627 = vmatpush.msra.mxu2 %v1220_v23  ;;  %v1218_v28 = vld [vmem:[%s4415_s4 + $0x60] sm:$0xff]  ;;  %v1217_v29 = vld [vmem:[%s4415_s4 + $0x58] sm:$0xff]  ;;  %v565_v30 = vld [vmem:[%s4414_s3 + $0x168] sm:$0xff] }
  0x15   : > { %701 = vperm.xlu1 %2682, %v545_v4   ;;  %2626 = vmatpush.msra.mxu1 %v1220_v23  ;;  %v527_v31 = vld [vmem:[%s4414_s3 + $0x38] sm:$0xff]  ;;  %v541_v32 = vld [vmem:[%s4414_s3 + $0xa8] sm:$0xff]  ;;  %v1216_v33 = vld [vmem:[%s4415_s4 + $0x50] sm:$0xff] }
  0x16   : > { %756 = vperm.xlu0 %2681, %v556_v5   ;;  %761 = vperm.xlu2 %2683, %v557_v6   ;;  %v1215_v34 = vld [vmem:[%s4415_s4 + $0x48] sm:$0xff]  ;;  %v1214_v35 = vld [vmem:[%s4415_s4 + $0x40] sm:$0xff]  ;;  %v1213_v36 = vld [vmem:[%s4415_s4 + $0x38] sm:$0xff] }
  0x17   : > { %2628 = vmatpush.msra.mxu3 %v1220_v23  ;;  %1352 = vmatpush.msra.mxu0 %v1219_v24  ;;  %v529_v37 = vld [vmem:[%s4414_s3 + $0x48] sm:$0xff]  ;;  %v1212_v38 = vld [vmem:[%s4415_s4 + $0x30] sm:$0xff]  ;;  %v1210_v42 = vld [vmem:[%s4415_s4 + $0x20] sm:$0xff] }
  0x18   : > { %2630 = vmatpush.msra.mxu2 %v1219_v24  ;;  %2629 = vmatpush.msra.mxu1 %v1219_v24  ;;  %v554_v39 = vld [vmem:[%s4414_s3 + $0x110] sm:$0xff]  ;;  %v1211_v41 = vld [vmem:[%s4415_s4 + $0x28] sm:$0xff]  ;;  %v2888_v43 = vld [vmem:[%s4412_s1] ss:$0 sm:$0xff] }
  0x19   : > { %2631 = vmatpush.msra.mxu3 %v1219_v24  ;;  %1353 = vmatpush.msra.mxu0 %v1218_v28  ;;  %v566_v40 = vld [vmem:[%s4414_s3 + $0x170] sm:$0xff]  ;;  %v1209_v44 = vld [vmem:[%s4415_s4 + $0x18] sm:$0xff]  ;;  %v296_v46 = vld [vmem:[%s2883_s29] sm:$0xff] }
  0x1a   : > { %2633 = vmatpush.msra.mxu2 %v1218_v28  ;;  %2632 = vmatpush.msra.mxu1 %v1218_v28  ;;  %v530_v45 = vld [vmem:[%s4414_s3 + $0x50] sm:$0xff]  ;;  %v354_v50 = vmul.f32 %v2888_v43, %v296_v46  ;;  %v2910_v51 = vld [vmem:[%s4413_s2] ss:$0 sm:$0xff]  ;;  %v1207_v52 = vld [vmem:[%s4415_s4 + $0x8] sm:$0xff] }
  0x1b   : > { %2634 = vmatpush.msra.mxu3 %v1218_v28  ;;  %1354 = vmatpush.msra.mxu0 %v1217_v29  ;;  %v542_v47 = vld [vmem:[%s4414_s3 + $0xb0] sm:$0xff]  ;;  %v1206_v53 = vld [vmem:[%s4415_s4] sm:$0xff]  ;;  %v525_v56 = vld [vmem:[%s4414_s3 + $0x28] sm:$0x3] }
  0x1c   : > { %2636 = vmatpush.msra.mxu2 %v1217_v29  ;;  %2635 = vmatpush.msra.mxu1 %v1217_v29  ;;  %v522_v48 = vld [vmem:[%s4414_s3 + $0x10] sm:$0x3]  ;;  %v412_v54 = vadd.f32 %v2910_v51, %v354_v50  ;;  %v528_v55 = vld [vmem:[%s4414_s3 + $0x40] sm:$0x3]  ;;  %v531_v57 = vld [vmem:[%s4414_s3 + $0x58] sm:$0x3] }
  0x1d   : > { %711 = vperm.xlu1 %2682, %v547_v7   ;;  %2637 = vmatpush.msra.mxu3 %v1217_v29  ;;  %v1208_v49 = vld [vmem:[%s4415_s4 + $0x10] sm:$0xff]  ;;  %v537_v61 = vld [vmem:[%s4414_s3 + $0x88] sm:$0x3]  ;;  %v540_v0 = vld [vmem:[%s4414_s3 + $0xa0] sm:$0x3] }
  0x1e   : > { %641 = vperm.xlu0 %2681, %v533_v8   ;;  %581 = vperm.xlu2 %2683, %v521_v9   ;;  %v466_v58 = vmax.f32 %v412_v54, 0.0  ;;  %v297_v62 = vld [vmem:[%s2883_s29 + $0x8] sm:$0xff]  ;;  %v534_v63 = vld [vmem:[%s4414_s3 + $0x70] sm:$0x3]  ;;  %v308_v4 = vld [vmem:[%s2883_s29 + $0x60] sm:$0xff] }
  0x1f   : > { %1355 = vmatpush.msra.mxu0 %v1216_v33  ;;  %2639 = vmatpush.msra.mxu2 %v1216_v33  ;;  %v355_v1 = vmul.f32 %v2888_v43, %v297_v62  ;;  %v546_v5 = vld [vmem:[%s4414_s3 + $0xd0] sm:$0x3]  ;;  %v320_v6 = vld [vmem:[%s2883_s29 + $0xc0] sm:$0xff]  ;;  %v543_v7 = vld [vmem:[%s4414_s3 + $0xb8] sm:$0x3]  ;;  %v366_v9 = vmul.f32 %v2888_v43, %v308_v4 }
  0x20   : > { %2638 = vmatpush.msra.mxu1 %v1216_v33  ;;  %2640 = vmatpush.msra.mxu3 %v1216_v33  ;;  %v549_v8 = vld [vmem:[%s4414_s3 + $0xe8] sm:$0x3]  ;;  %v332_v22 = vld [vmem:[%s2883_s29 + $0x120] sm:$0xff]  ;;  %v1237_v29 = vld [vmem:[%s4415_s4 + $0xf8] sm:$0xff] }
  0x21   : > { %1356 = vmatpush.msra.mxu0 %v1215_v34  ;;  %2642 = vmatpush.msra.mxu2 %v1215_v34  ;;  %v413_v3 = vadd.f32 %v2910_v51, %v355_v1  ;;  %v390_v33 = vmul.f32 %v2888_v43, %v332_v22  ;;  %v1267_v46 = vld [vmem:[%s4415_s4 + $0x1e8] sm:$0xff]  ;;  %v1234_v62 = vld [vmem:[%s4415_s4 + $0xe0] sm:$0xff]  ;;  %v1248_v22 = vld [vmem:[%s4415_s4 + $0x150] sm:$0xff] }
  0x22   : > { %2641 = vmatpush.msra.mxu1 %v1215_v34  ;;  %2643 = vmatpush.msra.mxu3 %v1215_v34  ;;  %v1236_v34 = vld [vmem:[%s4415_s4 + $0xf0] sm:$0xff]  ;;  %v333_v50 = vld [vmem:[%s2883_s29 + $0x128] sm:$0xff] }
  0x23   : > { %1357 = vmatpush.msra.mxu0 %v1214_v35  ;;  %2645 = vmatpush.msra.mxu2 %v1214_v35 }
  0x24   : > { %2644 = vmatpush.msra.mxu1 %v1214_v35  ;;  %2646 = vmatpush.msra.mxu3 %v1214_v35 }
  0x25   : > { %651 = vperm.xlu1 %2682, %v535_v10   ;;  %1358 = vmatpush.msra.mxu0 %v1213_v36  ;;  %v467_v10 = vmax.f32 %v413_v3, 0.0 }
  0x26   : > { %771 = vperm.xlu0 %2681, %v559_v11   ;;  %716 = vperm.xlu2 %2683, %v548_v12   ;;  %v378_v11 = vmul.f32 %v2888_v43, %v320_v6  ;;  %v1253_v12 = vld [vmem:[%s4415_s4 + $0x178] sm:$0xff] }
  0x27   : > { %2648 = vmatpush.msra.mxu2 %v1213_v36  ;;  %2647 = vmatpush.msra.mxu1 %v1213_v36 }
  0x28   : > { %1359 = vmatpush.msra.mxu0 %v1212_v38  ;;  %2649 = vmatpush.msra.mxu3 %v1213_v36 }
  0x29   : > { %2651 = vmatpush.msra.mxu2 %v1212_v38  ;;  %2650 = vmatpush.msra.mxu1 %v1212_v38 }
  0x2a   : > { %1360 = vmatpush.msra.mxu0 %v1211_v41  ;;  %2652 = vmatpush.msra.mxu3 %v1212_v38 }
  0x2b   : > { %2654 = vmatpush.msra.mxu2 %v1211_v41  ;;  %2653 = vmatpush.msra.mxu1 %v1211_v41 }
  0x2c   : > { %1361 = vmatpush.msra.mxu0 %v1210_v42  ;;  %2655 = vmatpush.msra.mxu3 %v1211_v41 }
  0x2d   : > { %776 = vperm.xlu1 %2682, %v560_v13   ;;  %2657 = vmatpush.msra.mxu2 %v1210_v42 }
  0x2e   : > { %591 = vperm.xlu0 %2681, %v523_v14   ;;  %656 = vperm.xlu2 %2683, %v536_v15   ;;  %v424_v14 = vadd.f32 %v2910_v51, %v366_v9  ;;  %v1265_v9 = vld [vmem:[%s4415_s4 + $0x1d8] sm:$0xff] }
  0x2f   : > { %1362 = vmatpush.msra.mxu0 %v1209_v44  ;;  %2656 = vmatpush.msra.mxu1 %v1210_v42 }
  0x30   : > { %2660 = vmatpush.msra.mxu2 %v1209_v44  ;;  %2658 = vmatpush.msra.mxu3 %v1210_v42 }
  0x31   : > { %1363 = vmatpush.msra.mxu0 %v1208_v49  ;;  %2659 = vmatpush.msra.mxu1 %v1209_v44 }
  0x32   : > { %2663 = vmatpush.msra.mxu2 %v1208_v49  ;;  %2661 = vmatpush.msra.mxu3 %v1209_v44  ;;  %v448_v44 = vadd.f32 %v2910_v51, %v390_v33 }
  0x33   : > { %1364 = vmatpush.msra.mxu0 %v1207_v52  ;;  %2662 = vmatpush.msra.mxu1 %v1208_v49 }
  0x34   : > { %2666 = vmatpush.msra.mxu2 %v1207_v52  ;;  %2664 = vmatpush.msra.mxu3 %v1208_v49  ;;  %v309_v49 = vld [vmem:[%s2883_s29 + $0x68] sm:$0xff] }
  0x35   : > { %596 = vperm.xlu1 %2682, %v524_v16   ;;  %1365 = vmatpush.msra.mxu0 %v1206_v53 }
  0x36   : > { %726 = vperm.xlu0 %2681, %v550_v17   ;;  %786 = vperm.xlu2 %2683, %v562_v18   ;;  %v436_v18 = vadd.f32 %v2910_v51, %v378_v11 }
  0x37   : > { %2669 = vmatpush.msra.mxu2 %v1206_v53  ;;  %2665 = vmatpush.msra.mxu1 %v1207_v52 }
  0x38   : > { %2667 = vmatpush.msra.mxu3 %v1207_v52  ;;  %v561_v52 = vld [vmem:[%s4414_s3 + $0x148] sm:$0x3] }
  0x39   : > { %2668 = vmatpush.msra.mxu1 %v1206_v53  ;;  %1576 = vmatpush.msrb.mxu2 %v1253_v12 }
  0x3a   : > { %2670 = vmatpush.msra.mxu3 %v1206_v53  ;;  %v567_v53 = vld [vmem:[%s4414_s3 + $0x178] sm:$0x3] }
  0x3b   : > { %1463 = vmatpush.msrb.mxu1 %v1237_v29  ;;  %v1282_v29 = vld [vmem:[%s4415_s4 + $0x260] sm:$0xff] }
  0x3d   : > { %731 = vperm.xlu1 %2682, %v551_v19   ;;  %v321_v19 = vld [vmem:[%s2883_s29 + $0xc8] sm:$0xff]  ;;  %1464 = vmatpush.msrb.mxu1 %v1236_v34 }
  0x3e   : > { %666 = vperm.xlu0 %2681, %v538_v20   ;;  %606 = vperm.xlu2 %2683, %v526_v21   ;;  %v1269_v20 = vld [vmem:[%s4415_s4 + $0x1f8] sm:$0xff]  ;;  %v379_v28 = vmul.f32 %v2888_v43, %v321_v19 }
  0x3f   : > { %v555_v21 = vld [vmem:[%s4414_s3 + $0x118] sm:$0x3]  ;;  %1689 = vmatpush.msrb.mxu3 %v1269_v20 }
  0x40   : > { %v437_v41 = vadd.f32 %v2910_v51, %v379_v28 }
  0x42   : > { %v491_v54 = vmax.f32 %v437_v41, 0.0 }
  0x45   : > { %671 = vperm.xlu1 %2682, %v539_v25   ;;  %v552_v25 = vld [vmem:[%s4414_s3 + $0x100] sm:$0x3] }
  0x46   : > { %791 = vperm.xlu0 %2681, %v563_v26   ;;  %741 = vperm.xlu2 %2683, %v553_v27   ;;  %v558_v26 = vld [vmem:[%s4414_s3 + $0x130] sm:$0x3]  ;;  %v478_v27 = vmax.f32 %v424_v14, 0.0  ;;  %v569_v14 = vld [vmem:[%s4414_s3 + $0x188] sm:$0xff] }
  0x4d   : > { %801 = vperm.xlu1 %2682, %v565_v30   ;;  %v1252_v30 = vld [vmem:[%s4415_s4 + $0x170] sm:$0xff] }
  0x4e   : > { %611 = vperm.xlu0 %2681, %v527_v31   ;;  %681 = vperm.xlu2 %2683, %v541_v32   ;;  %v1268_v31 = vld [vmem:[%s4415_s4 + $0x1f0] sm:$0xff]  ;;  %v490_v32 = vmax.f32 %v436_v18, 0.0 }
  0x4f   : > { %1577 = vmatpush.msrb.mxu2 %v1252_v30  ;;  %1690 = vmatpush.msrb.mxu3 %v1268_v31  ;;  %v570_v18 = vld [vmem:[%s4414_s3 + $0x190] sm:$0x3] }
  0x50   : > { %v1232_v30 = vld [vmem:[%s4415_s4 + $0xd0] sm:$0xff] }
  0x51   : > { %1691 = vmatpush.msrb.mxu3 %v1267_v46  ;;  %v1263_v46 = vld [vmem:[%s4415_s4 + $0x1c8] sm:$0xff] }
  0x55   : > { %621 = vperm.xlu1 %2682, %v529_v37   ;;  %v1251_v37 = vld [vmem:[%s4415_s4 + $0x168] sm:$0xff] }
  0x56   : > { %746 = vperm.xlu0 %2681, %v554_v39   ;;  %806 = vperm.xlu2 %2683, %v566_v40  }
  0x57   : > { %1578 = vmatpush.msrb.mxu2 %v1251_v37 }
  0x5d   : > { %626 = vperm.xlu1 %2682, %v530_v45   ;;  %v323_v45 = vld [vmem:[%s2883_s29 + $0xd8] sm:$0xff] }
  0x5e   : > { %686 = vperm.xlu0 %2681, %v542_v47   ;;  %586 = vperm.xlu2 %2683, %v522_v48   ;;  %v1285_v47 = vld [vmem:[%s4415_s4 + $0x278] sm:$0xff]  ;;  %v564_v48 = vld [vmem:[%s4414_s3 + $0x160] sm:$0x3] }
  0x5f   : > { %1802 = vmatpush.msrb.mxu0 %v1285_v47  ;;  %v1281_v47 = vld [vmem:[%s4415_s4 + $0x258] sm:$0xff] }
  0x65   : > { %616 = vperm.xlu1 %2682, %v528_v55   ;;  %v381_v55 = vmul.f32 %v2888_v43, %v323_v45  ;;  %v336_v45 = vld [vmem:[%s2883_s29 + $0x140] sm:$0xff] }
  0x66   : > { %601 = vperm.xlu0 %2681, %v525_v56   ;;  %631 = vperm.xlu2 %2683, %v531_v57   ;;  %v1235_v56 = vld [vmem:[%s4415_s4 + $0xe8] sm:$0xff]  ;;  %v1250_v57 = vld [vmem:[%s4415_s4 + $0x160] sm:$0xff] }
  0x67   : > { %1465 = vmatpush.msrb.mxu1 %v1235_v56  ;;  %1579 = vmatpush.msrb.mxu2 %v1250_v57  ;;  %v394_v56 = vmul.f32 %v2888_v43, %v336_v45  ;;  %v1231_v57 = vld [vmem:[%s4415_s4 + $0xc8] sm:$0xff] }
  0x68   : > { %v577_v59 = vpop.permute.xlu2 %576 }
  0x69   : > { %v844_v60 = vmul.f32 %v577_v59, %v466_v58  ;;  %v1266_v58 = vld [vmem:[%s4415_s4 + $0x1e0] sm:$0xff]  ;;  %v502_v59 = vmax.f32 %v448_v44, 0.0  ;;  %1466 = vmatpush.msrb.mxu1 %v1234_v62 }
  0x6a   : > { %1692 = vmatpush.msrb.mxu3 %v1266_v58  ;;  %v1246_v58 = vld [vmem:[%s4415_s4 + $0x140] sm:$0xff] }
  0x6b   : > { %1366 = vmatmul.f32.vlgmr.msra.gmra.mxu0 %v844_v60  ;;  %v953_v15 = vrot.slane %v844_v60, 1  ;;  %v1080_v16 = vrot.slane %v844_v60, 2  ;;  %v367_v60 = vmul.f32 %v2888_v43, %v309_v49  ;;  %v312_v49 = vld [vmem:[%s2883_s29 + $0x80] sm:$0xff] }
  0x6c   : > { %1693 = vmatpush.msrb.mxu3 %v1265_v9  ;;  %v452_v9 = vadd.f32 %v2910_v51, %v394_v56 }
  0x6d   : > { %661 = vperm.xlu1 %2682, %v537_v61   ;;  %v1284_v61 = vld [vmem:[%s4415_s4 + $0x270] sm:$0xff] }
  0x6e   : > { %646 = vperm.xlu0 %2681, %v534_v63   ;;  %676 = vperm.xlu2 %2683, %v540_v0   ;;  %v391_v63 = vmul.f32 %v2888_v43, %v333_v50  ;;  %v1249_v0 = vld [vmem:[%s4415_s4 + $0x158] sm:$0xff]  ;;  %v572_v50 = vld [vmem:[%s4414_s3 + $0x1a0] sm:$0xff] }
  0x6f   : > { %1803 = vmatpush.msrb.mxu0 %v1284_v61  ;;  %1580 = vmatpush.msrb.mxu2 %v1249_v0  ;;  %v370_v61 = vmul.f32 %v2888_v43, %v312_v49  ;;  %v1280_v0 = vld [vmem:[%s4415_s4 + $0x250] sm:$0xff] }
  0x70   : > { %v2939_v2 = vpop.permute.xlu2 %761  ;;  %v449_v11 = vadd.f32 %v2910_v51, %v391_v63 }
  0x71   : > { %1581 = vmatpush.msrb.mxu2 %v1248_v22  ;;  %v1229_v22 = vld [vmem:[%s4415_s4 + $0xb8] sm:$0xff] }
  0x72   : > { %v503_v31 = vmax.f32 %v449_v11, 0.0  ;;  %v428_v11 = vadd.f32 %v2910_v51, %v370_v61 }
  0x75   : > { %706 = vperm.xlu1 %2682, %v546_v5   ;;  %v439_v5 = vadd.f32 %v2910_v51, %v381_v55 }
  0x76   : > { %691 = vperm.xlu0 %2681, %v543_v7   ;;  %721 = vperm.xlu2 %2683, %v549_v8   ;;  %v425_v7 = vadd.f32 %v2910_v51, %v367_v60  ;;  %v311_v8 = vld [vmem:[%s2883_s29 + $0x78] sm:$0xff] }
  0x77   : > { %v493_v19 = vmax.f32 %v439_v5, 0.0  ;;  %v369_v20 = vmul.f32 %v2888_v43, %v311_v8 }
  0x78   : > { %v582_v13 = vpop.permute.xlu2 %581 }
  0x79   : > { %v2959_v17 = vmul.f32 %v582_v13, %v467_v10  ;;  %v1283_v10 = vld [vmem:[%s4415_s4 + $0x268] sm:$0xff]  ;;  %v324_v13 = vld [vmem:[%s2883_s29 + $0xe0] sm:$0xff] }
  0x7a   : > { %1804 = vmatpush.msrb.mxu0 %v1283_v10 }
  0x7b   : > { %v954_v23 = vrot.slane %v2959_v17, 1  ;;  %v1081_v24 = vrot.slane %v2959_v17, 2  ;;  %1369 = vmatmul.f32.gmra.mxu0 %v2959_v17  ;;  %v1314_v17 = vld [vmem:[%s4415_s4 + $0x360] sm:$0xff] }
  0x7c   : > { %1805 = vmatpush.msrb.mxu0 %v1282_v29 }
  0x7d   : > { %751 = vperm.xlu1 %2682, %v555_v21   ;;  %v2996_v35 = vsel %vm1079_vm0, %v1080_v16, %v1081_v24  ;;  %v3001_v36 = vsel %vm952_vm1, %v953_v15, %v954_v23  ;;  %v335_v15 = vld [vmem:[%s2883_s29 + $0x138] sm:$0xff]  ;;  %v568_v16 = vld [vmem:[%s4414_s3 + $0x180] sm:$0xff] }
  0x7e   : > { %736 = vperm.xlu0 %2681, %v552_v25   ;;  %766 = vperm.xlu2 %2683, %v558_v26   ;;  %v1233_v21 = vld [vmem:[%s4415_s4 + $0xd8] sm:$0xff]  ;;  %v1264_v25 = vld [vmem:[%s4415_s4 + $0x1d0] sm:$0xff]  ;;  %v382_v26 = vmul.f32 %v2888_v43, %v324_v13  ;;  %v393_v28 = vmul.f32 %v2888_v43, %v335_v15  ;;  %v300_v15 = vld [vmem:[%s2883_s29 + $0x20] sm:$0xff] }
  0x7f   : > { %v637_v38 = vpop.permute.xlu1 %636  ;;  %1467 = vmatpush.msrb.mxu1 %v1233_v21  ;;  %1694 = vmatpush.msrb.mxu3 %v1264_v25  ;;  %v358_v21 = vmul.f32 %v2888_v43, %v300_v15  ;;  %v1244_v25 = vld [vmem:[%s4415_s4 + $0x130] sm:$0xff] }
  0x80   : > { %v697_v39 = vpop.permute.xlu0 %696  ;;  %v3006_v40 = vmul.f32 %v637_v38, %v478_v27  ;;  %v3067_v12 = vpop.permute.xlu2 %716  ;;  %v479_v27 = vmax.f32 %v425_v7, 0.0  ;;  %v427_v38 = vadd.f32 %v2910_v51, %v369_v20  ;;  %v451_v44 = vadd.f32 %v2910_v51, %v393_v28  ;;  %1806 = vmatpush.msrb.mxu0 %v1281_v47 }
  0x81   : > { %v3009_v42 = vmul.f32 %v697_v39, %v490_v32  ;;  %v1247_v32 = vld [vmem:[%s4415_s4 + $0x148] sm:$0xff]  ;;  %1468 = vmatpush.msrb.mxu1 %v1232_v30  ;;  %v440_v39 = vadd.f32 %v2910_v51, %v382_v26  ;;  %1695 = vmatpush.msrb.mxu3 %v1263_v46  ;;  %v506_v20 = vmax.f32 %v452_v9, 0.0  ;;  %v1260_v26 = vld [vmem:[%s4415_s4 + $0x1b0] sm:$0xff]  ;;  %v1278_v30 = vld [vmem:[%s4415_s4 + $0x240] sm:$0xff]  ;;  %v416_v45 = vadd.f32 %v2910_v51, %v358_v21 }
  0x82   : > { %4488 = vst [vmem:[#allocation2_spill] sm:$0xff] %v3006_v40  ;;  %1390 = vmatmul.f32.vlgmr.msra.gmra.mxu1 %v3006_v40  ;;  %1582 = vmatpush.msrb.mxu2 %v1247_v32  ;;  %v481_v55 = vmax.f32 %v427_v38, 0.0  ;;  %v505_v62 = vmax.f32 %v451_v44, 0.0  ;;  %v1243_v32 = vld [vmem:[%s4415_s4 + $0x128] sm:$0xff]  ;;  %v339_v21 = vld [vmem:[%s2883_s29 + $0x158] sm:$0xff] }
  0x83   : > { %4489 = vst [vmem:[#allocation3_spill] sm:$0xff] %v3009_v42  ;;  %1414 = vmatmul.f32.vlgmr.msra.gmra.mxu2 %v3009_v42  ;;  %v494_v60 = vmax.f32 %v440_v39, 0.0  ;;  %1469 = vmatpush.msrb.mxu1 %v1231_v57  ;;  %v470_v56 = vmax.f32 %v416_v45, 0.0  ;;  %v1239_v45 = vld [vmem:[%s4415_s4 + $0x108] sm:$0xff] }
  0x84   : > { %1583 = vmatpush.msrb.mxu2 %v1246_v58  ;;  %1807 = vmatpush.msrb.mxu0 %v1280_v0  ;;  %v1227_v58 = vld [vmem:[%s4415_s4 + $0xa8] sm:$0xff]  ;;  %v1276_v0 = vld [vmem:[%s4415_s4 + $0x230] sm:$0xff] }
  0x85   : > { %796 = vperm.xlu1 %2682, %v564_v48   ;;  %v3118_v48 = vmul.f32 %v2939_v2, %v503_v31  ;;  %v573_v2 = vld [vmem:[%s4414_s3 + $0x1a8] sm:$0x3]  ;;  %v3161_v10 = vmul.f32 %v3067_v12, %v494_v60  ;;  %v1228_v31 = vld [vmem:[%s4415_s4 + $0xb0] sm:$0xff]  ;;  %v1258_v60 = vld [vmem:[%s4415_s4 + $0x1a0] sm:$0xff] }
  0x86   : > { %781 = vperm.xlu0 %2681, %v561_v52   ;;  %811 = vperm.xlu2 %2683, %v567_v53   ;;  %v299_v52 = vld [vmem:[%s2883_s29 + $0x18] sm:$0xff]  ;;  %v1279_v12 = vld [vmem:[%s4415_s4 + $0x248] sm:$0xff] }
  0x87   : > { %v702_v1 = vpop.permute.xlu1 %701  ;;  %4492 = vst [vmem:[#allocation6_spill] sm:$0xff] %v3118_v48  ;;  %v571_v53 = vld [vmem:[%s4414_s3 + $0x198] sm:$0xff]  ;;  %v357_v63 = vmul.f32 %v2888_v43, %v299_v52  ;;  %1808 = vmatpush.msrb.mxu0 %v1279_v12 }
  0x88   : > { %v757_v3 = vpop.permute.xlu0 %756  ;;  %v3053_v4 = vmul.f32 %v702_v1, %v491_v54  ;;  %v3133_v54 = vpop.permute.xlu2 %656  ;;  %v1230_v1 = vld [vmem:[%s4415_s4 + $0xc0] sm:$0xff]  ;;  %4494 = vst [vmem:[#allocation8_spill] sm:$0xff] %v3161_v10  ;;  %v315_v12 = vld [vmem:[%s2883_s29 + $0x98] sm:$0xff] }
  0x89   : > { %v3056_v6 = vmul.f32 %v757_v3, %v502_v59  ;;  %v1262_v59 = vld [vmem:[%s4415_s4 + $0x1c0] sm:$0xff]  ;;  %v1245_v3 = vld [vmem:[%s4415_s4 + $0x138] sm:$0xff]  ;;  %1470 = vmatpush.msrb.mxu1 %v1230_v1  ;;  %1809 = vmatpush.msrb.mxu0 %v1278_v30  ;;  %v1240_v30 = vld [vmem:[%s4415_s4 + $0x110] sm:$0xff] }
  0x8a   : > { %4490 = vst [vmem:[#allocation4_spill] sm:$0xff] %v3053_v4  ;;  %1696 = vmatpush.msrb.mxu3 %v1262_v59  ;;  %1584 = vmatpush.msrb.mxu2 %v1245_v3  ;;  %v1242_v59 = vld [vmem:[%s4415_s4 + $0x120] sm:$0xff]  ;;  %v1241_v3 = vld [vmem:[%s4415_s4 + $0x118] sm:$0xff] }
  0x8b   : > { %1417 = vmatmul.f32.gmra.mxu2 %v3053_v4  ;;  %1438 = vmatmul.f32.vlgmr.msra.gmra.mxu3 %v3056_v6  ;;  %v1226_v1 = vld [vmem:[%s4415_s4 + $0xa0] sm:$0xff] }
  0x8c   : > { %1471 = vmatpush.msrb.mxu1 %v1229_v22  ;;  %1585 = vmatpush.msrb.mxu2 %v1244_v25  ;;  %v329_v22 = vld [vmem:[%s2883_s29 + $0x108] sm:$0xff]  ;;  %v1257_v25 = vld [vmem:[%s4415_s4 + $0x198] sm:$0xff] }
  0x8d   : > { %821 = vperm.xlu1 %2682, %v569_v14   ;;  %v415_v14 = vadd.f32 %v2910_v51, %v357_v63 }
  0x8e   : > { %816 = vperm.xlu0 %2681, %v568_v16   ;;  %826 = vperm.xlu2 %2683, %v570_v18   ;;  %v326_v16 = vld [vmem:[%s2883_s29 + $0xf0] sm:$0xff] }
  0x8f   : > { %v712_v33 = vpop.permute.xlu1 %711  ;;  %v338_v18 = vld [vmem:[%s2883_s29 + $0x150] sm:$0xff]  ;;  %v469_v28 = vmax.f32 %v415_v14, 0.0  ;;  %v384_v29 = vmul.f32 %v2888_v43, %v326_v16  ;;  %1472 = vmatpush.msrb.mxu1 %v1228_v31  ;;  %1586 = vmatpush.msrb.mxu2 %v1243_v32 }
  0x90   : > { %v642_v34 = vpop.permute.xlu0 %641  ;;  %v3103_v37 = vmul.f32 %v712_v33, %v493_v19  ;;  %v1261_v19 = vld [vmem:[%s4415_s4 + $0x1b8] sm:$0xff]  ;;  %v787_v33 = vpop.permute.xlu2 %786  ;;  %v1256_v31 = vld [vmem:[%s4415_s4 + $0x190] sm:$0xff] }
  0x91   : > { %v3107_v41 = vmul.f32 %v642_v34, %v479_v27  ;;  %v482_v27 = vmax.f32 %v428_v11, 0.0  ;;  %1697 = vmatpush.msrb.mxu3 %v1261_v19  ;;  %v396_v34 = vmul.f32 %v2888_v43, %v338_v18  ;;  %v442_v49 = vadd.f32 %v2910_v51, %v384_v29  ;;  %1473 = vmatpush.msrb.mxu1 %v1227_v58  ;;  %v1225_v29 = vld [vmem:[%s4415_s4 + $0x98] sm:$0xff] }
  0x92   : > { %1587 = vmatpush.msrb.mxu2 %v1242_v59  ;;  %v341_v59 = vld [vmem:[%s2883_s29 + $0x168] sm:$0xff] }
  0x93   : > { %4491 = vst [vmem:[#allocation5_spill] sm:$0xff] %v3107_v41  ;;  %1393 = vmatmul.f32.gmra.mxu1 %v3107_v41  ;;  %1420 = vmatmul.f32.gmra.mxu2 %v3103_v37  ;;  %v3204_v46 = vmul.f32 %v3133_v54, %v482_v27  ;;  %v454_v52 = vadd.f32 %v2910_v51, %v396_v34  ;;  %v1277_v54 = vld [vmem:[%s4415_s4 + $0x238] sm:$0xff] }
  0x94   : > { %1441 = vmatmul.f32.gmra.mxu3 %v3118_v48  ;;  %1810 = vmatpush.msrb.mxu0 %v1277_v54  ;;  %v397_v34 = vmul.f32 %v2888_v43, %v339_v21  ;;  %v1271_v21 = vld [vmem:[%s4415_s4 + $0x208] sm:$0xff] }
  0x95   : > { %836 = vperm.xlu1 %2682, %v572_v50   ;;  %1698 = vmatpush.msrb.mxu3 %v1260_v26  ;;  %4496 = vst [vmem:[#allocation10_spill] sm:$0xff] %v3204_v46  ;;  %v327_v50 = vld [vmem:[%s2883_s29 + $0xf8] sm:$0xff]  ;;  %v1275_v26 = vld [vmem:[%s4415_s4 + $0x228] sm:$0xff] }
  0x96   : > { %831 = vperm.xlu0 %2681, %v571_v53   ;;  %841 = vperm.xlu2 %2683, %v573_v2   ;;  %v302_v53 = vld [vmem:[%s2883_s29 + $0x30] sm:$0xff]  ;;  %v385_v57 = vmul.f32 %v2888_v43, %v327_v50  ;;  %v1255_v50 = vld [vmem:[%s4415_s4 + $0x188] sm:$0xff]  ;;  %v455_v58 = vadd.f32 %v2910_v51, %v397_v34 }
  0x97   : > { %v652_v5 = vpop.permute.xlu1 %651  ;;  %v314_v2 = vld [vmem:[%s2883_s29 + $0x90] sm:$0xff]  ;;  %v360_v61 = vmul.f32 %v2888_v43, %v302_v53  ;;  %1811 = vmatpush.msrb.mxu0 %v1276_v0  ;;  %1474 = vmatpush.msrb.mxu1 %v1226_v1  ;;  %v1254_v0 = vld [vmem:[%s4415_s4 + $0x180] sm:$0xff]  ;;  %v1273_v1 = vld [vmem:[%s4415_s4 + $0x218] sm:$0xff] }
  0x98   : > { %v772_v7 = vpop.permute.xlu0 %771  ;;  %v3157_v8 = vmul.f32 %v652_v5, %v481_v55  ;;  %v1259_v55 = vld [vmem:[%s4415_s4 + $0x1a8] sm:$0xff]  ;;  %v372_v63 = vmul.f32 %v2888_v43, %v314_v2  ;;  %v508_v5 = vmax.f32 %v454_v52, 0.0  ;;  %v607_v9 = vpop.permute.xlu2 %606  ;;  %v443_v15 = vadd.f32 %v2910_v51, %v385_v57  ;;  %1588 = vmatpush.msrb.mxu2 %v1241_v3  ;;  %v330_v34 = vld [vmem:[%s2883_s29 + $0x110] sm:$0xff] }
  0x99   : > { %v3164_v13 = vmul.f32 %v772_v7, %v505_v62  ;;  %v496_v62 = vmax.f32 %v442_v49, 0.0  ;;  %1699 = vmatpush.msrb.mxu3 %v1259_v55  ;;  %v418_v16 = vadd.f32 %v2910_v51, %v360_v61  ;;  %1812 = vmatpush.msrb.mxu0 %v1275_v26  ;;  %v387_v49 = vmul.f32 %v2888_v43, %v329_v22  ;;  %v1223_v3 = vld [vmem:[%s4415_s4 + $0x88] sm:$0xff] }
  0x9a   : > { %4493 = vst [vmem:[#allocation7_spill] sm:$0xff] %v3157_v8  ;;  %v430_v19 = vadd.f32 %v2910_v51, %v372_v63  ;;  %v497_v27 = vmax.f32 %v443_v15, 0.0  ;;  %1475 = vmatpush.msrb.mxu1 %v1225_v29  ;;  %1589 = vmatpush.msrb.mxu2 %v1240_v30  ;;  %v1238_v63 = vld [vmem:[%s4415_s4 + $0x100] sm:$0xff] }
  0x9b   : > { %1396 = vmatmul.f32.gmra.mxu1 %v3157_v8  ;;  %1423 = vmatmul.f32.gmra.mxu2 %v3161_v10  ;;  %v472_v32 = vmax.f32 %v418_v16, 0.0  ;;  %v445_v61 = vadd.f32 %v2910_v51, %v387_v49  ;;  %v509_v16 = vmax.f32 %v455_v58, 0.0  ;;  %v388_v58 = vmul.f32 %v2888_v43, %v330_v34 }
  0x9c   : > { %1444 = vmatmul.f32.gmra.mxu3 %v3164_v13  ;;  %1590 = vmatpush.msrb.mxu2 %v1239_v45  ;;  %v1333_v45 = vld [vmem:[%s4415_s4 + $0x3f8] sm:$0xff] }
  0x9d   : > { %1700 = vmatpush.msrb.mxu3 %v1258_v60  ;;  %v3291_v54 = vmul.f32 %v607_v9, %v472_v32  ;;  %v1272_v9 = vld [vmem:[%s4415_s4 + $0x210] sm:$0xff]  ;;  %v499_v22 = vmax.f32 %v445_v61, 0.0  ;;  %v305_v32 = vld [vmem:[%s2883_s29 + $0x48] sm:$0xff] }
  0x9e   : > { %1591 = vmatpush.msrb.mxu2 %v1238_v63 }
  0x9f   : > { %v777_v38 = vpop.permute.xlu1 %776  ;;  %1701 = vmatpush.msrb.mxu3 %v1257_v25 }
  0xa0   : > { %v3200_v39 = vmul.f32 %v777_v38, %v506_v20  ;;  %v592_v44 = vpop.permute.xlu0 %591  ;;  %v3251_v20 = vmul.f32 %v787_v33, %v508_v5  ;;  %v484_v33 = vmax.f32 %v430_v19, 0.0  ;;  %v1274_v38 = vld [vmem:[%s4415_s4 + $0x220] sm:$0xff]  ;;  %v742_v60 = vpop.permute.xlu2 %741 }
  0xa1   : > { %v3206_v47 = vmul.f32 %v592_v44, %v469_v28  ;;  %v373_v28 = vmul.f32 %v2888_v43, %v315_v12  ;;  %v1224_v44 = vld [vmem:[%s4415_s4 + $0x90] sm:$0xff]  ;;  %1813 = vmatpush.msrb.mxu0 %v1274_v38  ;;  %1702 = vmatpush.msrb.mxu3 %v1256_v31  ;;  %v1222_v12 = vld [vmem:[%s4415_s4 + $0x80] sm:$0xff] }
  0xa2   : > { %4495 = vst [vmem:[#allocation9_spill] sm:$0xff] %v3200_v39  ;;  %1476 = vmatpush.msrb.mxu1 %v1224_v44  ;;  %v1270_v38 = vld [vmem:[%s4415_s4 + $0x200] sm:$0xff]  ;;  %v342_v44 = vld [vmem:[%s2883_s29 + $0x170] sm:$0xff] }
  0xa3   : > { %1372 = vmatmul.f32.gmra.mxu0 %v3206_v47  ;;  %1399 = vmatmul.f32.gmra.mxu1 %v3204_v46  ;;  %4497 = vst [vmem:[#allocation11_spill] sm:$0xff] %v3251_v20  ;;  %v431_v55 = vadd.f32 %v2910_v51, %v373_v28 }
  0xa4   : > { %1447 = vmatmul.f32.gmra.mxu3 %v3200_v39  ;;  %1814 = vmatpush.msrb.mxu0 %v1273_v1 }
  0xa5   : > { %1703 = vmatpush.msrb.mxu3 %v1255_v50  ;;  %v485_v5 = vmax.f32 %v431_v55, 0.0  ;;  %1477 = vmatpush.msrb.mxu1 %v1223_v3  ;;  %v446_v3 = vadd.f32 %v2910_v51, %v388_v58 }
  0xa6   : > { %1815 = vmatpush.msrb.mxu0 %v1272_v9  ;;  %v318_v9 = vld [vmem:[%s2883_s29 + $0xb0] sm:$0xff] }
  0xa7   : > { %v597_v7 = vpop.permute.xlu1 %596  ;;  %1704 = vmatpush.msrb.mxu3 %v1254_v0  ;;  %1478 = vmatpush.msrb.mxu1 %v1222_v12  ;;  %v1316_v12 = vld [vmem:[%s4415_s4 + $0x370] sm:$0xff] }
  0xa8   : > { %v3243_v11 = vmul.f32 %v597_v7, %v470_v56  ;;  %v727_v14 = vpop.permute.xlu0 %726  ;;  %v317_v56 = vld [vmem:[%s2883_s29 + $0xa8] sm:$0xff]  ;;  %v399_v7 = vmul.f32 %v2888_v43, %v341_v59  ;;  %1816 = vmatpush.msrb.mxu0 %v1271_v21  ;;  %v682_v49 = vpop.permute.xlu2 %681  ;;  %v400_v59 = vmul.f32 %v2888_v43, %v342_v44  ;;  %v500_v21 = vmax.f32 %v446_v3, 0.0 }
  0xa9   : > { %v3247_v18 = vmul.f32 %v727_v14, %v496_v62  ;;  %v303_v62 = vld [vmem:[%s2883_s29 + $0x38] sm:$0xff]  ;;  %v375_v15 = vmul.f32 %v2888_v43, %v317_v56  ;;  %2141 = vmatpush.msra.mxu3 %v1333_v45 }
  0xaa   : > { %v1317_v14 = vld [vmem:[%s4415_s4 + $0x378] sm:$0xff]  ;;  %v361_v19 = vmul.f32 %v2888_v43, %v303_v62  ;;  %v457_v28 = vadd.f32 %v2910_v51, %v399_v7  ;;  %1817 = vmatpush.msrb.mxu0 %v1270_v38  ;;  %v458_v7 = vadd.f32 %v2910_v51, %v400_v59 }
  0xab   : > { %1375 = vmatmul.f32.gmra.mxu0 %v3243_v11  ;;  %1426 = vmatmul.f32.gmra.mxu2 %v3247_v18  ;;  %v433_v29 = vadd.f32 %v2910_v51, %v375_v15  ;;  %v298_v15 = vld [vmem:[%s2883_s29 + $0x10] sm:$0x3] }
  0xac   : > { %1450 = vmatmul.f32.gmra.mxu3 %v3251_v20  ;;  %2028 = vmatpush.msra.mxu2 %v1317_v14  ;;  %v419_v31 = vadd.f32 %v2910_v51, %v361_v19  ;;  %v511_v50 = vmax.f32 %v457_v28, 0.0  ;;  %v1349_v14 = vld [vmem:[%s4415_s4 + $0x478] sm:$0xff]  ;;  %v356_v28 = vmul.f32 %v2888_v43, %v298_v15  ;;  %v1315_v15 = vld [vmem:[%s4415_s4 + $0x368] sm:$0xff] }
  0xad   : > { %v487_v55 = vmax.f32 %v433_v29, 0.0  ;;  %2254 = vmatpush.msra.mxu0 %v1349_v14  ;;  %v1348_v14 = vld [vmem:[%s4415_s4 + $0x470] sm:$0xff] }
  0xae   : > { %v473_v56 = vmax.f32 %v419_v31, 0.0  ;;  %2029 = vmatpush.msra.mxu2 %v1316_v12 }
  0xaf   : > { %v732_v52 = vpop.permute.xlu1 %731  ;;  %v3360_v0 = vmul.f32 %v682_v49, %v487_v55  ;;  %v414_v49 = vadd.f32 %v2910_v51, %v356_v28  ;;  %v1300_v55 = vld [vmem:[%s4415_s4 + $0x2f0] sm:$0xff]  ;;  %2255 = vmatpush.msra.mxu0 %v1348_v14  ;;  %v304_v28 = vld [vmem:[%s2883_s29 + $0x40] sm:$0x3] }
  0xb0   : > { %v3288_v53 = vmul.f32 %v732_v52, %v497_v27  ;;  %v667_v2 = vpop.permute.xlu0 %666  ;;  %v363_v52 = vmul.f32 %v2888_v43, %v305_v32  ;;  %2030 = vmatpush.msra.mxu2 %v1315_v15 }
  0xb1   : > { %v3294_v57 = vmul.f32 %v667_v2, %v484_v33  ;;  %v3338_v33 = vmul.f32 %v742_v60, %v499_v22  ;;  %v1301_v2 = vld [vmem:[%s4415_s4 + $0x2f8] sm:$0xff]  ;;  %4502 = vst [vmem:[#allocation16_spill] sm:$0xff] %v3360_v0  ;;  %v376_v22 = vmul.f32 %v2888_v43, %v318_v9  ;;  %v468_v59 = vmax.f32 %v414_v49, 0.0 }
  0xb2   : > { %4498 = vst [vmem:[#allocation12_spill] sm:$0xff] %v3288_v53  ;;  %1915 = vmatpush.msra.mxu1 %v1301_v2  ;;  %v421_v63 = vadd.f32 %v2910_v51, %v363_v52  ;;  %v1332_v52 = vld [vmem:[%s4415_s4 + $0x3f0] sm:$0xff]  ;;  %v1085_v49 = vrot.slane %v3206_v47, 2  ;;  %2031 = vmatpush.msra.mxu2 %v1314_v17 }
  0xb3   : > { %4499 = vst [vmem:[#allocation13_spill] sm:$0xff] %v3294_v57  ;;  %1378 = vmatmul.f32.gmra.mxu0 %v3291_v54  ;;  %1402 = vmatmul.f32.gmra.mxu1 %v3294_v57  ;;  %v434_v44 = vadd.f32 %v2910_v51, %v376_v22  ;;  %v958_v22 = vrot.slane %v3206_v47, 1 }
  0xb4   : > { %1429 = vmatmul.f32.gmra.mxu2 %v3288_v53  ;;  %2142 = vmatpush.msra.mxu3 %v1332_v52 }
  0xb5   : > { %1916 = vmatpush.msra.mxu1 %v1300_v55 }
  0xb7   : > { %v672_v25 = vpop.permute.xlu1 %671 }
  0xb8   : > { %v3330_v26 = vmul.f32 %v672_v25, %v485_v5  ;;  %v792_v27 = vpop.permute.xlu0 %791  ;;  %v306_v5 = vld [vmem:[%s2883_s29 + $0x50] sm:$0xff]  ;;  %v807_v25 = vpop.permute.xlu2 %806 }
  0xb9   : > { %v3334_v30 = vmul.f32 %v792_v27, %v509_v16  ;;  %v475_v16 = vmax.f32 %v421_v63, 0.0  ;;  %v364_v19 = vmul.f32 %v2888_v43, %v306_v5  ;;  %v512_v27 = vmax.f32 %v458_v7, 0.0 }
  0xba   : > { %4500 = vst [vmem:[#allocation14_spill] sm:$0xff] %v3330_v26 }
  0xbb   : > { %4501 = vst [vmem:[#allocation15_spill] sm:$0xff] %v3334_v30  ;;  %1405 = vmatmul.f32.gmra.mxu1 %v3330_v26  ;;  %1453 = vmatmul.f32.gmra.mxu3 %v3334_v30  ;;  %v422_v34 = vadd.f32 %v2910_v51, %v364_v19  ;;  %v3387_v45 = vmul.f32 %v807_v25, %v512_v27  ;;  %v959_v19 = vrot.slane %v3243_v11, 1 }
  0xbc   : > { %1432 = vmatmul.f32.gmra.mxu2 %v3338_v33 }
  0xbd   : > { %v476_v2 = vmax.f32 %v422_v34, 0.0  ;;  %v960_v27 = vsel %vm952_vm1, %v958_v22, %v959_v19 }
  0xbf   : > { %v802_v60 = vpop.permute.xlu1 %801 }
  0xc0   : > { %v3357_v61 = vmul.f32 %v802_v60, %v511_v50  ;;  %v612_v62 = vpop.permute.xlu0 %611  ;;  %v301_v50 = vld [vmem:[%s2883_s29 + $0x28] sm:$0x3] }
  0xc1   : > { %v3362_v1 = vmul.f32 %v612_v62, %v473_v56  ;;  %v488_v56 = vmax.f32 %v434_v44, 0.0  ;;  %v359_v58 = vmul.f32 %v2888_v43, %v301_v50  ;;  %v587_v62 = vpop.permute.xlu2 %586  ;;  %v1347_v50 = vld [vmem:[%s4415_s4 + $0x468] sm:$0xff] }
  0xc2   : > { %v846_v9 = vmul.f32 %v587_v62, %v468_v59  ;;  %2256 = vmatpush.msra.mxu0 %v1347_v50 }
  0xc3   : > { %1381 = vmatmul.f32.gmra.mxu0 %v3362_v1  ;;  %1408 = vmatmul.f32.gmra.mxu1 %v3360_v0  ;;  %v417_v7 = vadd.f32 %v2910_v51, %v359_v58  ;;  %v963_v58 = vrot.slane %v3291_v54, 1  ;;  %v1091_v15 = vrot.slane %v3362_v1, 2 }
  0xc4   : > { %1456 = vmatmul.f32.gmra.mxu3 %v3357_v61  ;;  %v1083_v12 = vrot.slane %v846_v9, 2  ;;  %v956_v34 = vrot.slane %v846_v9, 1  ;;  %v307_v9 = vld [vmem:[%s2883_s29 + $0x58] sm:$0x3] }
  0xc7   : > { %v622_v29 = vpop.permute.xlu1 %621 }
  0xc8   : > { %v3381_v31 = vmul.f32 %v622_v29, %v475_v16  ;;  %v747_v32 = vpop.permute.xlu0 %746  ;;  %v471_v16 = vmax.f32 %v417_v7, 0.0  ;;  %v1331_v29 = vld [vmem:[%s4415_s4 + $0x3e8] sm:$0xff]  ;;  %v1298_v7 = vld [vmem:[%s4415_s4 + $0x2e0] sm:$0xff] }
  0xc9   : > { %v3384_v38 = vmul.f32 %v747_v32, %v500_v21  ;;  %v1299_v32 = vld [vmem:[%s4415_s4 + $0x2e8] sm:$0xff]  ;;  %2143 = vmatpush.msra.mxu3 %v1331_v29  ;;  %v1313_v29 = vld [vmem:[%s4415_s4 + $0x358] sm:$0xff] }
  0xca   : > { %1917 = vmatpush.msra.mxu1 %v1299_v32  ;;  %2032 = vmatpush.msra.mxu2 %v1313_v29  ;;  %v1095_v17 = vrot.slane %v3381_v31, 2 }
  0xcb   : > { %4503 = vst [vmem:[#allocation17_spill] sm:$0xff] %v3384_v38  ;;  %1384 = vmatmul.f32.gmra.mxu0 %v3381_v31  ;;  %1435 = vmatmul.f32.gmra.mxu2 %v3384_v38 }
  0xcc   : > { %1459 = vmatmul.f32.gmra.mxu3 %v3387_v45  ;;  %1918 = vmatpush.msra.mxu1 %v1298_v7  ;;  %v974_v7 = vrot.slane %v3107_v41, 1 }
  0xcf   : > { %v627_v60 = vpop.permute.xlu1 %626 }
  0xd0   : > { %v3401_v63 = vmul.f32 %v627_v60, %v476_v2  ;;  %v687_v3 = vpop.permute.xlu0 %686  ;;  %v957_v2 = vsel %vm952_vm1, %v954_v23, %v956_v34  ;;  %v968_v34 = vrot.slane %v3381_v31, 1 }
  0xd1   : > { %v3403_v5 = vmul.f32 %v687_v3, %v488_v56  ;;  %v1330_v3 = vld [vmem:[%s4415_s4 + $0x3e0] sm:$0xff] }
  0xd2   : > { %4504 = vst [vmem:[#allocation18_spill] sm:$0xff] %v3401_v63  ;;  %2144 = vmatpush.msra.mxu3 %v1330_v3 }
  0xd3   : > { %4505 = vst [vmem:[#allocation19_spill] sm:$0xff] %v3403_v5  ;;  %1387 = vmatmul.f32.gmra.mxu0 %v3401_v63  ;;  %1411 = vmatmul.f32.gmra.mxu1 %v3403_v5 }
  0xd4   : > { %1592 = vmatmul.f32.vlgmr.msrb.gmra.mxu2 %v2996_v35  ;;  %1705 = vmatmul.f32.vlgmr.msrb.gmra.mxu3 %v3206_v47  ;;  %v1084_v35 = vsel %vm1079_vm0, %v1081_v24, %v1083_v12  ;;  %v1086_v24 = vrot.slane %v3243_v11, 2  ;;  %v1346_v12 = vld [vmem:[%s4415_s4 + $0x460] sm:$0xff] }
  0xd5   : > { %2257 = vmatpush.msra.mxu0 %v1346_v12 }
  0xd7   : > { %v617_v23 = vpop.permute.xlu1 %616 }
  0xd8   : > { %v602_v21 = vpop.permute.xlu0 %601 }
  0xd9   : > { %v849_v25 = vmul.f32 %v602_v21, %v471_v16  ;;  %v3472_v16 = vld [vmem:[%s4412_s1] ss:$0 sm:$0xff]  ;;  %v1090_v21 = vrot.slane %v3291_v54, 2 }
  0xdb   : > { %1479 = vmatmul.f32.vlgmr.msrb.gmra.mxu1 %v3001_v36  ;;  %1818 = vmatmul.f32.vlgmr.msrb.gmra.mxu0 %v960_v27  ;;  %v362_v36 = vmul.f32 %v2888_v43, %v304_v28  ;;  %v961_v44 = vrot.slane %v849_v25, 1  ;;  %v3443_v43 = vsel %vm1079_vm0, %v1085_v49, %v1086_v24  ;;  %v1088_v56 = vrot.slane %v849_v25, 2 }
  0xdc   : > { %1595 = vmatmul.f32.gmra.mxu2 %v1084_v35  ;;  %1708 = vmatmul.f32.gmra.mxu3 %v3243_v11  ;;  %v964_v11 = vrot.slane %v3362_v1, 1  ;;  %v3483_v25 = vsel %vm1079_vm0, %v1090_v21, %v1091_v15  ;;  %v969_v28 = vrot.slane %v3401_v63, 1 }
  0xdd   : > { %v420_v52 = vadd.f32 %v2910_v51, %v362_v36  ;;  %v962_v55 = vsel %vm952_vm1, %v959_v19, %v961_v44  ;;  %v3456_v62 = vsel %vm1079_vm0, %v1086_v24, %v1088_v56  ;;  %v365_v19 = vmul.f32 %v3472_v16, %v307_v9  ;;  %v1329_v36 = vld [vmem:[%s4415_s4 + $0x3d8] sm:$0xff]  ;;  %v310_v24 = vld [vmem:[%s2883_s29 + $0x70] sm:$0x3] }
  0xde   : > { %v3453_v60 = vsel %vm952_vm1, %v963_v58, %v964_v11  ;;  %2145 = vmatpush.msra.mxu3 %v1329_v36  ;;  %v3498_v44 = vsel %vm952_vm1, %v968_v34, %v969_v28 }
  0xdf   : > { %v474_v47 = vmax.f32 %v420_v52, 0.0  ;;  %v1297_v52 = vld [vmem:[%s4415_s4 + $0x2d8] sm:$0xff] }
  0xe0   : > { %1919 = vmatpush.msra.mxu1 %v1297_v52  ;;  %v647_v9 = vpop.permute.xlu0 %646  ;;  %v1344_v52 = vld [vmem:[%s4415_s4 + $0x450] sm:$0xff] }
  0xe1   : > { %v852_v59 = vmul.f32 %v617_v23, %v474_v47  ;;  %v3520_v23 = vld [vmem:[%s4413_s2] ss:$0 sm:$0xff] }
  0xe3   : > { %1482 = vmatmul.f32.gmra.mxu1 %v957_v2  ;;  %1821 = vmatmul.f32.gmra.mxu0 %v962_v55  ;;  %v966_v14 = vrot.slane %v852_v59, 1  ;;  %v1093_v35 = vrot.slane %v852_v59, 2  ;;  %v368_v2 = vmul.f32 %v3472_v16, %v310_v24  ;;  %v1101_v24 = vrot.slane %v3107_v41, 2 }
  0xe4   : > { %1598 = vmatmul.f32.gmra.mxu2 %v3443_v43  ;;  %1711 = vmatmul.f32.gmra.mxu3 %v3291_v54 }
  0xe5   : > { %v3480_v22 = vsel %vm952_vm1, %v964_v11, %v966_v14  ;;  %v3503_v49 = vsel %vm1079_vm0, %v1091_v15, %v1093_v35  ;;  %v1345_v11 = vld [vmem:[%s4415_s4 + $0x458] sm:$0xff]  ;;  %v426_v56 = vadd.f32 %v3520_v23, %v368_v2  ;;  %v1312_v14 = vld [vmem:[%s4415_s4 + $0x350] sm:$0xff]  ;;  %v973_v15 = vrot.slane %v3006_v40, 1 }
  0xe6   : > { %2258 = vmatpush.msra.mxu0 %v1345_v11  ;;  %2033 = vmatpush.msra.mxu2 %v1312_v14  ;;  %v1100_v2 = vrot.slane %v3006_v40, 2  ;;  %v662_v14 = vpop.permute.xlu1 %661 }
  0xe7   : > { %v480_v3 = vmax.f32 %v426_v56, 0.0 }
  0xe8   : > { %2259 = vmatpush.msra.mxu0 %v1344_v52 }
  0xe9   : > { %v858_v21 = vmul.f32 %v647_v9, %v480_v3  ;;  %v978_v9 = vrot.slane %v3157_v8, 1 }
  0xeb   : > { %1485 = vmatmul.f32.gmra.mxu1 %v960_v27  ;;  %1824 = vmatmul.f32.gmra.mxu0 %v3453_v60  ;;  %v423_v27 = vadd.f32 %v2910_v51, %v365_v19  ;;  %v632_v51 = vpop.permute.xlu2 %631  ;;  %v1328_v19 = vld [vmem:[%s4415_s4 + $0x3d0] sm:$0xff]  ;;  %v976_v36 = vrot.slane %v858_v21, 1 }
  0xec   : > { %1601 = vmatmul.f32.gmra.mxu2 %v3456_v62  ;;  %1714 = vmatmul.f32.gmra.mxu3 %v3362_v1 }
  0xed   : > { %v477_v32 = vmax.f32 %v423_v27, 0.0  ;;  %2146 = vmatpush.msra.mxu3 %v1328_v19  ;;  %v3542_v27 = vsel %vm952_vm1, %v973_v15, %v974_v7  ;;  %v3571_v11 = vsel %vm952_vm1, %v974_v7, %v976_v36  ;;  %v1103_v7 = vrot.slane %v858_v21, 2  ;;  %v1311_v15 = vld [vmem:[%s4415_s4 + $0x348] sm:$0xff]  ;;  %v316_v21 = vld [vmem:[%s2883_s29 + $0xa0] sm:$0x3] }
  0xee   : > { %4508 = vst [vmem:[#allocation22_spill] sm:$0xff] %v3542_v27  ;;  %2034 = vmatpush.msra.mxu2 %v1311_v15  ;;  %v1106_v15 = vrot.slane %v3204_v46, 2 }
  0xef   : > { %v855_v50 = vmul.f32 %v632_v51, %v477_v32  ;;  %v1296_v32 = vld [vmem:[%s4415_s4 + $0x2d0] sm:$0xff]  ;;  %4511 = vst [vmem:[#allocation25_spill] sm:$0xff] %v3571_v11  ;;  %v3600_v52 = vsel %vm1079_vm0, %v1101_v24, %v1103_v7  ;;  %v1343_v7 = vld [vmem:[%s4415_s4 + $0x448] sm:$0xff] }
  0xf0   : > { %1920 = vmatpush.msra.mxu1 %v1296_v32  ;;  %v1327_v32 = vld [vmem:[%s4415_s4 + $0x3c8] sm:$0xff]  ;;  %4515 = vst [vmem:[#allocation29_spill] sm:$0xff] %v3600_v52  ;;  %2260 = vmatpush.msra.mxu0 %v1343_v7  ;;  %v984_v7 = vrot.slane %v3330_v26, 1 }
  0xf1   : > { %v971_v47 = vrot.slane %v855_v50, 1  ;;  %v1098_v12 = vrot.slane %v855_v50, 2  ;;  %2147 = vmatpush.msra.mxu3 %v1327_v32 }
  0xf3   : > { %1488 = vmatmul.f32.gmra.mxu1 %v962_v55  ;;  %1827 = vmatmul.f32.gmra.mxu0 %v3480_v22  ;;  %v1096_v55 = vrot.slane %v3401_v63, 2  ;;  %v3524_v58 = vsel %vm952_vm1, %v969_v28, %v971_v47  ;;  %v313_v28 = vld [vmem:[%s2883_s29 + $0x88] sm:$0x3]  ;;  %v3568_v47 = vpop.f32.mrf.mxu0 }
  0xf4   : > { %1604 = vmatmul.f32.gmra.mxu2 %v3483_v25  ;;  %1717 = vmatmul.f32.gmra.mxu3 %v3381_v31  ;;  %4506 = vst [vmem:[#allocation20_spill] sm:$0xff] %v3524_v58  ;;  %v371_v34 = vmul.f32 %v3472_v16, %v313_v28  ;;  %v979_v28 = vrot.slane %v3204_v46, 1 }
  0xf5   : > { %v3528_v59 = vsel %vm1079_vm0, %v1095_v17, %v1096_v55  ;;  %v3547_v35 = vsel %vm1079_vm0, %v1096_v55, %v1098_v12  ;;  %v3575_v17 = vsel %vm1079_vm0, %v1100_v2, %v1101_v24 }
  0xf6   : > { %4507 = vst [vmem:[#allocation21_spill] sm:$0xff] %v3528_v59  ;;  %v429_v55 = vadd.f32 %v3520_v23, %v371_v34  ;;  %v3595_v36 = vsel %vm952_vm1, %v978_v9, %v979_v28 }
  0xf7   : > { %4509 = vst [vmem:[#allocation23_spill] sm:$0xff] %v3547_v35 }
  0xf8   : > { %4512 = vst [vmem:[#allocation26_spill] sm:$0xff] %v3575_v17  ;;  %v483_v56 = vmax.f32 %v429_v55, 0.0  ;;  %v1295_v55 = vld [vmem:[%s4415_s4 + $0x2c8] sm:$0xff] }
  0xf9   : > { %4514 = vst [vmem:[#allocation28_spill] sm:$0xff] %v3595_v36  ;;  %1921 = vmatpush.msra.mxu1 %v1295_v55 }
  0xfa   : > { %v861_v34 = vmul.f32 %v662_v14, %v483_v56  ;;  %v374_v56 = vmul.f32 %v3472_v16, %v316_v21  ;;  %v1105_v14 = vrot.slane %v3157_v8, 2 }
  0xfb   : > { %1491 = vmatmul.f32.gmra.mxu1 %v3453_v60  ;;  %1830 = vmatmul.f32.gmra.mxu0 %v3498_v44  ;;  %v3603_v2 = vpop.f32.mrf.mxu0 }
  0xfc   : > { %1607 = vmatmul.f32.gmra.mxu2 %v3503_v49  ;;  %1720 = vmatmul.f32.gmra.mxu3 %v3401_v63  ;;  %v981_v9 = vrot.slane %v861_v34, 1  ;;  %v432_v32 = vadd.f32 %v3520_v23, %v374_v56  ;;  %v3628_v55 = vsel %vm1079_vm0, %v1105_v14, %v1106_v15  ;;  %v983_v14 = vrot.slane %v3294_v57, 1  ;;  %v328_v63 = vld [vmem:[%s2883_s29 + $0x100] sm:$0x3] }
  0xfd   : > { %4519 = vst [vmem:[#allocation33_spill] sm:$0xff] %v3628_v55 }
  0xfe   : > { %v3624_v21 = vsel %vm952_vm1, %v979_v28, %v981_v9  ;;  %v486_v56 = vmax.f32 %v432_v32, 0.0  ;;  %v1108_v28 = vrot.slane %v861_v34, 2  ;;  %v1310_v9 = vld [vmem:[%s4415_s4 + $0x340] sm:$0xff]  ;;  %v3646_v32 = vsel %vm952_vm1, %v983_v14, %v984_v7 }
  0xff   : > { %v3561_v50 = vpop.f32.mrf.mxu1  ;;  %4518 = vst [vmem:[#allocation32_spill] sm:$0xff] %v3624_v21  ;;  %2035 = vmatpush.msra.mxu2 %v1310_v9  ;;  %v1342_v14 = vld [vmem:[%s4415_s4 + $0x440] sm:$0xff] }
 0x100   : > { %4521 = vst [vmem:[#allocation35_spill] sm:$0xff] %v3646_v32  ;;  %v3651_v34 = vsel %vm1079_vm0, %v1106_v15, %v1108_v28  ;;  %v1111_v28 = vrot.slane %v3330_v26, 2  ;;  %2261 = vmatpush.msra.mxu0 %v1342_v14 }
 0x101   : > { %4522 = vst [vmem:[#allocation36_spill] sm:$0xff] %v3651_v34 }
 0x103   : > { %1494 = vmatmul.f32.gmra.mxu1 %v3480_v22  ;;  %1833 = vmatmul.f32.gmra.mxu0 %v3524_v58 }
 0x104   : > { %1610 = vmatmul.f32.gmra.mxu2 %v3528_v59  ;;  %1723 = vmatmul.f32.gmra.mxu3 %v3006_v40 }
 0x106   : > { %v3550_v29 = vpop.f32.mrf.mxu2 }
 0x10b   : > { %1497 = vmatmul.f32.gmra.mxu1 %v3498_v44  ;;  %1836 = vmatmul.f32.gmra.mxu0 %v3542_v27 }
 0x10c   : > { %1613 = vmatmul.f32.gmra.mxu2 %v3547_v35  ;;  %1726 = vmatmul.f32.gmra.mxu3 %v3107_v41 }
 0x10e   : > { %v3558_v51 = vpop.f32.mrf.mxu3  ;;  %v3580_v3 = vpop.f32.mrf.mxu2 }
 0x10f   : > { %4510 = vst [vmem:[#allocation24_spill] sm:$0xff] %v3558_v51 }
 0x110   : > { %v3586_v19 = vpop.f32.mrf.mxu1 }
 0x113   : > { %1500 = vmatmul.f32.gmra.mxu1 %v3524_v58  ;;  %1839 = vmatmul.f32.gmra.mxu0 %v3571_v11 }
 0x114   : > { %1616 = vmatmul.f32.gmra.mxu2 %v3575_v17  ;;  %1729 = vmatmul.f32.gmra.mxu3 %v3157_v8  ;;  %v988_v17 = vrot.slane %v3360_v0, 1 }
 0x116   : > { %v3612_v24 = vpop.f32.mrf.mxu2 }
 0x117   : > { %v3588_v12 = vpop.f32.mrf.mxu3  ;;  %4516 = vst [vmem:[#allocation30_spill] sm:$0xff] %v3612_v24 }
 0x118   : > { %4513 = vst [vmem:[#allocation27_spill] sm:$0xff] %v3588_v12  ;;  %v3619_v12 = vpop.f32.mrf.mxu1 }
 0x11b   : > { %1503 = vmatmul.f32.gmra.mxu1 %v3542_v27  ;;  %1842 = vmatmul.f32.gmra.mxu0 %v3595_v36 }
 0x11c   : > { %1619 = vmatmul.f32.gmra.mxu2 %v3600_v52  ;;  %1732 = vmatmul.f32.gmra.mxu3 %v3204_v46  ;;  %v1326_v46 = vld [vmem:[%s4415_s4 + $0x3c0] sm:$0xff] }
 0x11d   : > { %2148 = vmatpush.msra.mxu3 %v1326_v46  ;;  %v1294_v46 = vld [vmem:[%s4415_s4 + $0x2c0] sm:$0xff] }
 0x11e   : > { %v3643_v52 = vpop.f32.mrf.mxu2  ;;  %1922 = vmatpush.msra.mxu1 %v1294_v46 }
 0x11f   : > { %v3621_v51 = vpop.f32.mrf.mxu3  ;;  %4520 = vst [vmem:[#allocation34_spill] sm:$0xff] %v3643_v52  ;;  %v999_v52 = vrot.slane %v3161_v10, 1 }
 0x120   : > { %4517 = vst [vmem:[#allocation31_spill] sm:$0xff] %v3621_v51  ;;  %v3631_v8 = vpop.f32.mrf.mxu0  ;;  %v677_v51 = vpop.permute.xlu2 %676 }
 0x121   : > { %v3654_v9 = vpop.f32.mrf.mxu1 }
 0x123   : > { %1506 = vmatmul.f32.gmra.mxu1 %v3571_v11  ;;  %1845 = vmatmul.f32.gmra.mxu0 %v3624_v21  ;;  %v319_v11 = vld [vmem:[%s2883_s29 + $0xb8] sm:$0x3] }
 0x124   : > { %1622 = vmatmul.f32.gmra.mxu2 %v3628_v55  ;;  %1735 = vmatmul.f32.gmra.mxu3 %v3294_v57  ;;  %v864_v55 = vmul.f32 %v677_v51, %v486_v56  ;;  %v377_v56 = vmul.f32 %v3472_v16, %v319_v11 }
 0x126   : > { %v986_v51 = vrot.slane %v864_v55, 1 }
 0x127   : > { %v3656_v41 = vpop.f32.mrf.mxu3 }
 0x128   : > { %4523 = vst [vmem:[#allocation37_spill] sm:$0xff] %v3656_v41  ;;  %v3664_v15 = vpop.f32.mrf.mxu0  ;;  %v1110_v41 = vrot.slane %v3294_v57, 2  ;;  %v3675_v46 = vsel %vm952_vm1, %v984_v7, %v986_v51  ;;  %v989_v7 = vrot.slane %v3403_v5, 1  ;;  %v1113_v51 = vrot.slane %v864_v55, 2  ;;  %v692_v57 = vpop.permute.xlu0 %691 }
 0x129   : > { %4525 = vst [vmem:[#allocation39_spill] sm:$0xff] %v3675_v46 }
 0x12a   : > { %v3679_v11 = vsel %vm1079_vm0, %v1110_v41, %v1111_v28  ;;  %v1309_v41 = vld [vmem:[%s4415_s4 + $0x338] sm:$0xff] }
 0x12b   : > { %1509 = vmatmul.f32.gmra.mxu1 %v3595_v36  ;;  %1848 = vmatmul.f32.gmra.mxu0 %v3646_v32  ;;  %4526 = vst [vmem:[#allocation40_spill] sm:$0xff] %v3679_v11 }
 0x12c   : > { %1625 = vmatmul.f32.gmra.mxu2 %v3651_v34  ;;  %1738 = vmatmul.f32.gmra.mxu3 %v3330_v26  ;;  %v435_v34 = vadd.f32 %v3520_v23, %v377_v56 }
 0x12d   : > { %2036 = vmatpush.msra.mxu2 %v1309_v41 }
 0x12e   : > { %v3672_v36 = vpop.f32.mrf.mxu2  ;;  %v489_v56 = vmax.f32 %v435_v34, 0.0  ;;  %v322_v34 = vld [vmem:[%s2883_s29 + $0xd0] sm:$0x3] }
 0x12f   : > { %4524 = vst [vmem:[#allocation38_spill] sm:$0xff] %v3672_v36  ;;  %v3686_v14 = vpop.f32.mrf.mxu3  ;;  %v380_v41 = vmul.f32 %v3472_v16, %v322_v34  ;;  %v1115_v34 = vrot.slane %v3360_v0, 2 }
 0x130   : > { %v3682_v26 = vpop.f32.mrf.mxu1  ;;  %4527 = vst [vmem:[#allocation41_spill] sm:$0xff] %v3686_v14  ;;  %v867_v36 = vmul.f32 %v692_v57, %v489_v56  ;;  %v3701_v14 = vsel %vm1079_vm0, %v1111_v28, %v1113_v51  ;;  %v1325_v28 = vld [vmem:[%s4415_s4 + $0x3b8] sm:$0xff] }
 0x131   : > { %4529 = vst [vmem:[#allocation43_spill] sm:$0xff] %v3701_v14  ;;  %v1293_v51 = vld [vmem:[%s4415_s4 + $0x2b8] sm:$0xff]  ;;  %2149 = vmatpush.msra.mxu3 %v1325_v28 }
 0x132   : > { %v991_v57 = vrot.slane %v867_v36, 1  ;;  %1923 = vmatpush.msra.mxu1 %v1293_v51 }
 0x133   : > { %1512 = vmatmul.f32.gmra.mxu1 %v3624_v21  ;;  %1851 = vmatmul.f32.gmra.mxu0 %v3675_v46  ;;  %v3692_v21 = vpop.f32.mrf.mxu0 }
 0x134   : > { %1628 = vmatmul.f32.gmra.mxu2 %v3679_v11  ;;  %1741 = vmatmul.f32.gmra.mxu3 %v3360_v0  ;;  %v3696_v11 = vsel %vm952_vm1, %v988_v17, %v989_v7  ;;  %v707_v0 = vpop.permute.xlu1 %706 }
 0x135   : > { %4528 = vst [vmem:[#allocation42_spill] sm:$0xff] %v3696_v11 }
 0x137   : > { %v3704_v55 = vpop.f32.mrf.mxu2 }
 0x138   : > { %4530 = vst [vmem:[#allocation44_spill] sm:$0xff] %v3704_v55  ;;  %v3709_v56 = vpop.f32.mrf.mxu1  ;;  %v438_v55 = vadd.f32 %v3520_v23, %v380_v41  ;;  %v994_v41 = vrot.slane %v3053_v4, 1 }
 0x13a   : > { %v492_v28 = vmax.f32 %v438_v55, 0.0  ;;  %v993_v55 = vrot.slane %v3009_v42, 1 }
 0x13b   : > { %1515 = vmatmul.f32.gmra.mxu1 %v3646_v32  ;;  %1854 = vmatmul.f32.gmra.mxu0 %v3696_v11  ;;  %v1116_v32 = vrot.slane %v3403_v5, 2 }
 0x13c   : > { %1631 = vmatmul.f32.gmra.mxu2 %v3701_v14  ;;  %1744 = vmatmul.f32.gmra.mxu3 %v3403_v5 }
 0x13d   : > { %v3729_v5 = vsel %vm1079_vm0, %v1115_v34, %v1116_v32  ;;  %v1341_v34 = vld [vmem:[%s4415_s4 + $0x438] sm:$0xff] }
 0x13e   : > { %v3711_v17 = vpop.f32.mrf.mxu3  ;;  %4533 = vst [vmem:[#allocation47_spill] sm:$0xff] %v3729_v5  ;;  %2262 = vmatpush.msra.mxu0 %v1341_v34 }
 0x13f   : > { %4531 = vst [vmem:[#allocation45_spill] sm:$0xff] %v3711_v17  ;;  %v3725_v17 = vsel %vm952_vm1, %v989_v7, %v991_v57  ;;  %v3734_v51 = vpop.f32.mrf.mxu2  ;;  %v1118_v7 = vrot.slane %v867_v36, 2  ;;  %v3751_v36 = vsel %vm952_vm1, %v993_v55, %v994_v41 }
 0x140   : > { %v3720_v14 = vpop.f32.mrf.mxu0  ;;  %4532 = vst [vmem:[#allocation46_spill] sm:$0xff] %v3725_v17 }
 0x141   : > { %4534 = vst [vmem:[#allocation48_spill] sm:$0xff] %v3734_v51  ;;  %v870_v51 = vmul.f32 %v707_v0, %v492_v28  ;;  %v3756_v40 = vsel %vm1079_vm0, %v1116_v32, %v1118_v7  ;;  %v1121_v28 = vrot.slane %v3053_v4, 2  ;;  %v1324_v32 = vld [vmem:[%s4415_s4 + $0x3b0] sm:$0xff] }
 0x142   : > { %4536 = vst [vmem:[#allocation50_spill] sm:$0xff] %v3756_v40  ;;  %v1292_v7 = vld [vmem:[%s4415_s4 + $0x2b0] sm:$0xff]  ;;  %2150 = vmatpush.msra.mxu3 %v1324_v32  ;;  %v722_v32 = vpop.permute.xlu2 %721 }
 0x143   : > { %1518 = vmatmul.f32.gmra.mxu1 %v3675_v46  ;;  %1857 = vmatmul.f32.gmra.mxu0 %v3725_v17  ;;  %v3745_v46 = vpop.f32.mrf.mxu1  ;;  %v996_v34 = vrot.slane %v870_v51, 1 }
 0x144   : > { %1634 = vmatmul.f32.gmra.mxu2 %v3729_v5  ;;  %1747 = vmatmul.f32.gmra.mxu3 %v3009_v42  ;;  %v1308_v5 = vld [vmem:[%s4415_s4 + $0x330] sm:$0xff] }
 0x145   : > { %2037 = vmatpush.msra.mxu2 %v1308_v5  ;;  %1924 = vmatpush.msra.mxu1 %v1292_v7 }
 0x147   : > { %v3737_v57 = vpop.f32.mrf.mxu3 }
 0x148   : > { %4535 = vst [vmem:[#allocation49_spill] sm:$0xff] %v3737_v57  ;;  %v3747_v27 = vpop.f32.mrf.mxu0  ;;  %v325_v57 = vld [vmem:[%s2883_s29 + $0xe8] sm:$0x3] }
 0x149   : > { %v383_v35 = vmul.f32 %v3472_v16, %v325_v57  ;;  %v1120_v57 = vrot.slane %v3009_v42, 2  ;;  %v998_v42 = vrot.slane %v3103_v37, 1 }
 0x14b   : > { %1521 = vmatmul.f32.gmra.mxu1 %v3696_v11  ;;  %1860 = vmatmul.f32.gmra.mxu0 %v3751_v36  ;;  %v3784_v11 = vsel %vm1079_vm0, %v1120_v57, %v1121_v28  ;;  %v1307_v57 = vld [vmem:[%s4415_s4 + $0x328] sm:$0xff] }
 0x14c   : > { %1637 = vmatmul.f32.gmra.mxu2 %v3756_v40  ;;  %1750 = vmatmul.f32.gmra.mxu3 %v3053_v4  ;;  %v3780_v4 = vsel %vm952_vm1, %v994_v41, %v996_v34  ;;  %4539 = vst [vmem:[#allocation53_spill] sm:$0xff] %v3784_v11  ;;  %v1340_v34 = vld [vmem:[%s4415_s4 + $0x430] sm:$0xff] }
 0x14d   : > { %2263 = vmatpush.msra.mxu0 %v1340_v34  ;;  %2038 = vmatpush.msra.mxu2 %v1307_v57 }
 0x14e   : > { %v3762_v5 = vpop.f32.mrf.mxu2 }
 0x14f   : > { %4537 = vst [vmem:[#allocation51_spill] sm:$0xff] %v3762_v5  ;;  %v3764_v0 = vpop.f32.mrf.mxu3 }
 0x150   : > { %4538 = vst [vmem:[#allocation52_spill] sm:$0xff] %v3764_v0  ;;  %v3773_v55 = vpop.f32.mrf.mxu0  ;;  %v3775_v40 = vpop.f32.mrf.mxu1  ;;  %v441_v0 = vadd.f32 %v3520_v23, %v383_v35  ;;  %v1123_v35 = vrot.slane %v870_v51, 2  ;;  %v3799_v51 = vsel %vm952_vm1, %v998_v42, %v999_v52 }
 0x152   : > { %v495_v7 = vmax.f32 %v441_v0, 0.0  ;;  %v3804_v24 = vsel %vm1079_vm0, %v1121_v28, %v1123_v35  ;;  %v1323_v28 = vld [vmem:[%s4415_s4 + $0x3a8] sm:$0xff] }
 0x153   : > { %1524 = vmatmul.f32.gmra.mxu1 %v3725_v17  ;;  %1863 = vmatmul.f32.gmra.mxu0 %v3780_v4 }
 0x154   : > { %1640 = vmatmul.f32.gmra.mxu2 %v3784_v11  ;;  %1753 = vmatmul.f32.gmra.mxu3 %v3103_v37  ;;  %v873_v58 = vmul.f32 %v722_v32, %v495_v7  ;;  %v1291_v7 = vld [vmem:[%s4415_s4 + $0x2a8] sm:$0xff] }
 0x155   : > { %2151 = vmatpush.msra.mxu3 %v1323_v28  ;;  %1925 = vmatpush.msra.mxu1 %v1291_v7  ;;  %v737_v28 = vpop.permute.xlu0 %736 }
 0x156   : > { %v1001_v57 = vrot.slane %v873_v58, 1 }
 0x157   : > { %v1593_v5 = vpop.f32.mrf.mxu2  ;;  %v1706_v41 = vpop.f32.mrf.mxu3 }
 0x158   : > { %v1480_v17 = vpop.f32.mrf.mxu1  ;;  %v1819_v11 = vpop.f32.mrf.mxu0 }
 0x159   : > { %v1481_v0 = vadd.f32 %v1480_v17, %v3568_v47  ;;  %v386_v47 = vmul.f32 %v3472_v16, %v328_v63 }
 0x15b   : > { %v1594_v59 = vadd.f32 %v1593_v5, %v1481_v0  ;;  %1527 = vmatmul.f32.gmra.mxu1 %v3751_v36  ;;  %1866 = vmatmul.f32.gmra.mxu0 %v3799_v51  ;;  %v1125_v5 = vrot.slane %v3103_v37, 2 }
 0x15c   : > { %1643 = vmatmul.f32.gmra.mxu2 %v3804_v24  ;;  %1756 = vmatmul.f32.gmra.mxu3 %v3161_v10 }
 0x15d   : > { %v1707_v34 = vadd.f32 %v1706_v41, %v1594_v59  ;;  %v1126_v59 = vrot.slane %v3161_v10, 2  ;;  %v3823_v41 = vsel %vm952_vm1, %v999_v52, %v1001_v57  ;;  %v1128_v52 = vrot.slane %v873_v58, 2 }
 0x15f   : > { %v3810_v17 = vadd.f32 %v1819_v11, %v1707_v34  ;;  %v1596_v42 = vpop.f32.mrf.mxu2  ;;  %v1709_v32 = vpop.f32.mrf.mxu3  ;;  %v444_v11 = vadd.f32 %v3520_v23, %v386_v47  ;;  %v1004_v47 = vrot.slane %v3288_v53, 1 }
 0x160   : > { %v1483_v35 = vpop.f32.mrf.mxu1  ;;  %v1822_v0 = vpop.f32.mrf.mxu0 }
 0x161   : > { %4540 = vst [vmem:[#allocation54_spill] sm:$0xff] %v3810_v17  ;;  %v1484_v63 = vadd.f32 %v1483_v35, %v3603_v2  ;;  %v3827_v17 = vsel %vm1079_vm0, %v1125_v5, %v1126_v59  ;;  %v498_v7 = vmax.f32 %v444_v11, 0.0  ;;  %v1339_v5 = vld [vmem:[%s4415_s4 + $0x428] sm:$0xff]  ;;  %v1003_v11 = vrot.slane %v3247_v18, 1 }
 0x162   : > { %4541 = vst [vmem:[#allocation55_spill] sm:$0xff] %v3827_v17  ;;  %2264 = vmatpush.msra.mxu0 %v1339_v5 }
 0x163   : > { %v1597_v34 = vadd.f32 %v1596_v42, %v1484_v63  ;;  %1530 = vmatmul.f32.gmra.mxu1 %v3780_v4  ;;  %1869 = vmatmul.f32.gmra.mxu0 %v3823_v41  ;;  %v1306_v63 = vld [vmem:[%s4415_s4 + $0x320] sm:$0xff] }
 0x164   : > { %1646 = vmatmul.f32.gmra.mxu2 %v3827_v17  ;;  %1759 = vmatmul.f32.gmra.mxu3 %v3247_v18  ;;  %v3849_v17 = vsel %vm1079_vm0, %v1126_v59, %v1128_v52  ;;  %v1322_v59 = vld [vmem:[%s4415_s4 + $0x3a0] sm:$0xff] }
 0x165   : > { %v1710_v2 = vadd.f32 %v1709_v32, %v1597_v34  ;;  %2039 = vmatpush.msra.mxu2 %v1306_v63  ;;  %v3844_v34 = vsel %vm952_vm1, %v1003_v11, %v1004_v47  ;;  %v1290_v52 = vld [vmem:[%s4415_s4 + $0x2a0] sm:$0xff]  ;;  %2152 = vmatpush.msra.mxu3 %v1322_v59  ;;  %v752_v59 = vpop.permute.xlu1 %751 }
 0x166   : > { %1926 = vmatpush.msra.mxu1 %v1290_v52 }
 0x167   : > { %v3833_v57 = vadd.f32 %v1822_v0, %v1710_v2  ;;  %v1599_v42 = vpop.f32.mrf.mxu2  ;;  %v1712_v35 = vpop.f32.mrf.mxu3  ;;  %v876_v0 = vmul.f32 %v737_v28, %v498_v7  ;;  %v331_v2 = vld [vmem:[%s2883_s29 + $0x118] sm:$0x3] }
 0x168   : > { %v1486_v10 = vpop.f32.mrf.mxu1  ;;  %v1825_v32 = vpop.f32.mrf.mxu0 }
 0x169   : > { %4542 = vst [vmem:[#allocation56_spill] sm:$0xff] %v3833_v57  ;;  %v1487_v58 = vadd.f32 %v1486_v10, %v3631_v8  ;;  %v389_v8 = vmul.f32 %v3472_v16, %v331_v2  ;;  %v1006_v10 = vrot.slane %v876_v0, 1 }
 0x16b   : > { %v1600_v57 = vadd.f32 %v1599_v42, %v1487_v58  ;;  %1533 = vmatmul.f32.gmra.mxu1 %v3799_v51  ;;  %1872 = vmatmul.f32.gmra.mxu0 %v3844_v34  ;;  %v1131_v42 = vrot.slane %v3288_v53, 2  ;;  %v3868_v2 = vsel %vm952_vm1, %v1004_v47, %v1006_v10  ;;  %v1133_v47 = vrot.slane %v876_v0, 2 }
 0x16c   : > { %1649 = vmatmul.f32.gmra.mxu2 %v3849_v17  ;;  %1762 = vmatmul.f32.gmra.mxu3 %v3288_v53 }
 0x16d   : > { %v1713_v5 = vadd.f32 %v1712_v35, %v1600_v57  ;;  %v1130_v35 = vrot.slane %v3247_v18, 2 }
 0x16f   : > { %v3855_v28 = vadd.f32 %v1825_v32, %v1713_v5  ;;  %v1602_v7 = vpop.f32.mrf.mxu2  ;;  %v1715_v63 = vpop.f32.mrf.mxu3  ;;  %v447_v32 = vadd.f32 %v3520_v23, %v389_v8  ;;  %v1009_v8 = vrot.slane %v3384_v38, 1 }
 0x170   : > { %v1489_v11 = vpop.f32.mrf.mxu1  ;;  %v1828_v58 = vpop.f32.mrf.mxu0 }
 0x171   : > { %4543 = vst [vmem:[#allocation57_spill] sm:$0xff] %v3855_v28  ;;  %v1490_v57 = vadd.f32 %v1489_v11, %v3664_v15  ;;  %v3872_v28 = vsel %vm1079_vm0, %v1130_v35, %v1131_v42  ;;  %v501_v52 = vmax.f32 %v447_v32, 0.0  ;;  %v1305_v35 = vld [vmem:[%s4415_s4 + $0x318] sm:$0xff]  ;;  %v1008_v32 = vrot.slane %v3338_v33, 1 }
 0x172   : > { %4544 = vst [vmem:[#allocation58_spill] sm:$0xff] %v3872_v28  ;;  %2040 = vmatpush.msra.mxu2 %v1305_v35 }
 0x173   : > { %v1603_v5 = vadd.f32 %v1602_v7, %v1490_v57  ;;  %1536 = vmatmul.f32.gmra.mxu1 %v3823_v41  ;;  %1875 = vmatmul.f32.gmra.mxu0 %v3868_v2  ;;  %v1338_v57 = vld [vmem:[%s4415_s4 + $0x420] sm:$0xff] }
 0x174   : > { %1652 = vmatmul.f32.gmra.mxu2 %v3872_v28  ;;  %1765 = vmatmul.f32.gmra.mxu3 %v3338_v33  ;;  %v3894_v28 = vsel %vm1079_vm0, %v1131_v42, %v1133_v47  ;;  %v1321_v42 = vld [vmem:[%s4415_s4 + $0x398] sm:$0xff] }
 0x175   : > { %v1716_v15 = vadd.f32 %v1715_v63, %v1603_v5  ;;  %2265 = vmatpush.msra.mxu0 %v1338_v57  ;;  %v3889_v5 = vsel %vm952_vm1, %v1008_v32, %v1009_v8  ;;  %v1289_v47 = vld [vmem:[%s4415_s4 + $0x298] sm:$0xff]  ;;  %2153 = vmatpush.msra.mxu3 %v1321_v42  ;;  %v767_v42 = vpop.permute.xlu2 %766 }
 0x176   : > { %1927 = vmatpush.msra.mxu1 %v1289_v47 }
 0x177   : > { %v3878_v10 = vadd.f32 %v1828_v58, %v1716_v15  ;;  %v1605_v7 = vpop.f32.mrf.mxu2  ;;  %v1718_v11 = vpop.f32.mrf.mxu3  ;;  %v879_v58 = vmul.f32 %v752_v59, %v501_v52  ;;  %v334_v15 = vld [vmem:[%s2883_s29 + $0x130] sm:$0x3] }
 0x178   : > { %v1492_v53 = vpop.f32.mrf.mxu1  ;;  %v1831_v63 = vpop.f32.mrf.mxu0 }
 0x179   : > { %4545 = vst [vmem:[#allocation59_spill] sm:$0xff] %v3878_v10  ;;  %v1493_v0 = vadd.f32 %v1492_v53, %v3692_v21  ;;  %v392_v53 = vmul.f32 %v3472_v16, %v334_v15  ;;  %v1011_v21 = vrot.slane %v879_v58, 1 }
 0x17b   : > { %v1606_v10 = vadd.f32 %v1605_v7, %v1493_v0  ;;  %1539 = vmatmul.f32.gmra.mxu1 %v3844_v34  ;;  %1878 = vmatmul.f32.gmra.mxu0 %v3889_v5  ;;  %v1136_v7 = vrot.slane %v3384_v38, 2  ;;  %v3913_v15 = vsel %vm952_vm1, %v1009_v8, %v1011_v21  ;;  %v1138_v8 = vrot.slane %v879_v58, 2 }
 0x17c   : > { %1655 = vmatmul.f32.gmra.mxu2 %v3894_v28  ;;  %1768 = vmatmul.f32.gmra.mxu3 %v3384_v38 }
 0x17d   : > { %v1719_v57 = vadd.f32 %v1718_v11, %v1606_v10  ;;  %v1135_v11 = vrot.slane %v3338_v33, 2 }
 0x17f   : > { %v3900_v59 = vadd.f32 %v1831_v63, %v1719_v57  ;;  %v1608_v52 = vpop.f32.mrf.mxu2  ;;  %v1721_v35 = vpop.f32.mrf.mxu3  ;;  %v450_v63 = vadd.f32 %v3520_v23, %v392_v53  ;;  %v1013_v53 = vrot.slane %v3056_v6, 1 }
 0x180   : > { %v1495_v32 = vpop.f32.mrf.mxu1  ;;  %v1834_v0 = vpop.f32.mrf.mxu0 }
 0x181   : > { %4546 = vst [vmem:[#allocation60_spill] sm:$0xff] %v3900_v59  ;;  %v1496_v10 = vadd.f32 %v1495_v32, %v3720_v14  ;;  %v3917_v59 = vsel %vm1079_vm0, %v1135_v11, %v1136_v7  ;;  %v504_v47 = vmax.f32 %v450_v63, 0.0  ;;  %v1304_v11 = vld [vmem:[%s4415_s4 + $0x310] sm:$0xff]  ;;  %v1014_v63 = vrot.slane %v3118_v48, 1 }
 0x182   : > { %4547 = vst [vmem:[#allocation61_spill] sm:$0xff] %v3917_v59  ;;  %2041 = vmatpush.msra.mxu2 %v1304_v11 }
 0x183   : > { %v1609_v57 = vadd.f32 %v1608_v52, %v1496_v10  ;;  %1542 = vmatmul.f32.gmra.mxu1 %v3868_v2  ;;  %1881 = vmatmul.f32.gmra.mxu0 %v3913_v15  ;;  %v1337_v10 = vld [vmem:[%s4415_s4 + $0x418] sm:$0xff] }
 0x184   : > { %1658 = vmatmul.f32.gmra.mxu2 %v3917_v59  ;;  %1771 = vmatmul.f32.gmra.mxu3 %v3056_v6  ;;  %v3939_v59 = vsel %vm1079_vm0, %v1136_v7, %v1138_v8  ;;  %v1320_v7 = vld [vmem:[%s4415_s4 + $0x390] sm:$0xff] }
 0x185   : > { %v1722_v14 = vadd.f32 %v1721_v35, %v1609_v57  ;;  %2266 = vmatpush.msra.mxu0 %v1337_v10  ;;  %v3934_v57 = vsel %vm952_vm1, %v1013_v53, %v1014_v63  ;;  %v1140_v53 = vrot.slane %v3056_v6, 2  ;;  %v1288_v8 = vld [vmem:[%s4415_s4 + $0x290] sm:$0xff]  ;;  %2154 = vmatpush.msra.mxu3 %v1320_v7  ;;  %v782_v7 = vpop.permute.xlu0 %781 }
 0x186   : > { %1928 = vmatpush.msra.mxu1 %v1288_v8 }
 0x187   : > { %v3923_v21 = vadd.f32 %v1834_v0, %v1722_v14  ;;  %v1611_v52 = vpop.f32.mrf.mxu2  ;;  %v1724_v32 = vpop.f32.mrf.mxu3  ;;  %v882_v0 = vmul.f32 %v767_v42, %v504_v47  ;;  %v337_v14 = vld [vmem:[%s2883_s29 + $0x148] sm:$0x3] }
 0x188   : > { %v1498_v38 = vpop.f32.mrf.mxu1  ;;  %v1837_v35 = vpop.f32.mrf.mxu0 }
 0x189   : > { %4548 = vst [vmem:[#allocation62_spill] sm:$0xff] %v3923_v21  ;;  %v1499_v58 = vadd.f32 %v1498_v38, %v3747_v27  ;;  %v1016_v11 = vrot.slane %v882_v0, 1  ;;  %v395_v38 = vmul.f32 %v3472_v16, %v337_v14 }
 0x18b   : > { %v1612_v21 = vadd.f32 %v1611_v52, %v1499_v58  ;;  %1545 = vmatmul.f32.gmra.mxu1 %v3889_v5  ;;  %1884 = vmatmul.f32.gmra.mxu0 %v3934_v57  ;;  %v3958_v14 = vsel %vm952_vm1, %v1014_v63, %v1016_v11  ;;  %v1143_v63 = vrot.slane %v882_v0, 2 }
 0x18c   : > { %1661 = vmatmul.f32.gmra.mxu2 %v3939_v59  ;;  %1774 = vmatmul.f32.gmra.mxu3 %v3118_v48 }
 0x18d   : > { %v1725_v10 = vadd.f32 %v1724_v32, %v1612_v21  ;;  %v1141_v32 = vrot.slane %v3118_v48, 2 }
 0x18f   : > { %v3945_v27 = vadd.f32 %v1837_v35, %v1725_v10  ;;  %v1614_v42 = vpop.f32.mrf.mxu2  ;;  %v1727_v47 = vpop.f32.mrf.mxu3  ;;  %v453_v35 = vadd.f32 %v3520_v23, %v395_v38  ;;  %v1019_v38 = vrot.slane %v3200_v39, 1 }
 0x190   : > { %v1501_v52 = vpop.f32.mrf.mxu1  ;;  %v1840_v58 = vpop.f32.mrf.mxu0 }
 0x191   : > { %4549 = vst [vmem:[#allocation63_spill] sm:$0xff] %v3945_v27  ;;  %v1502_v21 = vadd.f32 %v1501_v52, %v3773_v55  ;;  %v3962_v27 = vsel %vm1079_vm0, %v1140_v53, %v1141_v32  ;;  %v507_v8 = vmax.f32 %v453_v35, 0.0  ;;  %v1336_v53 = vld [vmem:[%s4415_s4 + $0x410] sm:$0xff]  ;;  %v1018_v35 = vrot.slane %v3164_v13, 1 }
 0x192   : > { %4550 = vst [vmem:[#allocation64_spill] sm:$0xff] %v3962_v27  ;;  %2267 = vmatpush.msra.mxu0 %v1336_v53 }
 0x193   : > { %v1615_v10 = vadd.f32 %v1614_v42, %v1502_v21  ;;  %1548 = vmatmul.f32.gmra.mxu1 %v3913_v15  ;;  %1887 = vmatmul.f32.gmra.mxu0 %v3958_v14  ;;  %v1303_v21 = vld [vmem:[%s4415_s4 + $0x308] sm:$0xff] }
 0x194   : > { %1664 = vmatmul.f32.gmra.mxu2 %v3962_v27  ;;  %1777 = vmatmul.f32.gmra.mxu3 %v3164_v13  ;;  %v3984_v27 = vsel %vm1079_vm0, %v1141_v32, %v1143_v63  ;;  %v1319_v32 = vld [vmem:[%s4415_s4 + $0x388] sm:$0xff] }
 0x195   : > { %v1728_v55 = vadd.f32 %v1727_v47, %v1615_v10  ;;  %2042 = vmatpush.msra.mxu2 %v1303_v21  ;;  %v3979_v10 = vsel %vm952_vm1, %v1018_v35, %v1019_v38  ;;  %v1287_v63 = vld [vmem:[%s4415_s4 + $0x288] sm:$0xff]  ;;  %2155 = vmatpush.msra.mxu3 %v1319_v32  ;;  %v797_v32 = vpop.permute.xlu1 %796 }
 0x196   : > { %1929 = vmatpush.msra.mxu1 %v1287_v63 }
 0x197   : > { %v3968_v11 = vadd.f32 %v1840_v58, %v1728_v55  ;;  %v1617_v42 = vpop.f32.mrf.mxu2  ;;  %v1730_v52 = vpop.f32.mrf.mxu3  ;;  %v885_v58 = vmul.f32 %v782_v7, %v507_v8  ;;  %v340_v55 = vld [vmem:[%s2883_s29 + $0x160] sm:$0x3] }
 0x198   : > { %v1504_v48 = vpop.f32.mrf.mxu1  ;;  %v1843_v47 = vpop.f32.mrf.mxu0 }
 0x199   : > { %4551 = vst [vmem:[#allocation65_spill] sm:$0xff] %v3968_v11  ;;  %v1505_v0 = vadd.f32 %v1504_v48, %v3561_v50  ;;  %v398_v48 = vmul.f32 %v3472_v16, %v340_v55  ;;  %v1021_v50 = vrot.slane %v885_v58, 1 }
 0x19b   : > { %v1618_v11 = vadd.f32 %v1617_v42, %v1505_v0  ;;  %1551 = vmatmul.f32.gmra.mxu1 %v3934_v57  ;;  %1890 = vmatmul.f32.gmra.mxu0 %v3979_v10  ;;  %v1146_v42 = vrot.slane %v3200_v39, 2  ;;  %v4003_v55 = vsel %vm952_vm1, %v1019_v38, %v1021_v50  ;;  %v1148_v38 = vrot.slane %v885_v58, 2 }
 0x19c   : > { %1667 = vmatmul.f32.gmra.mxu2 %v3984_v27  ;;  %1780 = vmatmul.f32.gmra.mxu3 %v3200_v39  ;;  %4553 = vst [vmem:[#allocation67_spill] sm:$0xff] %v4003_v55 }
 0x19d   : > { %v1731_v53 = vadd.f32 %v1730_v52, %v1618_v11  ;;  %v1145_v52 = vrot.slane %v3164_v13, 2 }
 0x19f   : > { %v3990_v7 = vadd.f32 %v1843_v47, %v1731_v53  ;;  %v1620_v8 = vpop.f32.mrf.mxu2  ;;  %v1733_v21 = vpop.f32.mrf.mxu3  ;;  %v456_v47 = vadd.f32 %v3520_v23, %v398_v48  ;;  %v1024_v48 = vrot.slane %v3334_v30, 1 }
 0x1a0   : > { %v1507_v35 = vpop.f32.mrf.mxu1  ;;  %v1846_v0 = vpop.f32.mrf.mxu0 }
 0x1a1   : > { %4552 = vst [vmem:[#allocation66_spill] sm:$0xff] %v3990_v7  ;;  %v1508_v11 = vadd.f32 %v1507_v35, %v3586_v19  ;;  %v4007_v7 = vsel %vm1079_vm0, %v1145_v52, %v1146_v42  ;;  %v510_v63 = vmax.f32 %v456_v47, 0.0  ;;  %v1302_v52 = vld [vmem:[%s4415_s4 + $0x300] sm:$0xff]  ;;  %v1023_v47 = vrot.slane %v3251_v20, 1 }
 0x1a2   : > { %4554 = vst [vmem:[#allocation68_spill] sm:$0xff] %v4007_v7  ;;  %2043 = vmatpush.msra.mxu2 %v1302_v52  ;;  %v1151_v52 = vrot.slane %v3334_v30, 2 }
 0x1a3   : > { %v1621_v53 = vadd.f32 %v1620_v8, %v1508_v11  ;;  %1554 = vmatmul.f32.gmra.mxu1 %v3958_v14  ;;  %1893 = vmatmul.f32.gmra.mxu0 %v4003_v55  ;;  %v1335_v11 = vld [vmem:[%s4415_s4 + $0x408] sm:$0xff] }
 0x1a4   : > { %1670 = vmatmul.f32.gmra.mxu2 %v4007_v7  ;;  %1783 = vmatmul.f32.gmra.mxu3 %v3251_v20  ;;  %v4029_v7 = vsel %vm1079_vm0, %v1146_v42, %v1148_v38  ;;  %v1318_v42 = vld [vmem:[%s4415_s4 + $0x380] sm:$0xff] }
 0x1a5   : > { %v1734_v19 = vadd.f32 %v1733_v21, %v1621_v53  ;;  %2268 = vmatpush.msra.mxu0 %v1335_v11  ;;  %v4024_v53 = vsel %vm952_vm1, %v1023_v47, %v1024_v48  ;;  %4557 = vst [vmem:[#allocation71_spill] sm:$0xff] %v4029_v7  ;;  %v1286_v38 = vld [vmem:[%s4415_s4 + $0x280] sm:$0xff]  ;;  %2156 = vmatpush.msra.mxu3 %v1318_v42  ;;  %v812_v42 = vpop.permute.xlu2 %811 }
 0x1a6   : > { %4556 = vst [vmem:[#allocation70_spill] sm:$0xff] %v4024_v53  ;;  %1930 = vmatpush.msra.mxu1 %v1286_v38  ;;  %v1028_v38 = vrot.slane %v3357_v61, 1 }
 0x1a7   : > { %v4013_v50 = vadd.f32 %v1846_v0, %v1734_v19  ;;  %v1623_v8 = vpop.f32.mrf.mxu2  ;;  %v1736_v35 = vpop.f32.mrf.mxu3  ;;  %v888_v0 = vmul.f32 %v797_v32, %v510_v63  ;;  %v343_v19 = vld [vmem:[%s2883_s29 + $0x178] sm:$0x3] }
 0x1a8   : > { %v1510_v39 = vpop.f32.mrf.mxu1  ;;  %v1849_v21 = vpop.f32.mrf.mxu0 }
 0x1a9   : > { %4555 = vst [vmem:[#allocation69_spill] sm:$0xff] %v4013_v50  ;;  %v1511_v58 = vadd.f32 %v1510_v39, %v3619_v12  ;;  %v401_v39 = vmul.f32 %v3472_v16, %v343_v19  ;;  %v1026_v12 = vrot.slane %v888_v0, 1  ;;  %v345_v19 = vld [vmem:[%s2883_s29 + $0x188] sm:$0xff] }
 0x1ab   : > { %v1624_v50 = vadd.f32 %v1623_v8, %v1511_v58  ;;  %1557 = vmatmul.f32.gmra.mxu1 %v3979_v10  ;;  %1896 = vmatmul.f32.gmra.mxu0 %v4024_v53  ;;  %v459_v47 = vadd.f32 %v3520_v23, %v401_v39  ;;  %v4048_v58 = vsel %vm952_vm1, %v1024_v48, %v1026_v12  ;;  %v4062_v48 = vld [vmem:[%s4412_s1] ss:$0 sm:$0xff] }
 0x1ac   : > { %1673 = vmatmul.f32.gmra.mxu2 %v4029_v7  ;;  %1786 = vmatmul.f32.gmra.mxu3 %v3334_v30  ;;  %v403_v12 = vmul.f32 %v4062_v48, %v345_v19 }
 0x1ad   : > { %v1737_v11 = vadd.f32 %v1736_v35, %v1624_v50  ;;  %v513_v39 = vmax.f32 %v459_v47, 0.0 }
 0x1ae   : > { %v461_v7 = vadd.f32 %v3520_v23, %v403_v12  ;;  %v822_v12 = vpop.permute.xlu1 %821 }
 0x1af   : > { %v4035_v32 = vadd.f32 %v1849_v21, %v1737_v11  ;;  %v1626_v63 = vpop.f32.mrf.mxu2  ;;  %v1739_v8 = vpop.f32.mrf.mxu3  ;;  %v1150_v21 = vrot.slane %v3251_v20, 2  ;;  %v344_v11 = vld [vmem:[%s2883_s29 + $0x180] sm:$0xff]  ;;  %v1029_v20 = vrot.slane %v3387_v45, 1 }
 0x1b0   : > { %v1513_v50 = vpop.f32.mrf.mxu1  ;;  %v1852_v35 = vpop.f32.mrf.mxu0 }
 0x1b1   : > { %4558 = vst [vmem:[#allocation72_spill] sm:$0xff] %v4035_v32  ;;  %v1514_v16 = vadd.f32 %v1513_v50, %v3654_v9  ;;  %v4054_v30 = vsel %vm1079_vm0, %v1150_v21, %v1151_v52  ;;  %v1153_v50 = vrot.slane %v888_v0, 2 }
 0x1b2   : > { %4559 = vst [vmem:[#allocation73_spill] sm:$0xff] %v4054_v30 }
 0x1b3   : > { %v1627_v32 = vadd.f32 %v1626_v63, %v1514_v16  ;;  %1560 = vmatmul.f32.gmra.mxu1 %v4003_v55  ;;  %1899 = vmatmul.f32.gmra.mxu0 %v4048_v58  ;;  %v402_v63 = vmul.f32 %v4062_v48, %v344_v11  ;;  %v891_v11 = vmul.f32 %v812_v42, %v513_v39  ;;  %v1156_v55 = vrot.slane %v3387_v45, 2 }
 0x1b4   : > { %1676 = vmatmul.f32.gmra.mxu2 %v4054_v30  ;;  %1789 = vmatmul.f32.gmra.mxu3 %v3357_v61 }
 0x1b5   : > { %v1740_v9 = vadd.f32 %v1739_v8, %v1627_v32  ;;  %v1334_v32 = vld [vmem:[%s4415_s4 + $0x400] sm:$0xff]  ;;  %v460_v0 = vadd.f32 %v3520_v23, %v402_v63  ;;  %v1031_v39 = vrot.slane %v891_v11, 1  ;;  %v515_v23 = vmax.f32 %v461_v7, 0.0  ;;  %v817_v63 = vpop.permute.xlu0 %816 }
 0x1b6   : > { %2269 = vmatpush.msra.mxu0 %v1334_v32 }
 0x1b7   : > { %v4067_v16 = vadd.f32 %v1852_v35, %v1740_v9  ;;  %v1629_v21 = vpop.f32.mrf.mxu2  ;;  %v1742_v30 = vpop.f32.mrf.mxu3  ;;  %v4077_v35 = vsel %vm952_vm1, %v1028_v38, %v1029_v20  ;;  %v514_v38 = vmax.f32 %v460_v0, 0.0  ;;  %v4098_v7 = vsel %vm952_vm1, %v1029_v20, %v1031_v39 }
 0x1b8   : > { %v1516_v8 = vpop.f32.mrf.mxu1  ;;  %v1855_v47 = vpop.f32.mrf.mxu0  ;;  %v1158_v39 = vrot.slane %v891_v11, 2 }
 0x1b9   : > { %4560 = vst [vmem:[#allocation74_spill] sm:$0xff] %v4067_v16  ;;  %v1517_v19 = vadd.f32 %v1516_v8, %v3682_v26  ;;  %v4081_v16 = vsel %vm1079_vm0, %v1151_v52, %v1153_v50  ;;  %v346_v26 = vld [vmem:[%s2883_s29 + $0x190] sm:$0x3]  ;;  %v1155_v52 = vrot.slane %v3357_v61, 2 }
 0x1ba   : > { %4561 = vst [vmem:[#allocation75_spill] sm:$0xff] %v4081_v16  ;;  %v404_v50 = vmul.f32 %v4062_v48, %v346_v26 }
 0x1bb   : > { %v1630_v9 = vadd.f32 %v1629_v21, %v1517_v19  ;;  %1563 = vmatmul.f32.gmra.mxu1 %v4024_v53  ;;  %1902 = vmatmul.f32.gmra.mxu0 %v4077_v35  ;;  %v4102_v0 = vsel %vm1079_vm0, %v1155_v52, %v1156_v55 }
 0x1bc   : > { %1679 = vmatmul.f32.gmra.mxu2 %v4081_v16  ;;  %1792 = vmatmul.f32.gmra.mxu3 %v3387_v45 }
 0x1bd   : > { %v1743_v42 = vadd.f32 %v1742_v30, %v1630_v9  ;;  %v4093_v30 = vmul.f32 %v822_v12, %v515_v23  ;;  %v4095_v9 = vmul.f32 %v817_v63, %v514_v38 }
 0x1bf   : > { %v4087_v32 = vadd.f32 %v1855_v47, %v1743_v42  ;;  %v1632_v21 = vpop.f32.mrf.mxu2  ;;  %v1745_v8 = vpop.f32.mrf.mxu3  ;;  %v1034_v42 = vrot.slane %v4093_v30, 1 }
 0x1c0   : > { %v1519_v19 = vpop.f32.mrf.mxu1  ;;  %v1858_v53 = vpop.f32.mrf.mxu0 }
 0x1c1   : > { %4562 = vst [vmem:[#allocation76_spill] sm:$0xff] %v4087_v32  ;;  %v1520_v16 = vadd.f32 %v1519_v19, %v3709_v56  ;;  %v4108_v56 = vld [vmem:[%s4413_s2] ss:$0 sm:$0xff]  ;;  %v827_v19 = vpop.permute.xlu2 %826 }
 0x1c2   : > { %4563 = vst [vmem:[#allocation77_spill] sm:$0xff] %v4108_v56  ;;  %v462_v26 = vadd.f32 %v4108_v56, %v404_v50 }
 0x1c3   : > { %v1633_v47 = vadd.f32 %v1632_v21, %v1520_v16  ;;  %1566 = vmatmul.f32.gmra.mxu1 %v4048_v58  ;;  %1905 = vmatmul.f32.gmra.mxu0 %v4098_v7  ;;  %v1033_v16 = vrot.slane %v4095_v9, 1 }
 0x1c4   : > { %1682 = vmatmul.f32.gmra.mxu2 %v4102_v0  ;;  %1795 = vmatmul.f32.gmra.mxu3 %v4095_v9  ;;  %v516_v38 = vmax.f32 %v462_v26, 0.0 }
 0x1c5   : > { %v1746_v20 = vadd.f32 %v1745_v8, %v1633_v47  ;;  %v4119_v32 = vsel %vm952_vm1, %v1033_v16, %v1034_v42  ;;  %v4123_v8 = vsel %vm1079_vm0, %v1156_v55, %v1158_v39 }
 0x1c7   : > { %v4115_v12 = vadd.f32 %v1858_v53, %v1746_v20  ;;  %v1635_v23 = vpop.f32.mrf.mxu2  ;;  %v1748_v63 = vpop.f32.mrf.mxu3  ;;  %v4126_v53 = vmul.f32 %v827_v19, %v516_v38 }
 0x1c8   : > { %v1522_v21 = vpop.f32.mrf.mxu1  ;;  %v1861_v52 = vpop.f32.mrf.mxu0 }
 0x1c9   : > { %v1523_v50 = vadd.f32 %v1522_v21, %v3745_v46  ;;  %v1036_v20 = vrot.slane %v4126_v53, 1 }
 0x1cb   : > { %v1636_v56 = vadd.f32 %v1635_v23, %v1523_v50  ;;  %1569 = vmatmul.f32.gmra.mxu1 %v4077_v35  ;;  %1908 = vmatmul.f32.gmra.mxu0 %v4119_v32  ;;  %v4135_v39 = vsel %vm952_vm1, %v1034_v42, %v1036_v20 }
 0x1cc   : > { %1685 = vmatmul.f32.gmra.mxu2 %v4123_v8  ;;  %1798 = vmatmul.f32.gmra.mxu3 %v4093_v30 }
 0x1cd   : > { %v1749_v11 = vadd.f32 %v1748_v63, %v1636_v56 }
 0x1cf   : > { %v4130_v47 = vadd.f32 %v1861_v52, %v1749_v11  ;;  %v1638_v46 = vpop.f32.mrf.mxu2  ;;  %v1751_v26 = vpop.f32.mrf.mxu3 }
 0x1d0   : > { %v1525_v16 = vpop.f32.mrf.mxu1  ;;  %v1864_v23 = vpop.f32.mrf.mxu0 }
 0x1d1   : > { %v1526_v55 = vadd.f32 %v1525_v16, %v3775_v40 }
 0x1d3   : > { %v1639_v38 = vadd.f32 %v1638_v46, %v1526_v55  ;;  %1572 = vmatmul.f32.gmra.mxu1 %v4098_v7  ;;  %1911 = vmatmul.f32.gmra.mxu0 %v4135_v39 }
 0x1d4   : > { %2044 = vmatmul.f32.vlgmr.msra.gmra.mxu2 %v3291_v54  ;;  %2157 = vmatmul.f32.vlgmr.msra.gmra.mxu3 %v3453_v60 }
 0x1d5   : > { %v1752_v56 = vadd.f32 %v1751_v26, %v1639_v38 }
 0x1d7   : > { %v4141_v63 = vadd.f32 %v1864_v23, %v1752_v56  ;;  %v1641_v21 = vpop.f32.mrf.mxu2  ;;  %v1754_v52 = vpop.f32.mrf.mxu3  ;;  %v4564_v56 = vld [vmem:[#allocation30_spill] sm:$0xff] }
 0x1d8   : > { %v1528_v19 = vpop.f32.mrf.mxu1  ;;  %v1867_v50 = vpop.f32.mrf.mxu0 }
 0x1d9   : > { %v1529_v40 = vadd.f32 %v1528_v19, %v3550_v29  ;;  %v4567_v19 = vld [vmem:[#allocation20_spill] sm:$0xff] }
 0x1db   : > { %v1642_v42 = vadd.f32 %v1641_v21, %v1529_v40  ;;  %1931 = vmatmul.f32.vlgmr.msra.gmra.mxu1 %v3443_v43  ;;  %2270 = vmatmul.f32.vlgmr.msra.gmra.mxu0 %v3483_v25 }
 0x1dc   : > { %2047 = vmatmul.f32.gmra.mxu2 %v3362_v1  ;;  %2160 = vmatmul.f32.gmra.mxu3 %v3480_v22 }
 0x1dd   : > { %v1755_v54 = vadd.f32 %v1754_v52, %v1642_v42 }
 0x1df   : > { %v4148_v60 = vadd.f32 %v1867_v50, %v1755_v54  ;;  %v1644_v11 = vpop.f32.mrf.mxu2  ;;  %v1757_v46 = vpop.f32.mrf.mxu3 }
 0x1e0   : > { %v1531_v26 = vpop.f32.mrf.mxu1  ;;  %v1870_v20 = vpop.f32.mrf.mxu0 }
 0x1e1   : > { %v1532_v16 = vadd.f32 %v1531_v26, %v3580_v3  ;;  %v4565_v3 = vld [vmem:[#allocation21_spill] sm:$0xff] }
 0x1e3   : > { %v1645_v23 = vadd.f32 %v1644_v11, %v1532_v16  ;;  %1934 = vmatmul.f32.gmra.mxu1 %v3456_v62  ;;  %2273 = vmatmul.f32.gmra.mxu0 %v3503_v49  ;;  %v4566_v62 = vld [vmem:[#allocation18_spill] sm:$0xff] }
 0x1e4   : > { %2050 = vmatmul.f32.gmra.mxu2 %v3381_v31  ;;  %2163 = vmatmul.f32.gmra.mxu3 %v3498_v44  ;;  %v4568_v11 = vld [vmem:[#allocation34_spill] sm:$0xff] }
 0x1e5   : > { %v1758_v1 = vadd.f32 %v1757_v46, %v1645_v23  ;;  %v4571_v16 = vld [vmem:[#allocation22_spill] sm:$0xff] }
 0x1e7   : > { %v4155_v43 = vadd.f32 %v1870_v20, %v1758_v1  ;;  %v1647_v22 = vpop.f32.mrf.mxu2  ;;  %v1760_v29 = vpop.f32.mrf.mxu3  ;;  %v4569_v20 = vld [vmem:[#allocation23_spill] sm:$0xff] }
 0x1e8   : > { %v1534_v55 = vpop.f32.mrf.mxu1  ;;  %v1873_v38 = vpop.f32.mrf.mxu0 }
 0x1e9   : > { %v1535_v21 = vadd.f32 %v1534_v55, %v4564_v56  ;;  %v4572_v56 = vld [vmem:[#allocation38_spill] sm:$0xff] }
 0x1eb   : > { %v1648_v52 = vadd.f32 %v1647_v22, %v1535_v21  ;;  %1937 = vmatmul.f32.gmra.mxu1 %v3483_v25  ;;  %2276 = vmatmul.f32.gmra.mxu0 %v4565_v3  ;;  %v4570_v25 = vld [vmem:[#allocation2_spill] sm:$0xff] }
 0x1ec   : > { %2053 = vmatmul.f32.gmra.mxu2 %v4566_v62  ;;  %2166 = vmatmul.f32.gmra.mxu3 %v4567_v19  ;;  %v4573_v62 = vld [vmem:[#allocation26_spill] sm:$0xff]  ;;  %v4575_v19 = vld [vmem:[#allocation25_spill] sm:$0xff] }
 0x1ed   : > { %v1761_v31 = vadd.f32 %v1760_v29, %v1648_v52 }
 0x1ef   : > { %v4162_v44 = vadd.f32 %v1873_v38, %v1761_v31  ;;  %v1650_v50 = vpop.f32.mrf.mxu2  ;;  %v1763_v40 = vpop.f32.mrf.mxu3 }
 0x1f0   : > { %v1537_v42 = vpop.f32.mrf.mxu1  ;;  %v1876_v54 = vpop.f32.mrf.mxu0 }
 0x1f1   : > { %v1538_v46 = vadd.f32 %v1537_v42, %v4568_v11 }
 0x1f3   : > { %v1651_v26 = vadd.f32 %v1650_v50, %v1538_v46  ;;  %1940 = vmatmul.f32.gmra.mxu1 %v3503_v49  ;;  %2279 = vmatmul.f32.gmra.mxu0 %v4569_v20  ;;  %v4574_v49 = vld [vmem:[#allocation5_spill] sm:$0xff]  ;;  %v4576_v46 = vld [vmem:[#allocation44_spill] sm:$0xff] }
 0x1f4   : > { %2056 = vmatmul.f32.gmra.mxu2 %v4570_v25  ;;  %2169 = vmatmul.f32.gmra.mxu3 %v4571_v16  ;;  %v4577_v16 = vld [vmem:[#allocation29_spill] sm:$0xff] }
 0x1f5   : > { %v1764_v23 = vadd.f32 %v1763_v40, %v1651_v26 }
 0x1f7   : > { %v4169_v1 = vadd.f32 %v1876_v54, %v1764_v23  ;;  %v1653_v22 = vpop.f32.mrf.mxu2  ;;  %v1766_v29 = vpop.f32.mrf.mxu3  ;;  %v4579_v23 = vld [vmem:[#allocation28_spill] sm:$0xff] }
 0x1f8   : > { %v1540_v55 = vpop.f32.mrf.mxu1  ;;  %v1879_v38 = vpop.f32.mrf.mxu0 }
 0x1f9   : > { %v1541_v21 = vadd.f32 %v1540_v55, %v4572_v56 }
 0x1fb   : > { %v1654_v52 = vadd.f32 %v1653_v22, %v1541_v21  ;;  %1943 = vmatmul.f32.gmra.mxu1 %v4565_v3  ;;  %2282 = vmatmul.f32.gmra.mxu0 %v4573_v62  ;;  %v4578_v3 = vld [vmem:[#allocation7_spill] sm:$0xff] }
 0x1fc   : > { %2059 = vmatmul.f32.gmra.mxu2 %v4574_v49  ;;  %2172 = vmatmul.f32.gmra.mxu3 %v4575_v19 }
 0x1fd   : > { %v1767_v31 = vadd.f32 %v1766_v29, %v1654_v52  ;;  %v4580_v52 = vld [vmem:[#allocation48_spill] sm:$0xff] }
 0x1ff   : > { %v4176_v50 = vadd.f32 %v1879_v38, %v1767_v31  ;;  %v1656_v40 = vpop.f32.mrf.mxu2  ;;  %v1769_v42 = vpop.f32.mrf.mxu3  ;;  %v4581_v31 = vld [vmem:[#allocation33_spill] sm:$0xff] }
 0x200   : > { %v1543_v54 = vpop.f32.mrf.mxu1  ;;  %v1882_v11 = vpop.f32.mrf.mxu0 }
 0x201   : > { %v1544_v26 = vadd.f32 %v1543_v54, %v4576_v46 }
 0x203   : > { %v1657_v25 = vadd.f32 %v1656_v40, %v1544_v26  ;;  %1946 = vmatmul.f32.gmra.mxu1 %v4569_v20  ;;  %2285 = vmatmul.f32.gmra.mxu0 %v4577_v16  ;;  %v4582_v20 = vld [vmem:[#allocation10_spill] sm:$0xff]  ;;  %v4583_v40 = vld [vmem:[#allocation32_spill] sm:$0xff] }
 0x204   : > { %2062 = vmatmul.f32.gmra.mxu2 %v4578_v3  ;;  %2175 = vmatmul.f32.gmra.mxu3 %v4579_v23  ;;  %v4585_v3 = vld [vmem:[#allocation51_spill] sm:$0xff] }
 0x205   : > { %v1770_v22 = vadd.f32 %v1769_v42, %v1657_v25 }
 0x207   : > { %v4183_v55 = vadd.f32 %v1882_v11, %v1770_v22  ;;  %v1659_v29 = vpop.f32.mrf.mxu2  ;;  %v1772_v38 = vpop.f32.mrf.mxu3 }
 0x208   : > { %v1546_v56 = vpop.f32.mrf.mxu1  ;;  %v1885_v21 = vpop.f32.mrf.mxu0 }
 0x209   : > { %v1547_v49 = vadd.f32 %v1546_v56, %v4580_v52  ;;  %v4588_v56 = vld [vmem:[#allocation35_spill] sm:$0xff] }
 0x20b   : > { %v1660_v19 = vadd.f32 %v1659_v29, %v1547_v49  ;;  %1949 = vmatmul.f32.gmra.mxu1 %v4573_v62  ;;  %2288 = vmatmul.f32.gmra.mxu0 %v4581_v31  ;;  %v4586_v29 = vld [vmem:[#allocation36_spill] sm:$0xff]  ;;  %v4587_v62 = vld [vmem:[#allocation13_spill] sm:$0xff] }
 0x20c   : > { %2065 = vmatmul.f32.gmra.mxu2 %v4582_v20  ;;  %2178 = vmatmul.f32.gmra.mxu3 %v4583_v40  ;;  %v4590_v40 = vld [vmem:[#allocation24_spill] sm:$0xff] }
 0x20d   : > { %v1773_v54 = vadd.f32 %v1772_v38, %v1660_v19 }
 0x20f   : > { %v4190_v46 = vadd.f32 %v1885_v21, %v1773_v54  ;;  %v1662_v42 = vpop.f32.mrf.mxu2  ;;  %v1775_v11 = vpop.f32.mrf.mxu3 }
 0x210   : > { %v1549_v26 = vpop.f32.mrf.mxu1  ;;  %v1888_v25 = vpop.f32.mrf.mxu0 }
 0x211   : > { %4584 = vst [vmem:[#allocation30_spill] sm:$0xff] %v4190_v46  ;;  %v1550_v23 = vadd.f32 %v1549_v26, %v4585_v3  ;;  %v4593_v26 = vld [vmem:[#allocation39_spill] sm:$0xff] }
 0x213   : > { %v1663_v22 = vadd.f32 %v1662_v42, %v1550_v23  ;;  %1952 = vmatmul.f32.gmra.mxu1 %v4577_v16  ;;  %2291 = vmatmul.f32.gmra.mxu0 %v4586_v29  ;;  %v4591_v42 = vld [vmem:[#allocation40_spill] sm:$0xff]  ;;  %v4592_v16 = vld [vmem:[#allocation14_spill] sm:$0xff] }
 0x214   : > { %2068 = vmatmul.f32.gmra.mxu2 %v4587_v62  ;;  %2181 = vmatmul.f32.gmra.mxu3 %v4588_v56  ;;  %v4595_v56 = vld [vmem:[#allocation27_spill] sm:$0xff] }
 0x215   : > { %v1776_v52 = vadd.f32 %v1775_v11, %v1663_v22 }
 0x217   : > { %v4197_v49 = vadd.f32 %v1888_v25, %v1776_v52  ;;  %v1665_v38 = vpop.f32.mrf.mxu2  ;;  %v1778_v21 = vpop.f32.mrf.mxu3 }
 0x218   : > { %v1552_v19 = vpop.f32.mrf.mxu1  ;;  %v1891_v20 = vpop.f32.mrf.mxu0 }
 0x219   : > { %4589 = vst [vmem:[#allocation21_spill] sm:$0xff] %v4197_v49  ;;  %v1553_v54 = vadd.f32 %v1552_v19, %v4590_v40  ;;  %v4598_v19 = vld [vmem:[#allocation42_spill] sm:$0xff] }
 0x21b   : > { %v1666_v46 = vadd.f32 %v1665_v38, %v1553_v54  ;;  %1955 = vmatmul.f32.gmra.mxu1 %v4581_v31  ;;  %2294 = vmatmul.f32.gmra.mxu0 %v4591_v42  ;;  %v4596_v38 = vld [vmem:[#allocation43_spill] sm:$0xff]  ;;  %v4597_v31 = vld [vmem:[#allocation16_spill] sm:$0xff] }
 0x21c   : > { %2071 = vmatmul.f32.gmra.mxu2 %v4592_v16  ;;  %2184 = vmatmul.f32.gmra.mxu3 %v4593_v26  ;;  %v4600_v26 = vld [vmem:[#allocation31_spill] sm:$0xff] }
 0x21d   : > { %v1779_v3 = vadd.f32 %v1778_v21, %v1666_v46 }
 0x21f   : > { %v4204_v23 = vadd.f32 %v1891_v20, %v1779_v3  ;;  %v1668_v11 = vpop.f32.mrf.mxu2  ;;  %v1781_v25 = vpop.f32.mrf.mxu3 }
 0x220   : > { %v1555_v22 = vpop.f32.mrf.mxu1  ;;  %v1894_v62 = vpop.f32.mrf.mxu0 }
 0x221   : > { %4594 = vst [vmem:[#allocation18_spill] sm:$0xff] %v4204_v23  ;;  %v1556_v52 = vadd.f32 %v1555_v22, %v4595_v56  ;;  %v4603_v22 = vld [vmem:[#allocation46_spill] sm:$0xff] }
 0x223   : > { %v1669_v49 = vadd.f32 %v1668_v11, %v1556_v52  ;;  %1958 = vmatmul.f32.gmra.mxu1 %v4586_v29  ;;  %2297 = vmatmul.f32.gmra.mxu0 %v4596_v38  ;;  %v4601_v11 = vld [vmem:[#allocation47_spill] sm:$0xff] }
 0x224   : > { %2074 = vmatmul.f32.gmra.mxu2 %v4597_v31  ;;  %2187 = vmatmul.f32.gmra.mxu3 %v4598_v19  ;;  %v4602_v29 = vld [vmem:[#allocation19_spill] sm:$0xff]  ;;  %v4604_v19 = vld [vmem:[#allocation37_spill] sm:$0xff] }
 0x225   : > { %v1782_v40 = vadd.f32 %v1781_v25, %v1669_v49 }
 0x227   : > { %v4211_v54 = vadd.f32 %v1894_v62, %v1782_v40  ;;  %v1671_v46 = vpop.f32.mrf.mxu2  ;;  %v1784_v21 = vpop.f32.mrf.mxu3 }
 0x228   : > { %v1558_v20 = vpop.f32.mrf.mxu1  ;;  %v1897_v16 = vpop.f32.mrf.mxu0 }
 0x229   : > { %4599 = vst [vmem:[#allocation20_spill] sm:$0xff] %v4211_v54  ;;  %v1559_v3 = vadd.f32 %v1558_v20, %v4600_v26 }
 0x22b   : > { %v1672_v23 = vadd.f32 %v1671_v46, %v1559_v3  ;;  %1961 = vmatmul.f32.gmra.mxu1 %v4591_v42  ;;  %2300 = vmatmul.f32.gmra.mxu0 %v4601_v11  ;;  %v4605_v46 = vld [vmem:[#allocation50_spill] sm:$0xff]  ;;  %v4606_v42 = vld [vmem:[#allocation3_spill] sm:$0xff] }
 0x22c   : > { %2077 = vmatmul.f32.gmra.mxu2 %v4602_v29  ;;  %2190 = vmatmul.f32.gmra.mxu3 %v4603_v22  ;;  %v4607_v29 = vld [vmem:[#allocation41_spill] sm:$0xff] }
 0x22d   : > { %v1785_v56 = vadd.f32 %v1784_v21, %v1672_v23 }
 0x22f   : > { %v4218_v52 = vadd.f32 %v1897_v16, %v1785_v56  ;;  %v1674_v49 = vpop.f32.mrf.mxu2  ;;  %v1787_v25 = vpop.f32.mrf.mxu3 }
 0x230   : > { %v1561_v62 = vpop.f32.mrf.mxu1  ;;  %v1900_v31 = vpop.f32.mrf.mxu0 }
 0x231   : > { %v1562_v40 = vadd.f32 %v1561_v62, %v4604_v19 }
 0x233   : > { %v1675_v54 = vadd.f32 %v1674_v49, %v1562_v40  ;;  %1964 = vmatmul.f32.gmra.mxu1 %v4596_v38  ;;  %2303 = vmatmul.f32.gmra.mxu0 %v4605_v46  ;;  %v4608_v49 = vld [vmem:[#allocation53_spill] sm:$0xff]  ;;  %v4609_v38 = vld [vmem:[#allocation4_spill] sm:$0xff] }
 0x234   : > { %2080 = vmatmul.f32.gmra.mxu2 %v4606_v42  ;;  %2193 = vmatmul.f32.gmra.mxu3 %v3751_v36  ;;  %v4610_v40 = vld [vmem:[#allocation45_spill] sm:$0xff] }
 0x235   : > { %v1788_v20 = vadd.f32 %v1787_v25, %v1675_v54 }
 0x237   : > { %v4225_v26 = vadd.f32 %v1900_v31, %v1788_v20  ;;  %v1677_v23 = vpop.f32.mrf.mxu2  ;;  %v1790_v21 = vpop.f32.mrf.mxu3 }
 0x238   : > { %v1564_v16 = vpop.f32.mrf.mxu1  ;;  %v1903_v3 = vpop.f32.mrf.mxu0 }
 0x239   : > { %v1565_v22 = vadd.f32 %v1564_v16, %v4607_v29  ;;  %v4611_v29 = vld [vmem:[#allocation49_spill] sm:$0xff] }
 0x23b   : > { %v1678_v56 = vadd.f32 %v1677_v23, %v1565_v22  ;;  %1967 = vmatmul.f32.gmra.mxu1 %v4601_v11  ;;  %2306 = vmatmul.f32.gmra.mxu0 %v4608_v49 }
 0x23c   : > { %2083 = vmatmul.f32.gmra.mxu2 %v4609_v38  ;;  %2196 = vmatmul.f32.gmra.mxu3 %v3780_v4  ;;  %v4612_v38 = vld [vmem:[#allocation55_spill] sm:$0xff] }
 0x23d   : > { %v1791_v62 = vadd.f32 %v1790_v21, %v1678_v56 }
 0x23f   : > { %v4232_v36 = vadd.f32 %v1903_v3, %v1791_v62  ;;  %v1680_v54 = vpop.f32.mrf.mxu2  ;;  %v1793_v25 = vpop.f32.mrf.mxu3 }
 0x240   : > { %v1567_v31 = vpop.f32.mrf.mxu1  ;;  %v1906_v19 = vpop.f32.mrf.mxu0 }
 0x241   : > { %v1568_v42 = vadd.f32 %v1567_v31, %v4610_v40 }
 0x243   : > { %v1681_v20 = vadd.f32 %v1680_v54, %v1568_v42  ;;  %1970 = vmatmul.f32.gmra.mxu1 %v4605_v46  ;;  %2309 = vmatmul.f32.gmra.mxu0 %v3804_v24  ;;  %v4613_v46 = vld [vmem:[#allocation8_spill] sm:$0xff] }
 0x244   : > { %2086 = vmatmul.f32.gmra.mxu2 %v3103_v37  ;;  %2199 = vmatmul.f32.gmra.mxu3 %v3799_v51 }
 0x245   : > { %v1794_v11 = vadd.f32 %v1793_v25, %v1681_v20 }
 0x247   : > { %v4239_v4 = vadd.f32 %v1906_v19, %v1794_v11  ;;  %v1683_v23 = vpop.f32.mrf.mxu2  ;;  %v1796_v21 = vpop.f32.mrf.mxu3  ;;  %v4614_v19 = vld [vmem:[#allocation52_spill] sm:$0xff] }
 0x248   : > { %v1570_v16 = vpop.f32.mrf.mxu1  ;;  %v1909_v3 = vpop.f32.mrf.mxu0 }
 0x249   : > { %v1571_v22 = vadd.f32 %v1570_v16, %v4611_v29  ;;  %v4615_v16 = vld [vmem:[#allocation54_spill] sm:$0xff] }
 0x24b   : > { %v1684_v56 = vadd.f32 %v1683_v23, %v1571_v22  ;;  %1973 = vmatmul.f32.gmra.mxu1 %v4608_v49  ;;  %2312 = vmatmul.f32.gmra.mxu0 %v4612_v38  ;;  %v4617_v22 = vld [vmem:[#allocation12_spill] sm:$0xff] }
 0x24c   : > { %2089 = vmatmul.f32.gmra.mxu2 %v4613_v46  ;;  %2202 = vmatmul.f32.gmra.mxu3 %v3823_v41 }
 0x24d   : > { %v1797_v37 = vadd.f32 %v1796_v21, %v1684_v56 }
 0x24f   : > { %v4246_v51 = vadd.f32 %v1909_v3, %v1797_v37  ;;  %v1686_v62 = vpop.f32.mrf.mxu2  ;;  %v1799_v54 = vpop.f32.mrf.mxu3 }
 0x250   : > { %v1573_v25 = vpop.f32.mrf.mxu1  ;;  %v1912_v31 = vpop.f32.mrf.mxu0 }
 0x251   : > { %v1574_v40 = vadd.f32 %v1573_v25, %v4614_v19 }
 0x253   : > { %v1687_v42 = vadd.f32 %v1686_v62, %v1574_v40  ;;  %1976 = vmatmul.f32.gmra.mxu1 %v3804_v24  ;;  %2315 = vmatmul.f32.gmra.mxu0 %v3849_v17  ;;  %v4616_v24 = vld [vmem:[#allocation58_spill] sm:$0xff] }
 0x254   : > { %2092 = vmatmul.f32.gmra.mxu2 %v3247_v18  ;;  %2205 = vmatmul.f32.gmra.mxu3 %v3844_v34 }
 0x255   : > { %v1800_v41 = vadd.f32 %v1799_v54, %v1687_v42 }
 0x257   : > { %v4253_v49 = vadd.f32 %v1912_v31, %v1800_v41  ;;  %v2045_v20 = vpop.f32.mrf.mxu2  ;;  %v2158_v11 = vpop.f32.mrf.mxu3 }
 0x258   : > { %v1932_v23 = vpop.f32.mrf.mxu1  ;;  %v2271_v21 = vpop.f32.mrf.mxu0 }
 0x259   : > { %v1933_v3 = vadd.f32 %v1932_v23, %v4615_v16 }
 0x25b   : > { %v2046_v29 = vadd.f32 %v2045_v20, %v1933_v3  ;;  %1979 = vmatmul.f32.gmra.mxu1 %v4612_v38  ;;  %2318 = vmatmul.f32.gmra.mxu0 %v4616_v24  ;;  %v4618_v38 = vld [vmem:[#allocation56_spill] sm:$0xff] }
 0x25c   : > { %2095 = vmatmul.f32.gmra.mxu2 %v4617_v22  ;;  %2208 = vmatmul.f32.gmra.mxu3 %v3868_v2 }
 0x25d   : > { %v2159_v18 = vadd.f32 %v2158_v11, %v2046_v29 }
 0x25f   : > { %v2272_v34 = vadd.f32 %v2271_v21, %v2159_v18  ;;  %v2048_v56 = vpop.f32.mrf.mxu2  ;;  %v2161_v46 = vpop.f32.mrf.mxu3  ;;  %v4619_v21 = vld [vmem:[#allocation57_spill] sm:$0xff] }
 0x260   : > { %v1935_v37 = vpop.f32.mrf.mxu1  ;;  %v2274_v62 = vpop.f32.mrf.mxu0 }
 0x261   : > { %2367 = vst [vmem:[%s4264_s14] sm:$0xff] %v2272_v34  ;;  %v1936_v54 = vadd.f32 %v1935_v37, %v4618_v38  ;;  %v2437_v20 = vmul.f32 %v2272_v34, %v2272_v34  ;;  %v4622_v38 = vld [vmem:[#allocation59_spill] sm:$0xff] }
 0x263   : > { %v2049_v25 = vadd.f32 %v2048_v56, %v1936_v54  ;;  %1982 = vmatmul.f32.gmra.mxu1 %v3849_v17  ;;  %2321 = vmatmul.f32.gmra.mxu0 %v3894_v28 }
 0x264   : > { %2098 = vmatmul.f32.gmra.mxu2 %v3338_v33  ;;  %2211 = vmatmul.f32.gmra.mxu3 %v3889_v5  ;;  %v4620_v33 = vld [vmem:[#allocation61_spill] sm:$0xff] }
 0x265   : > { %v2162_v2 = vadd.f32 %v2161_v46, %v2049_v25  ;;  %v4621_v5 = vld [vmem:[#allocation17_spill] sm:$0xff] }
 0x267   : > { %v2275_v31 = vadd.f32 %v2274_v62, %v2162_v2  ;;  %v2051_v19 = vpop.f32.mrf.mxu2  ;;  %v2164_v40 = vpop.f32.mrf.mxu3 }
 0x268   : > { %v1938_v42 = vpop.f32.mrf.mxu1  ;;  %v2277_v41 = vpop.f32.mrf.mxu0 }
 0x269   : > { %2368 = vst [vmem:[%s4264_s14 + $0x8] sm:$0xff] %v2275_v31  ;;  %v2399_v11 = vadd.f32 %v2275_v31, %v2272_v34  ;;  %v2438_v23 = vmul.f32 %v2275_v31, %v2275_v31  ;;  %v1939_v16 = vadd.f32 %v1938_v42, %v4619_v21 }
 0x26b   : > { %v2469_v17 = vadd.f32 %v2438_v23, %v2437_v20  ;;  %v2052_v3 = vadd.f32 %v2051_v19, %v1939_v16  ;;  %1985 = vmatmul.f32.gmra.mxu1 %v4616_v24  ;;  %2324 = vmatmul.f32.gmra.mxu0 %v4620_v33  ;;  %v4624_v16 = vld [vmem:[#allocation64_spill] sm:$0xff] }
 0x26c   : > { %2101 = vmatmul.f32.gmra.mxu2 %v4621_v5  ;;  %2214 = vmatmul.f32.gmra.mxu3 %v3913_v15 }
 0x26d   : > { %v2165_v29 = vadd.f32 %v2164_v40, %v2052_v3 }
 0x26f   : > { %v2278_v22 = vadd.f32 %v2277_v41, %v2165_v29  ;;  %v2054_v18 = vpop.f32.mrf.mxu2  ;;  %v2167_v56 = vpop.f32.mrf.mxu3 }
 0x270   : > { %v1941_v46 = vpop.f32.mrf.mxu1  ;;  %v2280_v37 = vpop.f32.mrf.mxu0 }
 0x271   : > { %2369 = vst [vmem:[%s4264_s14 + $0x10] sm:$0xff] %v2278_v22  ;;  %v2400_v34 = vadd.f32 %v2399_v11, %v2278_v22  ;;  %v2439_v62 = vmul.f32 %v2278_v22, %v2278_v22  ;;  %v1942_v54 = vadd.f32 %v1941_v46, %v4622_v38  ;;  %v4623_v11 = vld [vmem:[#allocation60_spill] sm:$0xff]  ;;  %v4626_v46 = vld [vmem:[#allocation62_spill] sm:$0xff] }
 0x273   : > { %v2470_v25 = vadd.f32 %v2469_v17, %v2439_v62  ;;  %v2055_v24 = vadd.f32 %v2054_v18, %v1942_v54  ;;  %1988 = vmatmul.f32.gmra.mxu1 %v3894_v28  ;;  %2327 = vmatmul.f32.gmra.mxu0 %v3939_v59 }
 0x274   : > { %2104 = vmatmul.f32.gmra.mxu2 %v3056_v6  ;;  %2217 = vmatmul.f32.gmra.mxu3 %v3934_v57  ;;  %v4625_v6 = vld [vmem:[#allocation6_spill] sm:$0xff] }
 0x275   : > { %v2168_v15 = vadd.f32 %v2167_v56, %v2055_v24 }
 0x277   : > { %v2281_v2 = vadd.f32 %v2280_v37, %v2168_v15  ;;  %v2057_v31 = vpop.f32.mrf.mxu2  ;;  %v2170_v19 = vpop.f32.mrf.mxu3 }
 0x278   : > { %v1944_v40 = vpop.f32.mrf.mxu1  ;;  %v2283_v42 = vpop.f32.mrf.mxu0 }
 0x279   : > { %2370 = vst [vmem:[%s4264_s14 + $0x18] sm:$0xff] %v2281_v2  ;;  %v2401_v41 = vadd.f32 %v2400_v34, %v2281_v2  ;;  %v2440_v20 = vmul.f32 %v2281_v2, %v2281_v2  ;;  %v1945_v23 = vadd.f32 %v1944_v40, %v4623_v11 }
 0x27b   : > { %v2471_v21 = vadd.f32 %v2470_v25, %v2440_v20  ;;  %v2058_v28 = vadd.f32 %v2057_v31, %v1945_v23  ;;  %1991 = vmatmul.f32.gmra.mxu1 %v4620_v33  ;;  %2330 = vmatmul.f32.gmra.mxu0 %v4624_v16  ;;  %v4627_v31 = vld [vmem:[#allocation63_spill] sm:$0xff] }
 0x27c   : > { %2107 = vmatmul.f32.gmra.mxu2 %v4625_v6  ;;  %2220 = vmatmul.f32.gmra.mxu3 %v3958_v14 }
 0x27d   : > { %v2171_v57 = vadd.f32 %v2170_v19, %v2058_v28 }
 0x27f   : > { %v2284_v17 = vadd.f32 %v2283_v42, %v2171_v57  ;;  %v2060_v3 = vpop.f32.mrf.mxu2  ;;  %v2173_v5 = vpop.f32.mrf.mxu3  ;;  %v4628_v42 = vld [vmem:[#allocation68_spill] sm:$0xff] }
 0x280   : > { %v1947_v29 = vpop.f32.mrf.mxu1  ;;  %v2286_v22 = vpop.f32.mrf.mxu0 }
 0x281   : > { %2371 = vst [vmem:[%s4264_s14 + $0x20] sm:$0xff] %v2284_v17  ;;  %v2402_v18 = vadd.f32 %v2401_v41, %v2284_v17  ;;  %v2441_v56 = vmul.f32 %v2284_v17, %v2284_v17  ;;  %v1948_v37 = vadd.f32 %v1947_v29, %v4626_v46  ;;  %v4631_v17 = vld [vmem:[#allocation65_spill] sm:$0xff]  ;;  %v4632_v29 = vld [vmem:[#allocation71_spill] sm:$0xff] }
 0x283   : > { %v2472_v34 = vadd.f32 %v2471_v21, %v2441_v56  ;;  %v2061_v33 = vadd.f32 %v2060_v3, %v1948_v37  ;;  %1994 = vmatmul.f32.gmra.mxu1 %v3939_v59  ;;  %2333 = vmatmul.f32.gmra.mxu0 %v3984_v27 }
 0x284   : > { %2110 = vmatmul.f32.gmra.mxu2 %v3164_v13  ;;  %2223 = vmatmul.f32.gmra.mxu3 %v3979_v10  ;;  %v4629_v13 = vld [vmem:[#allocation9_spill] sm:$0xff]  ;;  %v4630_v10 = vld [vmem:[#allocation67_spill] sm:$0xff] }
 0x285   : > { %v2174_v14 = vadd.f32 %v2173_v5, %v2061_v33 }
 0x287   : > { %v2287_v62 = vadd.f32 %v2286_v22, %v2174_v14  ;;  %v2063_v38 = vpop.f32.mrf.mxu2  ;;  %v2176_v54 = vpop.f32.mrf.mxu3  ;;  %v4633_v22 = vld [vmem:[#allocation11_spill] sm:$0xff] }
 0x288   : > { %v1950_v25 = vpop.f32.mrf.mxu1  ;;  %v2289_v24 = vpop.f32.mrf.mxu0 }
 0x289   : > { %2372 = vst [vmem:[%s4264_s14 + $0x28] sm:$0xff] %v2287_v62  ;;  %v2403_v15 = vadd.f32 %v2402_v18, %v2287_v62  ;;  %v2442_v2 = vmul.f32 %v2287_v62, %v2287_v62  ;;  %v1951_v19 = vadd.f32 %v1950_v25, %v4627_v31  ;;  %v4634_v18 = vld [vmem:[#allocation70_spill] sm:$0xff] }
 0x28b   : > { %v2473_v40 = vadd.f32 %v2472_v34, %v2442_v2  ;;  %v2064_v59 = vadd.f32 %v2063_v38, %v1951_v19  ;;  %1997 = vmatmul.f32.gmra.mxu1 %v4624_v16  ;;  %2336 = vmatmul.f32.gmra.mxu0 %v4628_v42  ;;  %v4637_v2 = vld [vmem:[#allocation15_spill] sm:$0xff] }
 0x28c   : > { %2113 = vmatmul.f32.gmra.mxu2 %v4629_v13  ;;  %2226 = vmatmul.f32.gmra.mxu3 %v4630_v10 }
 0x28d   : > { %v2177_v41 = vadd.f32 %v2176_v54, %v2064_v59  ;;  %v4635_v54 = vld [vmem:[#allocation66_spill] sm:$0xff] }
 0x28f   : > { %v2290_v20 = vadd.f32 %v2289_v24, %v2177_v41  ;;  %v2066_v11 = vpop.f32.mrf.mxu2  ;;  %v2179_v23 = vpop.f32.mrf.mxu3 }
 0x290   : > { %v1953_v21 = vpop.f32.mrf.mxu1  ;;  %v2292_v28 = vpop.f32.mrf.mxu0 }
 0x291   : > { %2373 = vst [vmem:[%s4264_s14 + $0x30] sm:$0xff] %v2290_v20  ;;  %v2404_v6 = vadd.f32 %v2403_v15, %v2290_v20  ;;  %v2443_v57 = vmul.f32 %v2290_v20, %v2290_v20  ;;  %v1954_v3 = vadd.f32 %v1953_v21, %v4631_v17  ;;  %v4636_v15 = vld [vmem:[#allocation73_spill] sm:$0xff] }
 0x293   : > { %v2474_v5 = vadd.f32 %v2473_v40, %v2443_v57  ;;  %v2067_v16 = vadd.f32 %v2066_v11, %v1954_v3  ;;  %2000 = vmatmul.f32.gmra.mxu1 %v3984_v27  ;;  %2339 = vmatmul.f32.gmra.mxu0 %v4632_v29  ;;  %v4638_v11 = vld [vmem:[#allocation69_spill] sm:$0xff] }
 0x294   : > { %2116 = vmatmul.f32.gmra.mxu2 %v4633_v22  ;;  %2229 = vmatmul.f32.gmra.mxu3 %v4634_v18  ;;  %v4640_v18 = vld [vmem:[#allocation72_spill] sm:$0xff] }
 0x295   : > { %v2180_v56 = vadd.f32 %v2179_v23, %v2067_v16 }
 0x297   : > { %v2293_v46 = vadd.f32 %v2292_v28, %v2180_v56  ;;  %v2069_v37 = vpop.f32.mrf.mxu2  ;;  %v2182_v34 = vpop.f32.mrf.mxu3  ;;  %v4639_v28 = vld [vmem:[#allocation75_spill] sm:$0xff] }
 0x298   : > { %v1956_v33 = vpop.f32.mrf.mxu1  ;;  %v2295_v14 = vpop.f32.mrf.mxu0 }
 0x299   : > { %2374 = vst [vmem:[%s4264_s14 + $0x38] sm:$0xff] %v2293_v46  ;;  %v2405_v62 = vadd.f32 %v2404_v6, %v2293_v46  ;;  %v2444_v38 = vmul.f32 %v2293_v46, %v2293_v46  ;;  %v1957_v25 = vadd.f32 %v1956_v33, %v4635_v54  ;;  %v348_v46 = vld [vmem:[%s2883_s29 + $0x1a0] sm:$0xff] }
 0x29b   : > { %v2475_v24 = vadd.f32 %v2474_v5, %v2444_v38  ;;  %v2070_v27 = vadd.f32 %v2069_v37, %v1957_v25  ;;  %2003 = vmatmul.f32.gmra.mxu1 %v4628_v42  ;;  %2342 = vmatmul.f32.gmra.mxu0 %v4636_v15 }
 0x29c   : > { %2119 = vmatmul.f32.gmra.mxu2 %v4637_v2  ;;  %2232 = vmatmul.f32.gmra.mxu3 %v4048_v58 }
 0x29d   : > { %v2183_v31 = vadd.f32 %v2182_v34, %v2070_v27  ;;  %v406_v34 = vmul.f32 %v4062_v48, %v348_v46 }
 0x29f   : > { %v2296_v19 = vadd.f32 %v2295_v14, %v2183_v31  ;;  %v2072_v40 = vpop.f32.mrf.mxu2  ;;  %v2185_v59 = vpop.f32.mrf.mxu3  ;;  %v4642_v31 = vld [vmem:[#allocation77_spill] sm:$0xff] }
 0x2a0   : > { %v1959_v13 = vpop.f32.mrf.mxu1  ;;  %v2298_v10 = vpop.f32.mrf.mxu0 }
 0x2a1   : > { %2375 = vst [vmem:[%s4264_s14 + $0x40] sm:$0xff] %v2296_v19  ;;  %v2406_v41 = vadd.f32 %v2405_v62, %v2296_v19  ;;  %v2445_v20 = vmul.f32 %v2296_v19, %v2296_v19  ;;  %v1960_v23 = vadd.f32 %v1959_v13, %v4638_v11  ;;  %v349_v13 = vld [vmem:[%s2883_s29 + $0x1a8] sm:$0x3]  ;;  %v1160_v11 = vrot.slane %v4095_v9, 2 }
 0x2a3   : > { %v2476_v21 = vadd.f32 %v2475_v24, %v2445_v20  ;;  %v2073_v42 = vadd.f32 %v2072_v40, %v1960_v23  ;;  %2006 = vmatmul.f32.gmra.mxu1 %v4632_v29  ;;  %2345 = vmatmul.f32.gmra.mxu0 %v4639_v28  ;;  %v832_v20 = vpop.permute.xlu0 %831  ;;  %v1161_v23 = vrot.slane %v4093_v30, 2 }
 0x2a4   : > { %2122 = vmatmul.f32.gmra.mxu2 %v3357_v61  ;;  %2235 = vmatmul.f32.gmra.mxu3 %v4077_v35  ;;  %v347_v61 = vld [vmem:[%s2883_s29 + $0x198] sm:$0xff] }
 0x2a5   : > { %v2186_v58 = vadd.f32 %v2185_v59, %v2073_v42  ;;  %v405_v33 = vmul.f32 %v4062_v48, %v347_v61 }
 0x2a7   : > { %v2299_v6 = vadd.f32 %v2298_v10, %v2186_v58  ;;  %v2075_v57 = vpop.f32.mrf.mxu2  ;;  %v2188_v17 = vpop.f32.mrf.mxu3 }
 0x2a8   : > { %v1962_v3 = vpop.f32.mrf.mxu1  ;;  %v2301_v5 = vpop.f32.mrf.mxu0 }
 0x2a9   : > { %2376 = vst [vmem:[%s4264_s14 + $0x48] sm:$0xff] %v2299_v6  ;;  %v2407_v16 = vadd.f32 %v2406_v41, %v2299_v6  ;;  %v2446_v22 = vmul.f32 %v2299_v6, %v2299_v6  ;;  %v1963_v56 = vadd.f32 %v1962_v3, %v4640_v18  ;;  %v837_v10 = vpop.permute.xlu1 %836  ;;  %v1162_v18 = vsel %vm1079_vm0, %v1160_v11, %v1161_v23 }
 0x2ab   : > { %v2477_v29 = vadd.f32 %v2476_v21, %v2446_v22  ;;  %v2076_v37 = vadd.f32 %v2075_v57, %v1963_v56  ;;  %2009 = vmatmul.f32.gmra.mxu1 %v4636_v15  ;;  %2348 = vmatmul.f32.gmra.mxu0 %v4102_v0  ;;  %v4641_v15 = vld [vmem:[#allocation74_spill] sm:$0xff] }
 0x2ac   : > { %2125 = vmatmul.f32.gmra.mxu2 %v3387_v45  ;;  %2238 = vmatmul.f32.gmra.mxu3 %v4098_v7  ;;  %v464_v45 = vadd.f32 %v4642_v31, %v406_v34  ;;  %v463_v7 = vadd.f32 %v4642_v31, %v405_v33 }
 0x2ad   : > { %v2189_v35 = vadd.f32 %v2188_v17, %v2076_v37  ;;  %v407_v17 = vmul.f32 %v4062_v48, %v349_v13 }
 0x2ae   : > { %v518_v41 = vmax.f32 %v464_v45, 0.0  ;;  %v517_v21 = vmax.f32 %v463_v7, 0.0 }
 0x2af   : > { %v2302_v14 = vadd.f32 %v2301_v5, %v2189_v35  ;;  %v2078_v62 = vpop.f32.mrf.mxu2  ;;  %v2191_v38 = vpop.f32.mrf.mxu3  ;;  %v4643_v5 = vld [vmem:[#allocation76_spill] sm:$0xff]  ;;  %v465_v48 = vadd.f32 %v4642_v31, %v407_v17 }
 0x2b0   : > { %v1965_v54 = vpop.f32.mrf.mxu1  ;;  %v2304_v25 = vpop.f32.mrf.mxu0  ;;  %v4344_v22 = vmul.f32 %v837_v10, %v518_v41 }
 0x2b1   : > { %2377 = vst [vmem:[%s4264_s14 + $0x50] sm:$0xff] %v2302_v14  ;;  %v2408_v24 = vadd.f32 %v2407_v16, %v2302_v14  ;;  %v2447_v27 = vmul.f32 %v2302_v14, %v2302_v14  ;;  %v1966_v2 = vadd.f32 %v1965_v54, %v4641_v15  ;;  %v1163_v14 = vrot.slane %v4126_v53, 2 }
 0x2b2   : > { %v1039_v37 = vrot.slane %v4344_v22, 1  ;;  %v519_v54 = vmax.f32 %v465_v48, 0.0  ;;  %v1166_v45 = vrot.slane %v4344_v22, 2 }
 0x2b3   : > { %v2478_v19 = vadd.f32 %v2477_v29, %v2447_v27  ;;  %v2079_v40 = vadd.f32 %v2078_v62, %v1966_v2  ;;  %2012 = vmatmul.f32.gmra.mxu1 %v4639_v28  ;;  %2351 = vmatmul.f32.gmra.mxu0 %v4123_v8 }
 0x2b4   : > { %2128 = vmatmul.f32.gmra.mxu2 %v4095_v9  ;;  %2241 = vmatmul.f32.gmra.mxu3 %v4119_v32  ;;  %v895_v9 = vmul.f32 %v832_v20, %v517_v21 }
 0x2b5   : > { %v2192_v59 = vadd.f32 %v2191_v38, %v2079_v40 }
 0x2b6   : > { %v1038_v61 = vrot.slane %v895_v9, 1  ;;  %v1165_v7 = vrot.slane %v895_v9, 2 }
 0x2b7   : > { %v2305_v42 = vadd.f32 %v2304_v25, %v2192_v59  ;;  %v2081_v58 = vpop.f32.mrf.mxu2  ;;  %v2194_v28 = vpop.f32.mrf.mxu3 }
 0x2b8   : > { %v1968_v6 = vpop.f32.mrf.mxu1  ;;  %v2307_v57 = vpop.f32.mrf.mxu0  ;;  %v1040_v2 = vsel %vm952_vm1, %v1038_v61, %v1039_v37  ;;  %v1167_v11 = vsel %vm1079_vm0, %v1165_v7, %v1166_v45 }
 0x2b9   : > { %2378 = vst [vmem:[%s4264_s14 + $0x58] sm:$0xff] %v2305_v42  ;;  %v2409_v3 = vadd.f32 %v2408_v24, %v2305_v42  ;;  %v2448_v32 = vmul.f32 %v2305_v42, %v2305_v42  ;;  %v1969_v16 = vadd.f32 %v1968_v6, %v4643_v5  ;;  %v1164_v24 = vsel %vm1079_vm0, %v1161_v23, %v1163_v14 }
 0x2bb   : > { %v2479_v56 = vadd.f32 %v2478_v19, %v2448_v32  ;;  %v2082_v46 = vadd.f32 %v2081_v58, %v1969_v16  ;;  %2015 = vmatmul.f32.gmra.mxu1 %v4102_v0  ;;  %2354 = vmatmul.f32.gmra.mxu0 %v1162_v18 }
 0x2bc   : > { %2131 = vmatmul.f32.gmra.mxu2 %v4093_v30  ;;  %2244 = vmatmul.f32.gmra.mxu3 %v4135_v39  ;;  %v842_v39 = vpop.permute.xlu2 %841 }
 0x2bd   : > { %v2195_v29 = vadd.f32 %v2194_v28, %v2082_v46  ;;  %v897_v53 = vmul.f32 %v842_v39, %v519_v54 }
 0x2bf   : > { %v2308_v35 = vadd.f32 %v2307_v57, %v2195_v29  ;;  %v2084_v34 = vpop.f32.mrf.mxu2  ;;  %v2197_v33 = vpop.f32.mrf.mxu3  ;;  %v1041_v10 = vrot.slane %v897_v53, 1  ;;  %v1168_v17 = vrot.slane %v897_v53, 2 }
 0x2c0   : > { %v1971_v62 = vpop.f32.mrf.mxu1  ;;  %v2310_v38 = vpop.f32.mrf.mxu0 }
 0x2c1   : > { %2379 = vst [vmem:[%s4264_s14 + $0x60] sm:$0xff] %v2308_v35  ;;  %v2410_v0 = vadd.f32 %v2409_v3, %v2308_v35  ;;  %v2449_v25 = vmul.f32 %v2308_v35, %v2308_v35  ;;  %v1972_v30 = vadd.f32 %v1971_v62, %v4115_v12  ;;  %v1042_v42 = vsel %vm952_vm1, %v1039_v37, %v1041_v10 }
 0x2c3   : > { %v2480_v27 = vadd.f32 %v2479_v56, %v2449_v25  ;;  %v2085_v15 = vadd.f32 %v2084_v34, %v1972_v30  ;;  %2018 = vmatmul.f32.gmra.mxu1 %v4123_v8  ;;  %2357 = vmatmul.f32.gmra.mxu0 %v1164_v24 }
 0x2c4   : > { %2134 = vmatmul.f32.gmra.mxu2 %v895_v9  ;;  %2247 = vmatmul.f32.gmra.mxu3 %v1040_v2 }
 0x2c5   : > { %v2198_v31 = vadd.f32 %v2197_v33, %v2085_v15 }
 0x2c7   : > { %v2311_v19 = vadd.f32 %v2310_v38, %v2198_v31  ;;  %v2087_v12 = vpop.f32.mrf.mxu2  ;;  %v2200_v40 = vpop.f32.mrf.mxu3 }
 0x2c8   : > { %v1974_v59 = vpop.f32.mrf.mxu1  ;;  %v2313_v13 = vpop.f32.mrf.mxu0 }
 0x2c9   : > { %2380 = vst [vmem:[%s4264_s14 + $0x68] sm:$0xff] %v2311_v19  ;;  %v2411_v41 = vadd.f32 %v2410_v0, %v2311_v19  ;;  %v2450_v20 = vmul.f32 %v2311_v19, %v2311_v19  ;;  %v1975_v8 = vadd.f32 %v1974_v59, %v4130_v47 }
 0x2cb   : > { %v2481_v23 = vadd.f32 %v2480_v27, %v2450_v20  ;;  %v2088_v21 = vadd.f32 %v2087_v12, %v1975_v8  ;;  %2021 = vmatmul.f32.gmra.mxu1 %v1162_v18  ;;  %2360 = vmatmul.f32.gmra.mxu0 %v1167_v11  ;;  %v1169_v18 = vsel %vm1079_vm0, %v1166_v45, %v1168_v17 }
 0x2cc   : > { %2137 = vmatmul.f32.gmra.mxu2 %v4344_v22  ;;  %2250 = vmatmul.f32.gmra.mxu3 %v1042_v42 }
 0x2cd   : > { %v2201_v58 = vadd.f32 %v2200_v40, %v2088_v21 }
 0x2cf   : > { %v2314_v28 = vadd.f32 %v2313_v13, %v2201_v58  ;;  %v2090_v6 = vpop.f32.mrf.mxu2  ;;  %v2203_v57 = vpop.f32.mrf.mxu3 }
 0x2d0   : > { %v1977_v3 = vpop.f32.mrf.mxu1  ;;  %v2316_v32 = vpop.f32.mrf.mxu0 }
 0x2d1   : > { %2381 = vst [vmem:[%s4264_s14 + $0x70] sm:$0xff] %v2314_v28  ;;  %v2412_v47 = vadd.f32 %v2411_v41, %v2314_v28  ;;  %v2451_v5 = vmul.f32 %v2314_v28, %v2314_v28  ;;  %v1978_v16 = vadd.f32 %v1977_v3, %v4141_v63 }
 0x2d3   : > { %v2482_v9 = vadd.f32 %v2481_v23, %v2451_v5  ;;  %v2091_v56 = vadd.f32 %v2090_v6, %v1978_v16  ;;  %2024 = vmatmul.f32.gmra.mxu1 %v1164_v24  ;;  %2363 = vmatmul.f32.gmra.mxu0 %v1169_v18 }
 0x2d5   : > { %v2204_v22 = vadd.f32 %v2203_v57, %v2091_v56 }
 0x2d7   : > { %v2317_v46 = vadd.f32 %v2316_v32, %v2204_v22  ;;  %v2093_v48 = vpop.f32.mrf.mxu2  ;;  %v2206_v29 = vpop.f32.mrf.mxu3 }
 0x2d8   : > { %v1980_v37 = vpop.f32.mrf.mxu1  ;;  %v2319_v61 = vpop.f32.mrf.mxu0 }
 0x2d9   : > { %2382 = vst [vmem:[%s4264_s14 + $0x78] sm:$0xff] %v2317_v46  ;;  %v2413_v35 = vadd.f32 %v2412_v47, %v2317_v46  ;;  %v2452_v34 = vmul.f32 %v2317_v46, %v2317_v46  ;;  %v1981_v33 = vadd.f32 %v1980_v37, %v4148_v60 }
 0x2db   : > { %v2483_v14 = vadd.f32 %v2482_v9, %v2452_v34  ;;  %v2094_v63 = vadd.f32 %v2093_v48, %v1981_v33 }
 0x2dd   : > { %v2207_v62 = vadd.f32 %v2206_v29, %v2094_v63 }
 0x2df   : > { %v2320_v38 = vadd.f32 %v2319_v61, %v2207_v62  ;;  %v2096_v54 = vpop.f32.mrf.mxu2  ;;  %v2209_v0 = vpop.f32.mrf.mxu3 }
 0x2e0   : > { %v1983_v25 = vpop.f32.mrf.mxu1  ;;  %v2322_v30 = vpop.f32.mrf.mxu0 }
 0x2e1   : > { %2383 = vst [vmem:[%s4264_s14 + $0x80] sm:$0xff] %v2320_v38  ;;  %v2414_v39 = vadd.f32 %v2413_v35, %v2320_v38  ;;  %v2453_v24 = vmul.f32 %v2320_v38, %v2320_v38  ;;  %v1984_v27 = vadd.f32 %v1983_v25, %v4155_v43 }
 0x2e3   : > { %v2484_v15 = vadd.f32 %v2483_v14, %v2453_v24  ;;  %v2097_v2 = vadd.f32 %v2096_v54, %v1984_v27 }
 0x2e5   : > { %v2210_v53 = vadd.f32 %v2209_v0, %v2097_v2 }
 0x2e7   : > { %v2323_v31 = vadd.f32 %v2322_v30, %v2210_v53  ;;  %v2099_v45 = vpop.f32.mrf.mxu2  ;;  %v2212_v60 = vpop.f32.mrf.mxu3 }
 0x2e8   : > { %v1986_v7 = vpop.f32.mrf.mxu1  ;;  %v2325_v19 = vpop.f32.mrf.mxu0 }
 0x2e9   : > { %2384 = vst [vmem:[%s4264_s14 + $0x88] sm:$0xff] %v2323_v31  ;;  %v2415_v12 = vadd.f32 %v2414_v39, %v2323_v31  ;;  %v2454_v40 = vmul.f32 %v2323_v31, %v2323_v31  ;;  %v1987_v59 = vadd.f32 %v1986_v7, %v4162_v44  ;;  %v4644_v39 = vld [vmem:[#allocation30_spill] sm:$0xff] }
 0x2eb   : > { %v2485_v13 = vadd.f32 %v2484_v15, %v2454_v40  ;;  %v2100_v10 = vadd.f32 %v2099_v45, %v1987_v59 }
 0x2ed   : > { %v2213_v41 = vadd.f32 %v2212_v60, %v2100_v10 }
 0x2ef   : > { %v2326_v20 = vadd.f32 %v2325_v19, %v2213_v41  ;;  %v2102_v8 = vpop.f32.mrf.mxu2  ;;  %v2215_v43 = vpop.f32.mrf.mxu3 }
 0x2f0   : > { %v1989_v11 = vpop.f32.mrf.mxu1  ;;  %v2328_v23 = vpop.f32.mrf.mxu0 }
 0x2f1   : > { %2385 = vst [vmem:[%s4264_s14 + $0x90] sm:$0xff] %v2326_v20  ;;  %v2416_v21 = vadd.f32 %v2415_v12, %v2326_v20  ;;  %v2455_v42 = vmul.f32 %v2326_v20, %v2326_v20  ;;  %v1990_v58 = vadd.f32 %v1989_v11, %v4169_v1  ;;  %v4645_v12 = vld [vmem:[#allocation21_spill] sm:$0xff] }
 0x2f3   : > { %v2486_v28 = vadd.f32 %v2485_v13, %v2455_v42  ;;  %v2103_v6 = vadd.f32 %v2102_v8, %v1990_v58  ;;  %v4646_v42 = vld [vmem:[#allocation18_spill] sm:$0xff] }
 0x2f5   : > { %v2216_v57 = vadd.f32 %v2215_v43, %v2103_v6 }
 0x2f7   : > { %v2329_v17 = vadd.f32 %v2328_v23, %v2216_v57  ;;  %v2105_v3 = vpop.f32.mrf.mxu2  ;;  %v2218_v44 = vpop.f32.mrf.mxu3 }
 0x2f8   : > { %v1992_v32 = vpop.f32.mrf.mxu1  ;;  %v2331_v47 = vpop.f32.mrf.mxu0 }
 0x2f9   : > { %2386 = vst [vmem:[%s4264_s14 + $0x98] sm:$0xff] %v2329_v17  ;;  %v2417_v5 = vadd.f32 %v2416_v21, %v2329_v17  ;;  %v2456_v16 = vmul.f32 %v2329_v17, %v2329_v17  ;;  %v1993_v18 = vadd.f32 %v1992_v32, %v4176_v50 }
 0x2fb   : > { %v2487_v9 = vadd.f32 %v2486_v28, %v2456_v16  ;;  %v2106_v56 = vadd.f32 %v2105_v3, %v1993_v18  ;;  %v4647_v18 = vld [vmem:[#allocation20_spill] sm:$0xff] }
 0x2fd   : > { %v2219_v22 = vadd.f32 %v2218_v44, %v2106_v56 }
 0x2ff   : > { %v2332_v46 = vadd.f32 %v2331_v47, %v2219_v22  ;;  %v2108_v48 = vpop.f32.mrf.mxu2  ;;  %v2221_v1 = vpop.f32.mrf.mxu3 }
 0x300   : > { %v1995_v29 = vpop.f32.mrf.mxu1  ;;  %v2334_v37 = vpop.f32.mrf.mxu0 }
 0x301   : > { %2387 = vst [vmem:[%s4264_s14 + $0xa0] sm:$0xff] %v2332_v46  ;;  %v2418_v61 = vadd.f32 %v2417_v5, %v2332_v46  ;;  %v2457_v35 = vmul.f32 %v2332_v46, %v2332_v46  ;;  %v1996_v34 = vadd.f32 %v1995_v29, %v4183_v55 }
 0x303   : > { %v2488_v33 = vadd.f32 %v2487_v9, %v2457_v35  ;;  %v2109_v14 = vadd.f32 %v2108_v48, %v1996_v34 }
 0x305   : > { %v2222_v63 = vadd.f32 %v2221_v1, %v2109_v14 }
 0x307   : > { %v2335_v62 = vadd.f32 %v2334_v37, %v2222_v63  ;;  %v2111_v38 = vpop.f32.mrf.mxu2  ;;  %v2224_v50 = vpop.f32.mrf.mxu3 }
 0x308   : > { %v1998_v54 = vpop.f32.mrf.mxu1  ;;  %v2337_v0 = vpop.f32.mrf.mxu0 }
 0x309   : > { %2388 = vst [vmem:[%s4264_s14 + $0xa8] sm:$0xff] %v2335_v62  ;;  %v2419_v25 = vadd.f32 %v2418_v61, %v2335_v62  ;;  %v2458_v30 = vmul.f32 %v2335_v62, %v2335_v62  ;;  %v1999_v24 = vadd.f32 %v1998_v54, %v4644_v39 }
 0x30b   : > { %v2489_v27 = vadd.f32 %v2488_v33, %v2458_v30  ;;  %v2112_v15 = vadd.f32 %v2111_v38, %v1999_v24 }
 0x30d   : > { %v2225_v2 = vadd.f32 %v2224_v50, %v2112_v15 }
 0x30f   : > { %v2338_v53 = vadd.f32 %v2337_v0, %v2225_v2  ;;  %v2114_v31 = vpop.f32.mrf.mxu2  ;;  %v2227_v55 = vpop.f32.mrf.mxu3 }
 0x310   : > { %v2001_v45 = vpop.f32.mrf.mxu1  ;;  %v2340_v60 = vpop.f32.mrf.mxu0 }
 0x311   : > { %2389 = vst [vmem:[%s4264_s14 + $0xb0] sm:$0xff] %v2338_v53  ;;  %v2420_v7 = vadd.f32 %v2419_v25, %v2338_v53  ;;  %v2459_v19 = vmul.f32 %v2338_v53, %v2338_v53  ;;  %v2002_v40 = vadd.f32 %v2001_v45, %v4645_v12 }
 0x313   : > { %v2490_v59 = vadd.f32 %v2489_v27, %v2459_v19  ;;  %v2115_v13 = vadd.f32 %v2114_v31, %v2002_v40 }
 0x315   : > { %v2228_v10 = vadd.f32 %v2227_v55, %v2115_v13 }
 0x317   : > { %v2341_v41 = vadd.f32 %v2340_v60, %v2228_v10  ;;  %v2117_v20 = vpop.f32.mrf.mxu2  ;;  %v2230_v8 = vpop.f32.mrf.mxu3 }
 0x318   : > { %v2004_v43 = vpop.f32.mrf.mxu1  ;;  %v2343_v11 = vpop.f32.mrf.mxu0 }
 0x319   : > { %2390 = vst [vmem:[%s4264_s14 + $0xb8] sm:$0xff] %v2341_v41  ;;  %v2421_v23 = vadd.f32 %v2420_v7, %v2341_v41  ;;  %v2460_v21 = vmul.f32 %v2341_v41, %v2341_v41  ;;  %v2005_v58 = vadd.f32 %v2004_v43, %v4646_v42 }
 0x31b   : > { %v2491_v28 = vadd.f32 %v2490_v59, %v2460_v21  ;;  %v2118_v6 = vadd.f32 %v2117_v20, %v2005_v58 }
 0x31d   : > { %v2231_v57 = vadd.f32 %v2230_v8, %v2118_v6 }
 0x31f   : > { %v2344_v17 = vadd.f32 %v2343_v11, %v2231_v57  ;;  %v2120_v3 = vpop.f32.mrf.mxu2  ;;  %v2233_v44 = vpop.f32.mrf.mxu3 }
 0x320   : > { %v2007_v32 = vpop.f32.mrf.mxu1  ;;  %v2346_v47 = vpop.f32.mrf.mxu0 }
 0x321   : > { %2391 = vst [vmem:[%s4264_s14 + $0xc0] sm:$0xff] %v2344_v17  ;;  %v2422_v5 = vadd.f32 %v2421_v23, %v2344_v17  ;;  %v2461_v16 = vmul.f32 %v2344_v17, %v2344_v17  ;;  %v2008_v9 = vadd.f32 %v2007_v32, %v4647_v18 }
 0x323   : > { %v2492_v56 = vadd.f32 %v2491_v28, %v2461_v16  ;;  %v2121_v22 = vadd.f32 %v2120_v3, %v2008_v9 }
 0x325   : > { %v2234_v46 = vadd.f32 %v2233_v44, %v2121_v22 }
 0x327   : > { %v2347_v48 = vadd.f32 %v2346_v47, %v2234_v46  ;;  %v2123_v1 = vpop.f32.mrf.mxu2  ;;  %v2236_v29 = vpop.f32.mrf.mxu3 }
 0x328   : > { %v2010_v37 = vpop.f32.mrf.mxu1  ;;  %v2349_v61 = vpop.f32.mrf.mxu0 }
 0x329   : > { %2392 = vst [vmem:[%s4264_s14 + $0xc8] sm:$0xff] %v2347_v48  ;;  %v2423_v35 = vadd.f32 %v2422_v5, %v2347_v48  ;;  %v2462_v34 = vmul.f32 %v2347_v48, %v2347_v48  ;;  %v2011_v33 = vadd.f32 %v2010_v37, %v4218_v52 }
 0x32b   : > { %v2493_v14 = vadd.f32 %v2492_v56, %v2462_v34  ;;  %v2124_v63 = vadd.f32 %v2123_v1, %v2011_v33 }
 0x32d   : > { %v2237_v62 = vadd.f32 %v2236_v29, %v2124_v63 }
 0x32f   : > { %v2350_v38 = vadd.f32 %v2349_v61, %v2237_v62  ;;  %v2126_v50 = vpop.f32.mrf.mxu2  ;;  %v2239_v54 = vpop.f32.mrf.mxu3 }
 0x330   : > { %v2013_v0 = vpop.f32.mrf.mxu1  ;;  %v2352_v25 = vpop.f32.mrf.mxu0 }
 0x331   : > { %2393 = vst [vmem:[%s4264_s14 + $0xd0] sm:$0xff] %v2350_v38  ;;  %v2424_v30 = vadd.f32 %v2423_v35, %v2350_v38  ;;  %v2463_v39 = vmul.f32 %v2350_v38, %v2350_v38  ;;  %v2014_v24 = vadd.f32 %v2013_v0, %v4225_v26 }
 0x333   : > { %v2494_v27 = vadd.f32 %v2493_v14, %v2463_v39  ;;  %v2127_v15 = vadd.f32 %v2126_v50, %v2014_v24 }
 0x335   : > { %v2240_v2 = vadd.f32 %v2239_v54, %v2127_v15 }
 0x337   : > { %v2353_v53 = vadd.f32 %v2352_v25, %v2240_v2  ;;  %v2129_v52 = vpop.f32.mrf.mxu2  ;;  %v2242_v31 = vpop.f32.mrf.mxu3 }
 0x338   : > { %v2016_v55 = vpop.f32.mrf.mxu1  ;;  %v2355_v45 = vpop.f32.mrf.mxu0 }
 0x339   : > { %2394 = vst [vmem:[%s4264_s14 + $0xd8] sm:$0xff] %v2353_v53  ;;  %v2425_v60 = vadd.f32 %v2424_v30, %v2353_v53  ;;  %v2464_v7 = vmul.f32 %v2353_v53, %v2353_v53  ;;  %v2017_v19 = vadd.f32 %v2016_v55, %v4232_v36 }
 0x33b   : > { %v2495_v12 = vadd.f32 %v2494_v27, %v2464_v7  ;;  %v2130_v40 = vadd.f32 %v2129_v52, %v2017_v19 }
 0x33d   : > { %v2243_v59 = vadd.f32 %v2242_v31, %v2130_v40 }
 0x33f   : > { %v2356_v13 = vadd.f32 %v2355_v45, %v2243_v59  ;;  %v2132_v26 = vpop.f32.mrf.mxu2  ;;  %v2245_v10 = vpop.f32.mrf.mxu3 }
 0x340   : > { %v2019_v41 = vpop.f32.mrf.mxu1  ;;  %v2358_v11 = vpop.f32.mrf.mxu0 }
 0x341   : > { %2395 = vst [vmem:[%s4264_s14 + $0xe0] sm:$0xff] %v2356_v13  ;;  %v2426_v20 = vadd.f32 %v2425_v60, %v2356_v13  ;;  %v2465_v8 = vmul.f32 %v2356_v13, %v2356_v13  ;;  %v2020_v43 = vadd.f32 %v2019_v41, %v4239_v4 }
 0x343   : > { %v2496_v23 = vadd.f32 %v2495_v12, %v2465_v8  ;;  %v2133_v21 = vadd.f32 %v2132_v26, %v2020_v43 }
 0x345   : > { %v2246_v42 = vadd.f32 %v2245_v10, %v2133_v21 }
 0x347   : > { %v2359_v58 = vadd.f32 %v2358_v11, %v2246_v42  ;;  %v2135_v36 = vpop.f32.mrf.mxu2  ;;  %v2248_v3 = vpop.f32.mrf.mxu3 }
 0x348   : > { %v2022_v28 = vpop.f32.mrf.mxu1  ;;  %v2361_v47 = vpop.f32.mrf.mxu0 }
 0x349   : > { %2396 = vst [vmem:[%s4264_s14 + $0xe8] sm:$0xff] %v2359_v58  ;;  %v2427_v6 = vadd.f32 %v2426_v20, %v2359_v58  ;;  %v2466_v57 = vmul.f32 %v2359_v58, %v2359_v58  ;;  %v2023_v17 = vadd.f32 %v2022_v28, %v4246_v51 }
 0x34b   : > { %v2497_v44 = vadd.f32 %v2496_v23, %v2466_v57  ;;  %v2136_v32 = vadd.f32 %v2135_v36, %v2023_v17 }
 0x34d   : > { %v2249_v5 = vadd.f32 %v2248_v3, %v2136_v32 }
 0x34f   : > { %v2362_v4 = vadd.f32 %v2361_v47, %v2249_v5  ;;  %v2138_v22 = vpop.f32.mrf.mxu2  ;;  %v2251_v1 = vpop.f32.mrf.mxu3 }
 0x350   : > { %v2025_v16 = vpop.f32.mrf.mxu1  ;;  %v2364_v51 = vpop.f32.mrf.mxu0 }
 0x351   : > { %2397 = vst [vmem:[%s4264_s14 + $0xf0] sm:$0xff] %v2362_v4  ;;  %v2428_v18 = vadd.f32 %v2427_v6, %v2362_v4  ;;  %v2467_v9 = vmul.f32 %v2362_v4, %v2362_v4  ;;  %v2026_v56 = vadd.f32 %v2025_v16, %v4253_v49 }
 0x353   : > { %v2498_v46 = vadd.f32 %v2497_v44, %v2467_v9  ;;  %v2139_v48 = vadd.f32 %v2138_v22, %v2026_v56 }
 0x355   : > { %v2252_v29 = vadd.f32 %v2251_v1, %v2139_v48 }
 0x357   : > { %v2365_v37 = vadd.f32 %v2364_v51, %v2252_v29 }
 0x359   : > { %2398 = vst [vmem:[%s4264_s14 + $0xf8] sm:$0xff] %v2365_v37  ;;  %v2429_v61 = vadd.f32 %v2428_v18, %v2365_v37  ;;  %v2468_v35 = vmul.f32 %v2365_v37, %v2365_v37 }
 0x35b   : > { %v2430_v34 = vrot.slane %v2429_v61, 4  ;;  %v2499_v33 = vadd.f32 %v2498_v46, %v2468_v35 }
 0x35d   : > { %v2431_v14 = vadd.f32 %v2430_v34, %v2429_v61  ;;  %v2500_v63 = vrot.slane %v2499_v33, 4 }
 0x35f   : > { %v2432_v62 = vrot.slane %v2431_v14, 2  ;;  %v2501_v38 = vadd.f32 %v2500_v63, %v2499_v33 }
 0x361   : > { %v2433_v50 = vadd.f32 %v2432_v62, %v2431_v14  ;;  %v2502_v49 = vrot.slane %v2501_v38, 2 }
 0x363   : > { %v2434_v54 = vrot.slane %v2433_v50, 1  ;;  %v2503_v0 = vadd.f32 %v2502_v49, %v2501_v38 }
 0x365   : > { %v2435_v25 = vadd.f32 %v2434_v54, %v2433_v50  ;;  %v2504_v30 = vrot.slane %v2503_v0, 1 }
 0x367   : > { %2436 = vst [vmem:[%s292_s16] sm:$0x1] %v2435_v25  ;;  %v2505_v39 = vadd.f32 %v2504_v30, %v2503_v0 }
 0x369   : > { %2506 = vst [vmem:[%s295_s19] sm:$0x1] %v2505_v39 }
 0x36a PF: > { %s18_s24 = sadd.s32 1, %s2696_s24  }
 0x36b   : > { %p15_p4 = scmp.ge.s32.totalorder %s18_s24, 4  }
 0x36d   :  { %17 = sbr.rel (!%p15_p4) target bundleno = 1 (0x1), region = 94 }

</bundles_post_ra>
